<compile_context>
chip_gen: v5e
topology: v5e:2x2
jax: 0.10.0
libtpu: 0.0.40
codegen_flags: <defaults>
</compile_context>

<pallas_src>
import math

import jax
import jax.numpy as jnp
from jax.experimental import pallas as pl
from jax.experimental.pallas import tpu as pltpu


def _round_up(n, m):
    return (n + m - 1) // m * m


# --------------------------------------------------------------------------
# Kernel
# --------------------------------------------------------------------------
def _make_kernel(half):
    """Fused 5-matmul forward over one batch tile.

    The tile is split into two independent half-tiles (two dependency chains),
    letting the LLO scheduler overlap the MXU dot of one half with the VPU
    epilogue (bias add + ReLU + bf16 cast) of the other half.
    """

    def kernel(x_ref,
               w1_ref, b1_ref, w2_ref, b2_ref, w3_ref, b3_ref,
               w4_ref, b4_ref, w56_ref, b56_ref,
               o_ref):
        layers = ((w1_ref, b1_ref, True),
                  (w2_ref, b2_ref, True),
                  (w3_ref, b3_ref, True),
                  (w4_ref, b4_ref, True),
                  (w56_ref, b56_ref, False))   # fused enc[-1] + decoder, no ReLU

        def linear(h, w_ref, b_ref, relu):
            acc = jnp.dot(h, w_ref[...], preferred_element_type=jnp.float32)
            acc = acc + b_ref[...]
            if relu:
                acc = jnp.maximum(acc, 0.0)
            return acc

        ha = x_ref[pl.ds(0, half), :]          # bf16 [half, in_pad]
        hb = x_ref[pl.ds(half, half), :]
        n_layers = len(layers)
        for idx, (w_ref, b_ref, relu) in enumerate(layers):
            fa = linear(ha, w_ref, b_ref, relu)
            fb = linear(hb, w_ref, b_ref, relu)
            if idx < n_layers - 1:
                ha = fa.astype(jnp.bfloat16)
                hb = fb.astype(jnp.bfloat16)
            else:
                o_ref[pl.ds(0, half), :] = fa.astype(o_ref.dtype)
                o_ref[pl.ds(half, half), :] = fb.astype(o_ref.dtype)

    return kernel


# --------------------------------------------------------------------------
# pallas_call builder
# --------------------------------------------------------------------------
def _build_call(tile, in_pad, out_pad, b_pad, param_shapes, param_dtypes, out_dtype):
    grid = (b_pad // tile,)

    # x / output tile over the batch; weights & biases have constant block
    # indices -> fully resident in VMEM, never re-DMA'd across grid steps.
    in_specs = [pl.BlockSpec((tile, in_pad), lambda i: (i, 0))]
    in_specs += [pl.BlockSpec(s, lambda i: (0, 0)) for s in param_shapes]
    out_spec = pl.BlockSpec((tile, out_pad), lambda i: (i, 0))

    # Advisory cost estimate (fused layer dims).
    dims = [(in_pad, 128), (128, 256), (256, 512), (512, 256), (256, out_pad)]
    flops = 2 * b_pad * sum(k * n for k, n in dims)
    w_bytes = sum(math.prod(s) * jnp.dtype(d).itemsize
                  for s, d in zip(param_shapes, param_dtypes))
    bytes_accessed = (b_pad * in_pad * 2                                   # bf16 in
                      + b_pad * out_pad * jnp.dtype(out_dtype).itemsize    # out
                      + w_bytes)

    return pl.pallas_call(
        _make_kernel(tile // 2),
        out_shape=jax.ShapeDtypeStruct((b_pad, out_pad), out_dtype),
        grid_spec=pltpu.PrefetchScalarGridSpec(
            num_scalar_prefetch=0,
            grid=grid,
            in_specs=in_specs,
            out_specs=out_spec,
        ),
        compiler_params=pltpu.CompilerParams(
            dimension_semantics=("parallel",),
            vmem_limit_bytes=32 * 1024 * 1024,
        ),
        cost_estimate=pl.CostEstimate(
            flops=flops, transcendentals=0, bytes_accessed=bytes_accessed),
    )


# --------------------------------------------------------------------------
# One-time parameter preparation (hoisted out of the per-call path)
# --------------------------------------------------------------------------
def _prepare_params(params):
    """Fuse the last two Linears (no ReLU between): W56 = W5@W6, b56 = b5@W6+b6;
    zero-pad in/out feature dims to multiples of 128 (lane-dense); cast weights
    to bf16 and reshape f32 biases to (1, N)."""
    (w1, b1), (w2, b2), (w3, b3), (w4, b4), (w5, b5), (w6, b6) = params
    in_dim = w1.shape[0]
    out_dim = w6.shape[1]
    in_pad = _round_up(in_dim, 128)
    out_pad = _round_up(out_dim, 128)

    w5f, w6f = w5.astype(jnp.float32), w6.astype(jnp.float32)
    w56 = jnp.dot(w5f, w6f, preferred_element_type=jnp.float32)
    b56 = jnp.dot(b5.astype(jnp.float32), w6f,
                  preferred_element_type=jnp.float32) + b6

    if in_pad != in_dim:
        w1 = jnp.pad(w1, ((0, in_pad - in_dim), (0, 0)))
    if out_pad != out_dim:
        w56 = jnp.pad(w56, ((0, 0), (0, out_pad - out_dim)))
        b56 = jnp.pad(b56, (0, out_pad - out_dim))

    flat = []
    for w, b in [(w1, b1), (w2, b2), (w3, b3), (w4, b4), (w56, b56)]:
        flat.append(jnp.asarray(w, jnp.bfloat16))
        flat.append(jnp.asarray(b, jnp.float32).reshape(1, -1))
    return dict(flat=flat, in_dim=in_dim, out_dim=out_dim,
                in_pad=in_pad, out_pad=out_pad)


def _choose_batch_tiling(B, *, align=32, max_tile=1024):
    """Minimize pad waste: the MXU M dim only needs sublane alignment (32 so
    each half-tile is 16-aligned for bf16).  Keep grid length even and >= 2 so
    v7x's two TensorCores both get work (free on 1-TC chips)."""
    grid = max(2, -(-B // max_tile))
    if grid % 2:
        grid += 1
    tile = min(_round_up(-(-B // grid), align), max_tile)
    b_pad = tile * grid
    return tile, b_pad, grid


def make_autoencoder_forward(params, *, out_dtype=jnp.float32, max_tile=1024):
    """Returns a jitted forward(x) for the given parameters."""
    prep = _prepare_params(params)
    in_dim, out_dim = prep["in_dim"], prep["out_dim"]
    in_pad, out_pad = prep["in_pad"], prep["out_pad"]
    flat = prep["flat"]
    param_shapes = [p.shape for p in flat]
    param_dtypes = [p.dtype for p in flat]

    def _forward(x, *flat_params):
        B = x.shape[0]
        tile, b_pad, _ = _choose_batch_tiling(B, max_tile=max_tile)
        pad_rows = b_pad - B
        pad_cols = in_pad - in_dim
        if pad_rows or pad_cols:
            x = jnp.pad(x, ((0, pad_rows), (0, pad_cols)))
        x = x.astype(jnp.bfloat16)
        call = _build_call(tile, in_pad, out_pad, b_pad,
                           param_shapes, param_dtypes, out_dtype)
        out_padded = call(x, *flat_params)
        return out_padded[:B, :out_dim]

    forward_jit = jax.jit(_forward)

    def forward(x):
        return forward_jit(x, *flat)

    return forward


# --------------------------------------------------------------------------
# Init + pure-JAX reference
# --------------------------------------------------------------------------
def init_params(key, input_dim, output_dim):
    """Deterministic init mimicking nn.Linear default U[-1/sqrt(fan_in), +1/sqrt(fan_in)]."""
    dims = [(input_dim, 128), (128, 256), (256, 512), (512, 256), (256, 256),
            (256, output_dim)]
    params = []
    for fan_in, fan_out in dims:
        key, kw, kb = jax.random.split(key, 3)
        bound = 1.0 / jnp.sqrt(fan_in)
        w = jax.random.uniform(kw, (fan_in, fan_out), jnp.float32, -bound, bound)
        b = jax.random.uniform(kb, (fan_out,), jnp.float32, -bound, bound)
        params.append((w, b))
    return params


def reference_forward(x, params):
    """Pure-JAX f32 reference matching the PyTorch module exactly."""
    h = x
    for i, (w, b) in enumerate(params):
        h = h @ w + b
        if i < 4:  # ReLU after the first four encoder Linears only
            h = jnp.maximum(h, 0.0)
    return h


if __name__ == "__main__":
    key = jax.random.PRNGKey(0)
    # Ragged batch exercises low-waste batch padding (tile=160, b_pad=320) and
    # an even 2-step grid (both v7x TensorCores busy).
    B, input_dim, output_dim = 300, 64, 64

    k_x, k_p = jax.random.split(key)
    x = jax.random.normal(k_x, (B, input_dim), jnp.float32)
    params = init_params(k_p, input_dim, output_dim)

    forward = make_autoencoder_forward(params)
    out = jax.block_until_ready(forward(x))

    ref = reference_forward(x, params)
    assert out.shape == (B, output_dim)
    # bf16 matmul inputs (f32 accumulation) + fused final Linears -> looser
    # tolerance than pure f32.
    assert jnp.allclose(out, ref, atol=2e-2, rtol=2e-2), "mismatch vs reference"

    print("KERNEL_OK")
</pallas_src>

<mosaic_0001>
module attributes {stable_mosaic.version = 11 : i64} {
  func.func @kernel(%arg0: i32, %arg1: memref<160x128xbf16, #tpu.memory_space<vmem>>, %arg2: memref<128x128xbf16, #tpu.memory_space<vmem>>, %arg3: memref<1x128xf32, #tpu.memory_space<vmem>>, %arg4: memref<128x256xbf16, #tpu.memory_space<vmem>>, %arg5: memref<1x256xf32, #tpu.memory_space<vmem>>, %arg6: memref<256x512xbf16, #tpu.memory_space<vmem>>, %arg7: memref<1x512xf32, #tpu.memory_space<vmem>>, %arg8: memref<512x256xbf16, #tpu.memory_space<vmem>>, %arg9: memref<1x256xf32, #tpu.memory_space<vmem>>, %arg10: memref<256x128xbf16, #tpu.memory_space<vmem>>, %arg11: memref<1x128xf32, #tpu.memory_space<vmem>>, %arg12: memref<160x128xf32, #tpu.memory_space<vmem>>) attributes {dimension_semantics = [#tpu.dimension_semantics<parallel>], iteration_bounds = array<i64: 2>, scalar_prefetch = 0 : i64, scratch_operands = 0 : i64, tpu.core_type = #tpu.core_type<tc>, window_params = [{transform_indices = @transform_0, window_bounds = array<i64: 160, 128>}, {pipeline_mode = #tpu.pipeline_mode<synchronous>, transform_indices = @transform_1, window_bounds = array<i64: 128, 128>}, {pipeline_mode = #tpu.pipeline_mode<synchronous>, transform_indices = @transform_2, window_bounds = array<i64: 1, 128>}, {pipeline_mode = #tpu.pipeline_mode<synchronous>, transform_indices = @transform_3, window_bounds = array<i64: 128, 256>}, {pipeline_mode = #tpu.pipeline_mode<synchronous>, transform_indices = @transform_4, window_bounds = array<i64: 1, 256>}, {pipeline_mode = #tpu.pipeline_mode<synchronous>, transform_indices = @transform_5, window_bounds = array<i64: 256, 512>}, {pipeline_mode = #tpu.pipeline_mode<synchronous>, transform_indices = @transform_6, window_bounds = array<i64: 1, 512>}, {pipeline_mode = #tpu.pipeline_mode<synchronous>, transform_indices = @transform_7, window_bounds = array<i64: 512, 256>}, {pipeline_mode = #tpu.pipeline_mode<synchronous>, transform_indices = @transform_8, window_bounds = array<i64: 1, 256>}, {pipeline_mode = #tpu.pipeline_mode<synchronous>, transform_indices = @transform_9, window_bounds = array<i64: 256, 128>}, {pipeline_mode = #tpu.pipeline_mode<synchronous>, transform_indices = @transform_10, window_bounds = array<i64: 1, 128>}, {transform_indices = @transform_11, window_bounds = array<i64: 160, 128>}]} {
    %c0 = arith.constant 0 : index
    %c0_0 = arith.constant 0 : index
    %0 = vector.load %arg1[%c0, %c0_0] : memref<160x128xbf16, #tpu.memory_space<vmem>>, vector<80x128xbf16>
    %c80 = arith.constant 80 : index
    %c0_1 = arith.constant 0 : index
    %1 = vector.load %arg1[%c80, %c0_1] : memref<160x128xbf16, #tpu.memory_space<vmem>>, vector<80x128xbf16>
    %c0_2 = arith.constant 0 : index
    %c0_3 = arith.constant 0 : index
    %2 = vector.load %arg2[%c0_2, %c0_3] : memref<128x128xbf16, #tpu.memory_space<vmem>>, vector<128x128xbf16>
    %cst = arith.constant dense<0.000000e+00> : vector<80x128xf32>
    %3 = tpu.matmul %0, %2, %cst {dimension_numbers = #tpu.dot_dimension_numbers<[1], [0], [0], [1], [0, 0, 1, 1], [], []>} : vector<80x128xbf16>, vector<128x128xbf16>, vector<80x128xf32> -> vector<80x128xf32>
    %c0_4 = arith.constant 0 : index
    %c0_5 = arith.constant 0 : index
    %4 = vector.load %arg3[%c0_4, %c0_5] : memref<1x128xf32, #tpu.memory_space<vmem>>, vector<1x128xf32>
    %5 = vector.broadcast %4 : vector<1x128xf32> to vector<80x128xf32>
    %6 = arith.addf %3, %5 : vector<80x128xf32>
    %cst_6 = arith.constant 0.000000e+00 : f32
    %7 = vector.broadcast %cst_6 : f32 to vector<80x128xf32>
    %8 = arith.maximumf %6, %7 : vector<80x128xf32>
    %c0_7 = arith.constant 0 : index
    %c0_8 = arith.constant 0 : index
    %9 = vector.load %arg2[%c0_7, %c0_8] : memref<128x128xbf16, #tpu.memory_space<vmem>>, vector<128x128xbf16>
    %cst_9 = arith.constant dense<0.000000e+00> : vector<80x128xf32>
    %10 = tpu.matmul %1, %9, %cst_9 {dimension_numbers = #tpu.dot_dimension_numbers<[1], [0], [0], [1], [0, 0, 1, 1], [], []>} : vector<80x128xbf16>, vector<128x128xbf16>, vector<80x128xf32> -> vector<80x128xf32>
    %c0_10 = arith.constant 0 : index
    %c0_11 = arith.constant 0 : index
    %11 = vector.load %arg3[%c0_10, %c0_11] : memref<1x128xf32, #tpu.memory_space<vmem>>, vector<1x128xf32>
    %12 = vector.broadcast %11 : vector<1x128xf32> to vector<80x128xf32>
    %13 = arith.addf %10, %12 : vector<80x128xf32>
    %cst_12 = arith.constant 0.000000e+00 : f32
    %14 = vector.broadcast %cst_12 : f32 to vector<80x128xf32>
    %15 = arith.maximumf %13, %14 : vector<80x128xf32>
    %16 = arith.truncf %8 : vector<80x128xf32> to vector<80x128xbf16>
    %17 = arith.truncf %15 : vector<80x128xf32> to vector<80x128xbf16>
    %c0_13 = arith.constant 0 : index
    %c0_14 = arith.constant 0 : index
    %18 = vector.load %arg4[%c0_13, %c0_14] : memref<128x256xbf16, #tpu.memory_space<vmem>>, vector<128x256xbf16>
    %cst_15 = arith.constant dense<0.000000e+00> : vector<80x256xf32>
    %19 = tpu.matmul %16, %18, %cst_15 {dimension_numbers = #tpu.dot_dimension_numbers<[1], [0], [0], [1], [0, 0, 1, 1], [], []>} : vector<80x128xbf16>, vector<128x256xbf16>, vector<80x256xf32> -> vector<80x256xf32>
    %c0_16 = arith.constant 0 : index
    %c0_17 = arith.constant 0 : index
    %20 = vector.load %arg5[%c0_16, %c0_17] : memref<1x256xf32, #tpu.memory_space<vmem>>, vector<1x256xf32>
    %21 = vector.broadcast %20 : vector<1x256xf32> to vector<80x256xf32>
    %22 = arith.addf %19, %21 : vector<80x256xf32>
    %cst_18 = arith.constant 0.000000e+00 : f32
    %23 = vector.broadcast %cst_18 : f32 to vector<80x256xf32>
    %24 = arith.maximumf %22, %23 : vector<80x256xf32>
    %c0_19 = arith.constant 0 : index
    %c0_20 = arith.constant 0 : index
    %25 = vector.load %arg4[%c0_19, %c0_20] : memref<128x256xbf16, #tpu.memory_space<vmem>>, vector<128x256xbf16>
    %cst_21 = arith.constant dense<0.000000e+00> : vector<80x256xf32>
    %26 = tpu.matmul %17, %25, %cst_21 {dimension_numbers = #tpu.dot_dimension_numbers<[1], [0], [0], [1], [0, 0, 1, 1], [], []>} : vector<80x128xbf16>, vector<128x256xbf16>, vector<80x256xf32> -> vector<80x256xf32>
    %c0_22 = arith.constant 0 : index
    %c0_23 = arith.constant 0 : index
    %27 = vector.load %arg5[%c0_22, %c0_23] : memref<1x256xf32, #tpu.memory_space<vmem>>, vector<1x256xf32>
    %28 = vector.broadcast %27 : vector<1x256xf32> to vector<80x256xf32>
    %29 = arith.addf %26, %28 : vector<80x256xf32>
    %cst_24 = arith.constant 0.000000e+00 : f32
    %30 = vector.broadcast %cst_24 : f32 to vector<80x256xf32>
    %31 = arith.maximumf %29, %30 : vector<80x256xf32>
    %32 = arith.truncf %24 : vector<80x256xf32> to vector<80x256xbf16>
    %33 = arith.truncf %31 : vector<80x256xf32> to vector<80x256xbf16>
    %c0_25 = arith.constant 0 : index
    %c0_26 = arith.constant 0 : index
    %34 = vector.load %arg6[%c0_25, %c0_26] : memref<256x512xbf16, #tpu.memory_space<vmem>>, vector<256x512xbf16>
    %cst_27 = arith.constant dense<0.000000e+00> : vector<80x512xf32>
    %35 = tpu.matmul %32, %34, %cst_27 {dimension_numbers = #tpu.dot_dimension_numbers<[1], [0], [0], [1], [0, 0, 1, 1], [], []>} : vector<80x256xbf16>, vector<256x512xbf16>, vector<80x512xf32> -> vector<80x512xf32>
    %c0_28 = arith.constant 0 : index
    %c0_29 = arith.constant 0 : index
    %36 = vector.load %arg7[%c0_28, %c0_29] : memref<1x512xf32, #tpu.memory_space<vmem>>, vector<1x512xf32>
    %37 = vector.broadcast %36 : vector<1x512xf32> to vector<80x512xf32>
    %38 = arith.addf %35, %37 : vector<80x512xf32>
    %cst_30 = arith.constant 0.000000e+00 : f32
    %39 = vector.broadcast %cst_30 : f32 to vector<80x512xf32>
    %40 = arith.maximumf %38, %39 : vector<80x512xf32>
    %c0_31 = arith.constant 0 : index
    %c0_32 = arith.constant 0 : index
    %41 = vector.load %arg6[%c0_31, %c0_32] : memref<256x512xbf16, #tpu.memory_space<vmem>>, vector<256x512xbf16>
    %cst_33 = arith.constant dense<0.000000e+00> : vector<80x512xf32>
    %42 = tpu.matmul %33, %41, %cst_33 {dimension_numbers = #tpu.dot_dimension_numbers<[1], [0], [0], [1], [0, 0, 1, 1], [], []>} : vector<80x256xbf16>, vector<256x512xbf16>, vector<80x512xf32> -> vector<80x512xf32>
    %c0_34 = arith.constant 0 : index
    %c0_35 = arith.constant 0 : index
    %43 = vector.load %arg7[%c0_34, %c0_35] : memref<1x512xf32, #tpu.memory_space<vmem>>, vector<1x512xf32>
    %44 = vector.broadcast %43 : vector<1x512xf32> to vector<80x512xf32>
    %45 = arith.addf %42, %44 : vector<80x512xf32>
    %cst_36 = arith.constant 0.000000e+00 : f32
    %46 = vector.broadcast %cst_36 : f32 to vector<80x512xf32>
    %47 = arith.maximumf %45, %46 : vector<80x512xf32>
    %48 = arith.truncf %40 : vector<80x512xf32> to vector<80x512xbf16>
    %49 = arith.truncf %47 : vector<80x512xf32> to vector<80x512xbf16>
    %c0_37 = arith.constant 0 : index
    %c0_38 = arith.constant 0 : index
    %50 = vector.load %arg8[%c0_37, %c0_38] : memref<512x256xbf16, #tpu.memory_space<vmem>>, vector<512x256xbf16>
    %cst_39 = arith.constant dense<0.000000e+00> : vector<80x256xf32>
    %51 = tpu.matmul %48, %50, %cst_39 {dimension_numbers = #tpu.dot_dimension_numbers<[1], [0], [0], [1], [0, 0, 1, 1], [], []>} : vector<80x512xbf16>, vector<512x256xbf16>, vector<80x256xf32> -> vector<80x256xf32>
    %c0_40 = arith.constant 0 : index
    %c0_41 = arith.constant 0 : index
    %52 = vector.load %arg9[%c0_40, %c0_41] : memref<1x256xf32, #tpu.memory_space<vmem>>, vector<1x256xf32>
    %53 = vector.broadcast %52 : vector<1x256xf32> to vector<80x256xf32>
    %54 = arith.addf %51, %53 : vector<80x256xf32>
    %cst_42 = arith.constant 0.000000e+00 : f32
    %55 = vector.broadcast %cst_42 : f32 to vector<80x256xf32>
    %56 = arith.maximumf %54, %55 : vector<80x256xf32>
    %c0_43 = arith.constant 0 : index
    %c0_44 = arith.constant 0 : index
    %57 = vector.load %arg8[%c0_43, %c0_44] : memref<512x256xbf16, #tpu.memory_space<vmem>>, vector<512x256xbf16>
    %cst_45 = arith.constant dense<0.000000e+00> : vector<80x256xf32>
    %58 = tpu.matmul %49, %57, %cst_45 {dimension_numbers = #tpu.dot_dimension_numbers<[1], [0], [0], [1], [0, 0, 1, 1], [], []>} : vector<80x512xbf16>, vector<512x256xbf16>, vector<80x256xf32> -> vector<80x256xf32>
    %c0_46 = arith.constant 0 : index
    %c0_47 = arith.constant 0 : index
    %59 = vector.load %arg9[%c0_46, %c0_47] : memref<1x256xf32, #tpu.memory_space<vmem>>, vector<1x256xf32>
    %60 = vector.broadcast %59 : vector<1x256xf32> to vector<80x256xf32>
    %61 = arith.addf %58, %60 : vector<80x256xf32>
    %cst_48 = arith.constant 0.000000e+00 : f32
    %62 = vector.broadcast %cst_48 : f32 to vector<80x256xf32>
    %63 = arith.maximumf %61, %62 : vector<80x256xf32>
    %64 = arith.truncf %56 : vector<80x256xf32> to vector<80x256xbf16>
    %65 = arith.truncf %63 : vector<80x256xf32> to vector<80x256xbf16>
    %c0_49 = arith.constant 0 : index
    %c0_50 = arith.constant 0 : index
    %66 = vector.load %arg10[%c0_49, %c0_50] : memref<256x128xbf16, #tpu.memory_space<vmem>>, vector<256x128xbf16>
    %cst_51 = arith.constant dense<0.000000e+00> : vector<80x128xf32>
    %67 = tpu.matmul %64, %66, %cst_51 {dimension_numbers = #tpu.dot_dimension_numbers<[1], [0], [0], [1], [0, 0, 1, 1], [], []>} : vector<80x256xbf16>, vector<256x128xbf16>, vector<80x128xf32> -> vector<80x128xf32>
    %c0_52 = arith.constant 0 : index
    %c0_53 = arith.constant 0 : index
    %68 = vector.load %arg11[%c0_52, %c0_53] : memref<1x128xf32, #tpu.memory_space<vmem>>, vector<1x128xf32>
    %69 = vector.broadcast %68 : vector<1x128xf32> to vector<80x128xf32>
    %70 = arith.addf %67, %69 : vector<80x128xf32>
    %c0_54 = arith.constant 0 : index
    %c0_55 = arith.constant 0 : index
    %71 = vector.load %arg10[%c0_54, %c0_55] : memref<256x128xbf16, #tpu.memory_space<vmem>>, vector<256x128xbf16>
    %cst_56 = arith.constant dense<0.000000e+00> : vector<80x128xf32>
    %72 = tpu.matmul %65, %71, %cst_56 {dimension_numbers = #tpu.dot_dimension_numbers<[1], [0], [0], [1], [0, 0, 1, 1], [], []>} : vector<80x256xbf16>, vector<256x128xbf16>, vector<80x128xf32> -> vector<80x128xf32>
    %c0_57 = arith.constant 0 : index
    %c0_58 = arith.constant 0 : index
    %73 = vector.load %arg11[%c0_57, %c0_58] : memref<1x128xf32, #tpu.memory_space<vmem>>, vector<1x128xf32>
    %74 = vector.broadcast %73 : vector<1x128xf32> to vector<80x128xf32>
    %75 = arith.addf %72, %74 : vector<80x128xf32>
    %c0_59 = arith.constant 0 : index
    %c0_60 = arith.constant 0 : index
    %76 = vector.load %arg12[%c0_59, %c0_60] : memref<160x128xf32, #tpu.memory_space<vmem>>, vector<80x128xf32>
    tpu.vector_store %arg12[%c0_59, %c0_60], %70 {strides = array<i32>} : memref<160x128xf32, #tpu.memory_space<vmem>>, vector<80x128xf32>,
    %c80_61 = arith.constant 80 : index
    %c0_62 = arith.constant 0 : index
    %77 = vector.load %arg12[%c80_61, %c0_62] : memref<160x128xf32, #tpu.memory_space<vmem>>, vector<80x128xf32>
    tpu.vector_store %arg12[%c80_61, %c0_62], %75 {strides = array<i32>} : memref<160x128xf32, #tpu.memory_space<vmem>>, vector<80x128xf32>,
    return
  }
  func.func @transform_0(%arg0: i32) -> (i32, i32) {
    %c0_i32 = arith.constant 0 : i32
    %c0_i32_0 = arith.constant 0 : i32
    return %arg0, %c0_i32 : i32, i32
  }
  func.func @transform_1(%arg0: i32) -> (i32, i32) {
    %c0_i32 = arith.constant 0 : i32
    %c0_i32_0 = arith.constant 0 : i32
    %c0_i32_1 = arith.constant 0 : i32
    return %c0_i32, %c0_i32_0 : i32, i32
  }
  func.func @transform_2(%arg0: i32) -> (i32, i32) {
    %c0_i32 = arith.constant 0 : i32
    %c0_i32_0 = arith.constant 0 : i32
    %c0_i32_1 = arith.constant 0 : i32
    return %c0_i32, %c0_i32_0 : i32, i32
  }
  func.func @transform_3(%arg0: i32) -> (i32, i32) {
    %c0_i32 = arith.constant 0 : i32
    %c0_i32_0 = arith.constant 0 : i32
    %c0_i32_1 = arith.constant 0 : i32
    return %c0_i32, %c0_i32_0 : i32, i32
  }
  func.func @transform_4(%arg0: i32) -> (i32, i32) {
    %c0_i32 = arith.constant 0 : i32
    %c0_i32_0 = arith.constant 0 : i32
    %c0_i32_1 = arith.constant 0 : i32
    return %c0_i32, %c0_i32_0 : i32, i32
  }
  func.func @transform_5(%arg0: i32) -> (i32, i32) {
    %c0_i32 = arith.constant 0 : i32
    %c0_i32_0 = arith.constant 0 : i32
    %c0_i32_1 = arith.constant 0 : i32
    return %c0_i32, %c0_i32_0 : i32, i32
  }
  func.func @transform_6(%arg0: i32) -> (i32, i32) {
    %c0_i32 = arith.constant 0 : i32
    %c0_i32_0 = arith.constant 0 : i32
    %c0_i32_1 = arith.constant 0 : i32
    return %c0_i32, %c0_i32_0 : i32, i32
  }
  func.func @transform_7(%arg0: i32) -> (i32, i32) {
    %c0_i32 = arith.constant 0 : i32
    %c0_i32_0 = arith.constant 0 : i32
    %c0_i32_1 = arith.constant 0 : i32
    return %c0_i32, %c0_i32_0 : i32, i32
  }
  func.func @transform_8(%arg0: i32) -> (i32, i32) {
    %c0_i32 = arith.constant 0 : i32
    %c0_i32_0 = arith.constant 0 : i32
    %c0_i32_1 = arith.constant 0 : i32
    return %c0_i32, %c0_i32_0 : i32, i32
  }
  func.func @transform_9(%arg0: i32) -> (i32, i32) {
    %c0_i32 = arith.constant 0 : i32
    %c0_i32_0 = arith.constant 0 : i32
    %c0_i32_1 = arith.constant 0 : i32
    return %c0_i32, %c0_i32_0 : i32, i32
  }
  func.func @transform_10(%arg0: i32) -> (i32, i32) {
    %c0_i32 = arith.constant 0 : i32
    %c0_i32_0 = arith.constant 0 : i32
    %c0_i32_1 = arith.constant 0 : i32
    return %c0_i32, %c0_i32_0 : i32, i32
  }
  func.func @transform_11(%arg0: i32) -> (i32, i32) {
    %c0_i32 = arith.constant 0 : i32
    %c0_i32_0 = arith.constant 0 : i32
    return %arg0, %c0_i32 : i32, i32
  }
}

</mosaic_0001>

<bundles_post_ra>
// kernel: _forward.1
= control target key start
LH: loop header
LB: loop body
LE: loop exit
PB: predicated region body
PF: predicated region fallthrough
CT: control target
= control target key end

     0   :  { %16 = vsyncpa [#allocation3], 0  ;;  %s4404_s17 = smov 0   ;;  %s6145_s0 = inlined_call_operand.vmem [shape: bf16[320,128], index: 0, kind: input, shape index: {}]   ;;  %s6146_s1 = inlined_call_operand.vmem [shape: bf16[128,128], index: 1, kind: input, shape index: {}]   ;;  %s6147_s2 = inlined_call_operand.vmem [shape: f32[1,128], index: 2, kind: input, shape index: {}]   ;;  %s6148_s3 = inlined_call_operand.vmem [shape: bf16[128,256], index: 3, kind: input, shape index: {}]   ;;  %s6149_s4 = inlined_call_operand.vmem [shape: f32[1,256], index: 4, kind: input, shape index: {}]   ;;  %s6150_s5 = inlined_call_operand.vmem [shape: bf16[256,512], index: 5, kind: input, shape index: {}]   ;;  %s6151_s6 = inlined_call_operand.vmem [shape: f32[1,512], index: 6, kind: input, shape index: {}]   ;;  %s6152_s7 = inlined_call_operand.hbm [shape: bf16[512,256], index: 7, kind: input, shape index: {}]   ;;  %s6153_s8 = inlined_call_operand.vmem [shape: f32[1,256], index: 8, kind: input, shape index: {}]   ;;  %s6154_s9 = inlined_call_operand.vmem [shape: bf16[256,128], index: 9, kind: input, shape index: {}]   ;;  %s6155_s10 = inlined_call_operand.vmem [shape: f32[1,128], index: 10, kind: input, shape index: {}]   ;;  %s6156_s11 = inlined_call_operand.vmem [shape: f32[320,128], index: 11, kind: output, shape index: {}]  }
   0x1 LB: > { %s318_s20 = sshll.u32 %s6152_s7, 4  ;;  %s3359_s21 = sadd.s32 4294967295, %s4339_s17   ;;  %s4339_s17 = sphi %s4404_s17, %s22_s17   ;;  %s319_s20 = int_to_ptr.hbm [resolvable:$true] %s318_s20 }
   0x2   : > { %p3361_p0 = scmp.ge.s32.totalorder %s4339_s17, 1  ;;  %p289_p1 = scmp.lt.s32.totalorder %s4339_s17, 3 }
   0x3   : > { %p4284_p2 = scmp.eq.s32.totalorder %s3359_s21, 0  ;;  %s4341_s22 = smov [#allocation2]  }
   0x4   : > { %p290_p3 = pnand %p3361_p0, %p289_p1  ;;  %s320_s23 = sshll.u32 %s4341_s22, 4  ;;  %s321_s23 = int_to_ptr.vmem [resolvable:$true] %s320_s23 }
   0x5   : > { %s4342_s24 = smov 128   ;;  %s4343_s25 = smov 8  }
   0x6   : > { %p4280_p4 = pneg %p290_p3  ;;  %354 = sbr.rel (%p290_p3) target bundleno = 1243 (0x4db), region = 64 }
   0x8   : > { %p4281_p5 = pnand %p4284_p2, %p4280_p4 }
   0xa   : > { %4283 = dma.hbm_to_vmem [thread:$0]  (!%p4281_p5), %s319_s20, 8192, %s321_s23, [#allocation3], %s4342_s24, %s4342_s24, %s4343_s25  }
   0xb   : > { %4334 = dma.done.wait (%p4284_p2), [#allocation3], 8192  }
   0xc   : > { %4336 = vsyncadd (%p4284_p2), [#allocation3], 4294959104  ;;  %v4099_v0 = vld [vmem:[%s6146_s1 + $0x38] sm:$0xff]  ;;  %v4098_v1 = vld [vmem:[%s6146_s1 + $0x30] sm:$0xff]  ;;  %s395_s15 = smul.u32 20, %s3359_s21 }
   0xd   : > { %525 = vmatpush.bf16.msra.mxu0 %v4099_v0  ;;  %4260 = vmatpush.bf16.msra.mxu2 %v4099_v0  ;;  %v4097_v2 = vld [vmem:[%s6146_s1 + $0x28] sm:$0xff]  ;;  %v4096_v3 = vld [vmem:[%s6146_s1 + $0x20] sm:$0xff]  ;;  %v4095_v4 = vld [vmem:[%s6146_s1 + $0x18] sm:$0xff] }
   0xe   : > { %599 = vmatpush.bf16.msra.mxu1 %v4099_v0  ;;  %4268 = vmatpush.bf16.msra.mxu3 %v4099_v0  ;;  %p396_p6 = scmp.lt.s32.totalorder %s395_s15, 39  ;;  %v4094_v5 = vld [vmem:[%s6146_s1 + $0x10] sm:$0xff]  ;;  %v4093_v6 = vld [vmem:[%s6146_s1 + $0x8] sm:$0xff]  ;;  %v4092_v7 = vld [vmem:[%s6146_s1] sm:$0xff] }
   0xf   : > { %v3498_v12 = vld [vmem:[%s6148_s3 + $0x70] sm:$0xf]  ;;  %v4115_v13 = vld [vmem:[%s6148_s3 + $0x74] sm:$0xf0]  ;;  %v4114_v15 = vld [vmem:[%s6148_s3 + $0x74] sm:$0xf] }
  0x10   : > { %s6371_s15 = smov (!%p396_p6, %s395_s15), 39  ;;  %v3499_v14 = vor.u32 %v4115_v13, %v3498_v12  ;;  %v3500_v16 = vld [vmem:[%s6148_s3 + $0x78] sm:$0xf0]  ;;  %v3490_v17 = vld [vmem:[%s6148_s3 + $0x60] sm:$0xf] }
  0x11   : > { %526 = vmatpush.bf16.msra.mxu0 %v4098_v1  ;;  %4261 = vmatpush.bf16.msra.mxu2 %v4098_v1  ;;  %s3366_s23 = sshll.u32 %s6371_s15, 2  ;;  %v3503_v18 = vor.u32 %v4114_v15, %v3500_v16  ;;  %v4113_v19 = vld [vmem:[%s6148_s3 + $0x64] sm:$0xf0]  ;;  %v4112_v20 = vld [vmem:[%s6148_s3 + $0x64] sm:$0xf] }
  0x12   : > { %600 = vmatpush.bf16.msra.mxu1 %v4098_v1  ;;  %4269 = vmatpush.bf16.msra.mxu3 %v4098_v1  ;;  %s4449_s28 = scalar_lea.vmem %s6145_s0, %s3366_s23  ;;  %v3492_v21 = vld [vmem:[%s6148_s3 + $0x68] sm:$0xf0]  ;;  %v3491_v22 = vor.u32 %v4113_v19, %v3490_v17  ;;  %v3482_v24 = vld [vmem:[%s6148_s3 + $0x50] sm:$0xf]  ;;  %v4111_v25 = vld [vmem:[%s6148_s3 + $0x54] sm:$0xf0] }
  0x13   : > { %v4082_v8 = vld [vmem:[%s4449_s28] sm:$0xff]  ;;  %v4084_v9 = vld [vmem:[%s4449_s28 + $0x10] sm:$0xff]  ;;  %v4087_v10 = vld [vmem:[%s4449_s28 + $0x28] sm:$0xff]  ;;  %v3495_v23 = vor.u32 %v4112_v20, %v3492_v21  ;;  %v3483_v28 = vor.u32 %v4111_v25, %v3482_v24 }
  0x14   : > { %v4089_v11 = vld [vmem:[%s4449_s28 + $0x38] sm:$0xff]  ;;  %v4110_v26 = vld [vmem:[%s6148_s3 + $0x54] sm:$0xf]  ;;  %v3474_v30 = vld [vmem:[%s6148_s3 + $0x40] sm:$0xf] }
  0x15   : > { %527 = vmatpush.bf16.msra.mxu0 %v4097_v2  ;;  %4262 = vmatpush.bf16.msra.mxu2 %v4097_v2  ;;  %v3484_v27 = vld [vmem:[%s6148_s3 + $0x58] sm:$0xf0]  ;;  %v4109_v31 = vld [vmem:[%s6148_s3 + $0x44] sm:$0xf0]  ;;  %v4108_v32 = vld [vmem:[%s6148_s3 + $0x44] sm:$0xf] }
  0x16   : > { %601 = vmatpush.bf16.msra.mxu1 %v4097_v2  ;;  %4270 = vmatpush.bf16.msra.mxu3 %v4097_v2  ;;  %v3487_v29 = vor.u32 %v4110_v26, %v3484_v27  ;;  %v3476_v33 = vld [vmem:[%s6148_s3 + $0x48] sm:$0xf0]  ;;  %v4085_v35 = vld [vmem:[%s4449_s28 + $0x18] sm:$0xff]  ;;  %v4088_v36 = vld [vmem:[%s4449_s28 + $0x30] sm:$0xff]  ;;  %v3475_v38 = vor.u32 %v4109_v31, %v3474_v30 }
  0x17   : > { %v4083_v34 = vld [vmem:[%s4449_s28 + $0x8] sm:$0xff]  ;;  %v4090_v37 = vld [vmem:[%s4449_s28 + $0x40] sm:$0xff]  ;;  %v3479_v39 = vor.u32 %v4108_v32, %v3476_v33  ;;  %v3466_v40 = vld [vmem:[%s6148_s3 + $0x30] sm:$0xf] }
  0x18   : > { %v4107_v41 = vld [vmem:[%s6148_s3 + $0x34] sm:$0xf0]  ;;  %v4106_v42 = vld [vmem:[%s6148_s3 + $0x34] sm:$0xf]  ;;  %v3468_v43 = vld [vmem:[%s6148_s3 + $0x38] sm:$0xf0] }
  0x19   : > { %528 = vmatpush.bf16.msra.mxu0 %v4096_v3  ;;  %4263 = vmatpush.bf16.msra.mxu2 %v4096_v3  ;;  %v3467_v44 = vor.u32 %v4107_v41, %v3466_v40  ;;  %v3471_v45 = vor.u32 %v4106_v42, %v3468_v43  ;;  %v3458_v46 = vld [vmem:[%s6148_s3 + $0x20] sm:$0xf]  ;;  %v4105_v47 = vld [vmem:[%s6148_s3 + $0x24] sm:$0xf0]  ;;  %v4104_v48 = vld [vmem:[%s6148_s3 + $0x24] sm:$0xf] }
  0x1a   : > { %602 = vmatpush.bf16.msra.mxu1 %v4096_v3  ;;  %4271 = vmatpush.bf16.msra.mxu3 %v4096_v3  ;;  %v3460_v49 = vld [vmem:[%s6148_s3 + $0x28] sm:$0xf0]  ;;  %v3459_v50 = vor.u32 %v4105_v47, %v3458_v46  ;;  %v4086_v52 = vld [vmem:[%s4449_s28 + $0x20] sm:$0xff]  ;;  %v3450_v54 = vld [vmem:[%s6148_s3 + $0x10] sm:$0xf] }
  0x1b   : > { %v3463_v51 = vor.u32 %v4104_v48, %v3460_v49  ;;  %v4091_v53 = vld [vmem:[%s4449_s28 + $0x48] sm:$0xff]  ;;  %v4103_v55 = vld [vmem:[%s6148_s3 + $0x14] sm:$0xf0]  ;;  %v4102_v56 = vld [vmem:[%s6148_s3 + $0x14] sm:$0xf]  ;;  %s3367_s28 = sshll.u32 %s6371_s15, 3 }
  0x1c   : > { %v3451_v57 = vor.u32 %v4103_v55, %v3450_v54  ;;  %v3452_v58 = vld [vmem:[%s6148_s3 + $0x18] sm:$0xf0]  ;;  %v3442_v60 = vld [vmem:[%s6148_s3] sm:$0xf]  ;;  %v4101_v61 = vld [vmem:[%s6148_s3 + $0x4] sm:$0xf0]  ;;  %s6101_s22 = scalar_lea.vmem %s6156_s11, %s3367_s28 }
  0x1d   : > { %529 = vmatpush.bf16.msra.mxu0 %v4095_v4  ;;  %4264 = vmatpush.bf16.msra.mxu2 %v4095_v4  ;;  %v3455_v59 = vor.u32 %v4102_v56, %v3452_v58  ;;  %v4100_v62 = vld [vmem:[%s6148_s3 + $0x4] sm:$0xf]  ;;  %v3443_v63 = vor.u32 %v4101_v61, %v3442_v60  ;;  %v3444_v0 = vld [vmem:[%s6148_s3 + $0x8] sm:$0xf0]  ;;  %v4560_v3 = vld [vmem:[%s6147_s2] ss:$0 sm:$0xff] }
  0x1e   : > { %603 = vmatpush.bf16.msra.mxu1 %v4095_v4  ;;  %4272 = vmatpush.bf16.msra.mxu3 %v4095_v4  ;;  %v3447_v1 = vor.u32 %v4100_v62, %v3444_v0  ;;  %v4146_v40 = vld [vmem:[%s6150_s5 + $0xec] sm:$0xf0]  ;;  %v3746_v42 = vld [vmem:[%s6150_s5 + $0x1e0] sm:$0xf]  ;;  %v4144_v49 = vld [vmem:[%s6150_s5 + $0xe4] sm:$0xf] }
  0x1f   : > { %v3602_v46 = vld [vmem:[%s6150_s5 + $0xc0] sm:$0xf]  ;;  %v4142_v47 = vld [vmem:[%s6150_s5 + $0xcc] sm:$0xf0]  ;;  %v3748_v58 = vld [vmem:[%s6150_s5 + $0x1f0] sm:$0xf0] }
  0x20   : > { %v3730_v54 = vld [vmem:[%s6150_s5 + $0x1c0] sm:$0xf]  ;;  %v4174_v55 = vld [vmem:[%s6150_s5 + $0x1cc] sm:$0xf0]  ;;  %v4140_v0 = vld [vmem:[%s6150_s5 + $0xc4] sm:$0xf] }
  0x21   : > { %530 = vmatpush.bf16.msra.mxu0 %v4094_v5  ;;  %4265 = vmatpush.bf16.msra.mxu2 %v4094_v5  ;;  %v4613_v56 = vor.u32 %v4174_v55, %v3730_v54  ;;  %v3556_v54 = vld [vmem:[%s6150_s5 + $0x70] sm:$0xf0]  ;;  %v3666_v55 = vld [vmem:[%s6150_s5 + $0x140] sm:$0xf] }
  0x22   : > { %604 = vmatpush.bf16.msra.mxu1 %v4094_v5  ;;  %4273 = vmatpush.bf16.msra.mxu3 %v4094_v5 }
  0x25   : > { %531 = vmatpush.bf16.msra.mxu0 %v4093_v6  ;;  %4266 = vmatpush.bf16.msra.mxu2 %v4093_v6 }
  0x26   : > { %605 = vmatpush.bf16.msra.mxu1 %v4093_v6  ;;  %4274 = vmatpush.bf16.msra.mxu3 %v4093_v6 }
  0x29   : > { %532 = vmatpush.bf16.msra.mxu0 %v4092_v7  ;;  %4267 = vmatpush.bf16.msra.mxu2 %v4092_v7 }
  0x2a   : > { %606 = vmatpush.bf16.msra.mxu1 %v4092_v7  ;;  %4275 = vmatpush.bf16.msra.mxu3 %v4092_v7 }
  0x2c   : > { %533 = vmatmul.bf16.vlgmr.msra.gmra.mxu0 %v4082_v8  ;;  %543 = vmatmul.bf16.vlgmr.msra.gmra.mxu2 %v4084_v9 }
  0x2d   : > { %607 = vmatmul.bf16.vlgmr.msra.gmra.mxu1 %v4087_v10  ;;  %617 = vmatmul.bf16.vlgmr.msra.gmra.mxu3 %v4089_v11 }
  0x2e   : > { %755 = vmatpush.bf16.msrb.mxu2 %v3499_v14  ;;  %843 = vmatpush.bf16.msrb.mxu0 %v3499_v14 }
  0x2f   : > { %789 = vmatpush.bf16.msrb.mxu3 %v3503_v18  ;;  %877 = vmatpush.bf16.msrb.mxu1 %v3503_v18 }
  0x32   : > { %756 = vmatpush.bf16.msrb.mxu2 %v3491_v22  ;;  %844 = vmatpush.bf16.msrb.mxu0 %v3491_v22 }
  0x33   : > { %790 = vmatpush.bf16.msrb.mxu3 %v3495_v23  ;;  %878 = vmatpush.bf16.msrb.mxu1 %v3495_v23 }
  0x36   : > { %757 = vmatpush.bf16.msrb.mxu2 %v3483_v28  ;;  %845 = vmatpush.bf16.msrb.mxu0 %v3483_v28 }
  0x37   : > { %791 = vmatpush.bf16.msrb.mxu3 %v3487_v29  ;;  %879 = vmatpush.bf16.msrb.mxu1 %v3487_v29 }
  0x3a   : > { %758 = vmatpush.bf16.msrb.mxu2 %v3475_v38  ;;  %846 = vmatpush.bf16.msrb.mxu0 %v3475_v38 }
  0x3b   : > { %792 = vmatpush.bf16.msrb.mxu3 %v3479_v39  ;;  %880 = vmatpush.bf16.msrb.mxu1 %v3479_v39  ;;  %v3618_v39 = vld [vmem:[%s6150_s5 + $0xe0] sm:$0xf] }
  0x3c   : > { %538 = vmatmul.bf16.gmra.mxu0 %v4083_v34  ;;  %548 = vmatmul.bf16.gmra.mxu2 %v4085_v35 }
  0x3d   : > { %612 = vmatmul.bf16.gmra.mxu1 %v4088_v36  ;;  %622 = vmatmul.bf16.gmra.mxu3 %v4090_v37 }
  0x3e   : > { %759 = vmatpush.bf16.msrb.mxu2 %v3467_v44  ;;  %847 = vmatpush.bf16.msrb.mxu0 %v3467_v44  ;;  %v4581_v44 = vor.u32 %v4146_v40, %v3618_v39  ;;  %v3682_v39 = vld [vmem:[%s6150_s5 + $0x160] sm:$0xf]  ;;  %v4162_v40 = vld [vmem:[%s6150_s5 + $0x16c] sm:$0xf0] }
  0x3f   : > { %793 = vmatpush.bf16.msrb.mxu3 %v3471_v45  ;;  %881 = vmatpush.bf16.msrb.mxu1 %v3471_v45  ;;  %v4178_v45 = vld [vmem:[%s6150_s5 + $0x1ec] sm:$0xf0] }
  0x40   : > { %v4592_v48 = vor.u32 %v4178_v45, %v3746_v42  ;;  %v4733_v45 = vor.u32 %v4162_v40, %v3682_v39  ;;  %v3506_v40 = vld [vmem:[%s6150_s5] sm:$0xf] }
  0x42   : > { %760 = vmatpush.bf16.msrb.mxu2 %v3459_v50  ;;  %848 = vmatpush.bf16.msrb.mxu0 %v3459_v50  ;;  %v3620_v50 = vld [vmem:[%s6150_s5 + $0xf0] sm:$0xf0] }
  0x43   : > { %794 = vmatpush.bf16.msrb.mxu3 %v3463_v51  ;;  %882 = vmatpush.bf16.msrb.mxu1 %v3463_v51 }
  0x46   : > { %761 = vmatpush.bf16.msrb.mxu2 %v3451_v57  ;;  %849 = vmatpush.bf16.msrb.mxu0 %v3451_v57  ;;  %v4176_v57 = vld [vmem:[%s6150_s5 + $0x1e4] sm:$0xf] }
  0x47   : > { %795 = vmatpush.bf16.msrb.mxu3 %v3455_v59  ;;  %883 = vmatpush.bf16.msrb.mxu1 %v3455_v59  ;;  %v3586_v59 = vld [vmem:[%s6150_s5 + $0xa0] sm:$0xf]  ;;  %v4627_v62 = vor.u32 %v4176_v57, %v3748_v58  ;;  %v4158_v58 = vld [vmem:[%s6150_s5 + $0x14c] sm:$0xf0] }
  0x4a   : > { %762 = vmatpush.bf16.msrb.mxu2 %v3443_v63  ;;  %850 = vmatpush.bf16.msrb.mxu0 %v3443_v63  ;;  %v4138_v63 = vld [vmem:[%s6150_s5 + $0xac] sm:$0xf0] }
  0x4b   : > { %796 = vmatpush.bf16.msrb.mxu3 %v3447_v1  ;;  %884 = vmatpush.bf16.msrb.mxu1 %v3447_v1  ;;  %v3604_v1 = vld [vmem:[%s6150_s5 + $0xd0] sm:$0xf0] }
  0x4c   : > { %553 = vmatmul.bf16.gmra.mxu2 %v4086_v52  ;;  %v4602_v52 = vor.u32 %v4142_v47, %v3602_v46  ;;  %v3538_v46 = vld [vmem:[%s6150_s5 + $0x40] sm:$0xf]  ;;  %v4126_v47 = vld [vmem:[%s6150_s5 + $0x4c] sm:$0xf0] }
  0x4d   : > { %627 = vmatmul.bf16.gmra.mxu3 %v4091_v53  ;;  %v4604_v53 = vor.u32 %v4144_v49, %v3620_v50  ;;  %v4128_v49 = vld [vmem:[%s6150_s5 + $0x64] sm:$0xf] }
  0x4e   : > { %1345 = vmatpush.bf16.msra.mxu2 %v4581_v44  ;;  %v4754_v57 = vor.u32 %v4128_v49, %v3556_v54  ;;  %v3634_v49 = vld [vmem:[%s6150_s5 + $0x100] sm:$0xf] }
  0x4f   : > { %1379 = vmatpush.bf16.msra.mxu3 %v4592_v48  ;;  %1413 = vmatpush.bf16.msra.mxu0 %v4604_v53 }
  0x50   : > { %1447 = vmatpush.bf16.msra.mxu1 %v4627_v62 }
  0x52   : > { %1346 = vmatpush.bf16.msra.mxu2 %v4602_v52 }
  0x53   : > { %1380 = vmatpush.bf16.msra.mxu3 %v4613_v56 }
  0xa9   : > { %v534_v2 = vpop.f32.mrf.mxu0 }
  0xaa   : > { %v535_v4 = vadd.f32 %v4560_v3, %v534_v2  ;;  %v608_v10 = vpop.f32.mrf.mxu1  ;;  %v4638_v2 = vor.u32 %v4140_v0, %v3604_v1  ;;  %v3522_v0 = vld [vmem:[%s6150_s5 + $0x20] sm:$0xf]  ;;  %v4122_v1 = vld [vmem:[%s6150_s5 + $0x2c] sm:$0xf0] }
  0xab   : > { %v609_v14 = vadd.f32 %v4560_v3, %v608_v10  ;;  %v3570_v10 = vld [vmem:[%s6150_s5 + $0x80] sm:$0xf] }
  0xac   : > { %v559_v7 = vmax.f32 %v535_v4, 0.0  ;;  %v3714_v4 = vld [vmem:[%s6150_s5 + $0x1a0] sm:$0xf]  ;;  %1414 = vmatpush.bf16.msra.mxu0 %v4638_v2 }
  0xad   : > { %v633_v22 = vmax.f32 %v609_v14, 0.0  ;;  %v4134_v14 = vld [vmem:[%s6150_s5 + $0x8c] sm:$0xf0] }
  0xaf   : > { %v544_v12 = vpop.f32.mrf.mxu2 }
  0xb0   : > { %v545_v28 = vadd.f32 %v4560_v3, %v544_v12  ;;  %v618_v43 = vpop.f32.mrf.mxu3 }
  0xb1   : > { %v536_v5 = vpop.f32.mrf.mxu0  ;;  %v619_v61 = vadd.f32 %v4560_v3, %v618_v43 }
  0xb2   : > { %v537_v6 = vadd.f32 %v4560_v3, %v536_v5  ;;  %v610_v15 = vpop.f32.mrf.mxu1  ;;  %v563_v33 = vmax.f32 %v545_v28, 0.0  ;;  %v4170_v5 = vld [vmem:[%s6150_s5 + $0x1ac] sm:$0xf0]  ;;  %v4694_v28 = vor.u32 %v4134_v14, %v3570_v10  ;;  %v3650_v10 = vld [vmem:[%s6150_s5 + $0x120] sm:$0xf]  ;;  %v4794_v14 = vor.u32 %v4122_v1, %v3522_v0 }
  0xb3   : > { %v611_v17 = vadd.f32 %v4560_v3, %v610_v15  ;;  %v4660_v12 = vor.u32 %v4170_v5, %v3714_v4  ;;  %v4136_v15 = vld [vmem:[%s6150_s5 + $0xa4] sm:$0xf]  ;;  %v3508_v1 = vld [vmem:[%s6150_s5 + $0x10] sm:$0xf0] }
  0xb4   : > { %v560_v8 = vmax.f32 %v537_v6, 0.0  ;;  %v4172_v6 = vld [vmem:[%s6150_s5 + $0x1c4] sm:$0xf] }
  0xb5   : > { %v634_v23 = vmax.f32 %v611_v17, 0.0  ;;  %1381 = vmatpush.bf16.msra.mxu3 %v4660_v12  ;;  %v4124_v4 = vld [vmem:[%s6150_s5 + $0x44] sm:$0xf] }
  0xb6   : > { %v643_v9 = vpack.c.bf16 %v560_v8, %v559_v7  ;;  %v4651_v8 = vor.u32 %v4138_v63, %v3586_v59  ;;  %v4160_v59 = vld [vmem:[%s6150_s5 + $0x164] sm:$0xf] }
  0xb7   : > { %v546_v19 = vpop.f32.mrf.mxu2  ;;  %v648_v25 = vpack.c.bf16 %v634_v23, %v633_v22  ;;  %v4168_v22 = vld [vmem:[%s6150_s5 + $0x1a4] sm:$0xf]  ;;  %v3716_v23 = vld [vmem:[%s6150_s5 + $0x1b0] sm:$0xf0] }
  0xb8   : > { %763 = vmatmul.bf16.vlgmr.msrb.gmra.mxu2 %v643_v9  ;;  %797 = vmatmul.bf16.vlgmr.msrb.gmra.mxu3 %v643_v9  ;;  %v547_v29 = vadd.f32 %v4560_v3, %v546_v19  ;;  %v3732_v9 = vld [vmem:[%s6150_s5 + $0x1d0] sm:$0xf0]  ;;  %v637_v19 = vmax.f32 %v619_v61, 0.0  ;;  %v4766_v61 = vor.u32 %v4158_v58, %v3666_v55  ;;  %v4152_v58 = vld [vmem:[%s6150_s5 + $0x124] sm:$0xf] }
  0xb9   : > { %v539_v11 = vpop.f32.mrf.mxu0  ;;  %851 = vmatmul.bf16.vlgmr.msrb.gmra.mxu0 %v648_v25  ;;  %885 = vmatmul.bf16.vlgmr.msrb.gmra.mxu1 %v648_v25  ;;  %v4166_v25 = vld [vmem:[%s6150_s5 + $0x18c] sm:$0xf0]  ;;  %v4116_v0 = vld [vmem:[%s6150_s5 + $0x4] sm:$0xf] }
  0xba   : > { %v540_v13 = vadd.f32 %v4560_v3, %v539_v11  ;;  %v613_v26 = vpop.f32.mrf.mxu1  ;;  %v564_v34 = vmax.f32 %v547_v29, 0.0  ;;  %v620_v11 = vpop.f32.mrf.mxu3  ;;  %1347 = vmatpush.bf16.msra.mxu2 %v4651_v8  ;;  %v4696_v29 = vor.u32 %v4168_v22, %v3716_v23 }
  0xbb   : > { %v614_v30 = vadd.f32 %v4560_v3, %v613_v26  ;;  %v4132_v26 = vld [vmem:[%s6150_s5 + $0x84] sm:$0xf] }
  0xbc   : > { %v561_v20 = vmax.f32 %v540_v13, 0.0  ;;  %v645_v37 = vpack.c.bf16 %v564_v34, %v563_v33  ;;  %v4662_v13 = vor.u32 %v4172_v6, %v3732_v9  ;;  %v4164_v33 = vld [vmem:[%s6150_s5 + $0x184] sm:$0xf]  ;;  %v3700_v34 = vld [vmem:[%s6150_s5 + $0x190] sm:$0xf0] }
  0xbd   : > { %v635_v35 = vmax.f32 %v614_v30, 0.0  ;;  %v3554_v30 = vld [vmem:[%s6150_s5 + $0x60] sm:$0xf]  ;;  %v4729_v42 = vor.u32 %v4164_v33, %v3700_v34  ;;  %v3540_v9 = vld [vmem:[%s6150_s5 + $0x50] sm:$0xf0] }
  0xbe   : > { %1448 = vmatpush.bf16.msra.mxu1 %v4662_v13  ;;  %1348 = vmatpush.bf16.msra.mxu2 %v4694_v28 }
  0xbf   : > { %v549_v27 = vpop.f32.mrf.mxu2 }
  0xc0   : > { %v550_v51 = vadd.f32 %v4560_v3, %v549_v27 }
  0xc1   : > { %v541_v16 = vpop.f32.mrf.mxu0 }
  0xc2   : > { %v542_v18 = vadd.f32 %v4560_v3, %v541_v16  ;;  %v615_v31 = vpop.f32.mrf.mxu1  ;;  %v565_v7 = vmax.f32 %v550_v51, 0.0  ;;  %v3588_v16 = vld [vmem:[%s6150_s5 + $0xb0] sm:$0xf0]  ;;  %1449 = vmatpush.bf16.msra.mxu1 %v4696_v29  ;;  %v623_v43 = vpop.f32.mrf.mxu3  ;;  %v4746_v51 = vor.u32 %v4126_v47, %v3538_v46  ;;  %v4120_v46 = vld [vmem:[%s6150_s5 + $0x24] sm:$0xf] }
  0xc3   : > { %v616_v32 = vadd.f32 %v4560_v3, %v615_v31  ;;  %v3572_v31 = vld [vmem:[%s6150_s5 + $0x90] sm:$0xf0] }
  0xc4   : > { %v562_v21 = vmax.f32 %v542_v18, 0.0 }
  0xc5   : > { %v636_v36 = vmax.f32 %v616_v32, 0.0  ;;  %v4130_v32 = vld [vmem:[%s6150_s5 + $0x6c] sm:$0xf0] }
  0xc6   : > { %v644_v24 = vpack.c.bf16 %v562_v21, %v561_v20  ;;  %v621_v20 = vadd.f32 %v4560_v3, %v620_v11  ;;  %v4675_v21 = vor.u32 %v4136_v15, %v3588_v16  ;;  %1450 = vmatpush.bf16.msra.mxu1 %v4729_v42  ;;  %v4154_v11 = vld [vmem:[%s6150_s5 + $0x12c] sm:$0xf0]  ;;  %v4796_v15 = vor.u32 %v4124_v4, %v3540_v9  ;;  %v4156_v16 = vld [vmem:[%s6150_s5 + $0x144] sm:$0xf]  ;;  %v3626_v9 = vld [vmem:[%s6150_s5 + $0xe8] sm:$0xf] }
  0xc7   : > { %v551_v38 = vpop.f32.mrf.mxu2  ;;  %v649_v41 = vpack.c.bf16 %v636_v36, %v635_v35  ;;  %v4717_v36 = vor.u32 %v4132_v26, %v3572_v31  ;;  %v4808_v22 = vor.u32 %v4154_v11, %v3650_v10  ;;  %v4148_v4 = vld [vmem:[%s6150_s5 + $0x104] sm:$0xf]  ;;  %v4147_v10 = vld [vmem:[%s6150_s5 + $0xf4] sm:$0xf0] }
  0xc8   : > { %768 = vmatmul.bf16.gmra.mxu2 %v644_v24  ;;  %802 = vmatmul.bf16.gmra.mxu3 %v644_v24  ;;  %v552_v60 = vadd.f32 %v4560_v3, %v551_v38  ;;  %v3698_v24 = vld [vmem:[%s6150_s5 + $0x180] sm:$0xf]  ;;  %v638_v27 = vmax.f32 %v621_v20, 0.0  ;;  %v4876_v11 = vor.u32 %v4147_v10, %v3626_v9  ;;  %v3740_v9 = vld [vmem:[%s6150_s5 + $0x1d8] sm:$0xf0] }
  0xc9   : > { %856 = vmatmul.bf16.gmra.mxu0 %v649_v41  ;;  %890 = vmatmul.bf16.gmra.mxu1 %v649_v41  ;;  %v4715_v35 = vor.u32 %v4166_v25, %v3698_v24  ;;  %v4727_v41 = vor.u32 %v4130_v32, %v3554_v30 }
  0xca   : > { %v566_v17 = vmax.f32 %v552_v60, 0.0  ;;  %1415 = vmatpush.bf16.msra.mxu0 %v4675_v21  ;;  %v650_v38 = vpack.c.bf16 %v638_v27, %v637_v19  ;;  %v3684_v60 = vld [vmem:[%s6150_s5 + $0x170] sm:$0xf0] }
  0xcb   : > { %1382 = vmatpush.bf16.msra.mxu3 %v4715_v35  ;;  %1349 = vmatpush.bf16.msra.mxu2 %v4727_v41  ;;  %v4768_v63 = vor.u32 %v4160_v59, %v3684_v60  ;;  %v3652_v59 = vld [vmem:[%s6150_s5 + $0x130] sm:$0xf0] }
  0xcc   : > { %v4847_v60 = vor.u32 %v4152_v58, %v3652_v59  ;;  %v4141_v58 = vld [vmem:[%s6150_s5 + $0xcc] sm:$0xf]  ;;  %v3612_v59 = vld [vmem:[%s6150_s5 + $0xd8] sm:$0xf0] }
  0xcd   : > { %1451 = vmatpush.bf16.msra.mxu1 %v4768_v63 }
  0xce   : > { %1416 = vmatpush.bf16.msra.mxu0 %v4717_v36 }
  0xcf   : > { %v554_v18 = vpop.f32.mrf.mxu2  ;;  %1383 = vmatpush.bf16.msra.mxu3 %v4733_v45  ;;  %1350 = vmatpush.bf16.msra.mxu2 %v4746_v51 }
  0xd0   : > { %v555_v5 = vadd.f32 %v4560_v3, %v554_v18  ;;  %v625_v18 = vpop.f32.mrf.mxu3 }
  0xd1   : > { %v626_v20 = vadd.f32 %v4560_v3, %v625_v18 }
  0xd2   : > { %1417 = vmatpush.bf16.msra.mxu0 %v4754_v57  ;;  %v567_v23 = vmax.f32 %v555_v5, 0.0  ;;  %v4861_v5 = vor.u32 %v4116_v0, %v3508_v1  ;;  %v3722_v0 = vld [vmem:[%s6150_s5 + $0x1a8] sm:$0xf]  ;;  %v4948_v1 = vor.u32 %v4141_v58, %v3612_v59  ;;  %v4137_v58 = vld [vmem:[%s6150_s5 + $0xac] sm:$0xf] }
  0xd3   : > { %1384 = vmatpush.bf16.msra.mxu3 %v4766_v61  ;;  %v640_v26 = vmax.f32 %v626_v20, 0.0  ;;  %1351 = vmatpush.bf16.msra.mxu2 %v4794_v14  ;;  %v3610_v20 = vld [vmem:[%s6150_s5 + $0xc8] sm:$0xf] }
  0xd6   : > { %1418 = vmatpush.bf16.msra.mxu0 %v4796_v15 }
  0xd7   : > { %v556_v50 = vpop.f32.mrf.mxu2  ;;  %1385 = vmatpush.bf16.msra.mxu3 %v4808_v22 }
  0xd8   : > { %773 = vmatmul.bf16.gmra.mxu2 %v645_v37  ;;  %807 = vmatmul.bf16.gmra.mxu3 %v645_v37  ;;  %v646_v37 = vpack.c.bf16 %v566_v17, %v565_v7  ;;  %v557_v6 = vadd.f32 %v4560_v3, %v556_v50  ;;  %v624_v7 = vadd.f32 %v4560_v3, %v623_v43  ;;  %v3668_v17 = vld [vmem:[%s6150_s5 + $0x150] sm:$0xf0]  ;;  %v628_v31 = vpop.f32.mrf.mxu3  ;;  %v4118_v43 = vld [vmem:[%s6150_s5 + $0xc] sm:$0xf0] }
  0xd9   : > { %861 = vmatmul.bf16.gmra.mxu0 %v650_v38  ;;  %895 = vmatmul.bf16.gmra.mxu1 %v650_v38  ;;  %v4804_v19 = vor.u32 %v4156_v16, %v3668_v17  ;;  %v629_v32 = vadd.f32 %v4560_v3, %v628_v31  ;;  %v4825_v47 = vor.u32 %v4118_v43, %v3506_v40  ;;  %v4150_v50 = vld [vmem:[%s6150_s5 + $0x10c] sm:$0xf0]  ;;  %v3754_v16 = vld [vmem:[%s6150_s5 + $0x1e8] sm:$0xf]  ;;  %v4179_v17 = vld [vmem:[%s6150_s5 + $0x1f4] sm:$0xf0] }
  0xda   : > { %v568_v24 = vmax.f32 %v557_v6, 0.0  ;;  %v639_v25 = vmax.f32 %v624_v7, 0.0  ;;  %v4838_v55 = vor.u32 %v4150_v50, %v3634_v49  ;;  %v3636_v6 = vld [vmem:[%s6150_s5 + $0x110] sm:$0xf0]  ;;  %v4885_v18 = vor.u32 %v4179_v17, %v3754_v16  ;;  %v4139_v49 = vld [vmem:[%s6150_s5 + $0xb4] sm:$0xf0] }
  0xdb   : > { %1452 = vmatpush.bf16.msra.mxu1 %v4804_v19  ;;  %1352 = vmatpush.bf16.msra.mxu2 %v4825_v47  ;;  %v4866_v7 = vor.u32 %v4148_v4, %v3636_v6  ;;  %v4171_v4 = vld [vmem:[%s6150_s5 + $0x1b4] sm:$0xf0]  ;;  %v4173_v6 = vld [vmem:[%s6150_s5 + $0x1cc] sm:$0xf] }
  0xdc   : > { %v647_v27 = vpack.c.bf16 %v568_v24, %v567_v23  ;;  %v651_v30 = vpack.c.bf16 %v640_v26, %v639_v25  ;;  %1386 = vmatpush.bf16.msra.mxu3 %v4838_v55  ;;  %v4143_v23 = vld [vmem:[%s6150_s5 + $0xd4] sm:$0xf0]  ;;  %v4145_v24 = vld [vmem:[%s6150_s5 + $0xec] sm:$0xf]  ;;  %v3628_v26 = vld [vmem:[%s6150_s5 + $0xf8] sm:$0xf0]  ;;  %v4960_v10 = vor.u32 %v4171_v4, %v3722_v0  ;;  %v4962_v16 = vor.u32 %v4173_v6, %v3740_v9 }
  0xdd   : > { %v4897_v25 = vor.u32 %v4143_v23, %v3610_v20  ;;  %v4908_v31 = vor.u32 %v4145_v24, %v3628_v26  ;;  %v3596_v0 = vld [vmem:[%s6150_s5 + $0xb8] sm:$0xf0] }
  0xde   : > { %v4991_v4 = vor.u32 %v4137_v58, %v3596_v0 }
  0xdf   : > { %1453 = vmatpush.bf16.msra.mxu1 %v4847_v60  ;;  %1481 = vmatpush.bf16.msrb.mxu2 %v4876_v11 }
  0xe0   : > { %v630_v33 = vpop.f32.mrf.mxu3  ;;  %1515 = vmatpush.bf16.msrb.mxu3 %v4885_v18 }
  0xe1   : > { %v631_v34 = vadd.f32 %v4560_v3, %v630_v33  ;;  %v3524_v3 = vld [vmem:[%s6150_s5 + $0x30] sm:$0xf0]  ;;  %v4177_v33 = vld [vmem:[%s6150_s5 + $0x1ec] sm:$0xf] }
  0xe2   : > { %v4836_v54 = vor.u32 %v4120_v46, %v3524_v3  ;;  %v3594_v3 = vld [vmem:[%s6150_s5 + $0xa8] sm:$0xf] }
  0xe3   : > { %v642_v38 = vmax.f32 %v631_v34, 0.0  ;;  %1454 = vmatpush.bf16.msra.mxu1 %v4866_v7  ;;  %v3756_v34 = vld [vmem:[%s6150_s5 + $0x1f8] sm:$0xf0]  ;;  %1482 = vmatpush.bf16.msrb.mxu2 %v4897_v25  ;;  %v4937_v50 = vor.u32 %v4139_v49, %v3594_v3  ;;  %v4135_v49 = vld [vmem:[%s6150_s5 + $0x94] sm:$0xf0] }
  0xe4   : > { %1419 = vmatpush.bf16.msra.mxu0 %v4836_v54  ;;  %v4922_v40 = vor.u32 %v4177_v33, %v3756_v34 }
  0xe7   : > { %1583 = vmatpush.bf16.msrb.mxu1 %v4922_v40  ;;  %1483 = vmatpush.bf16.msrb.mxu2 %v4937_v50 }
  0xe8   : > { %778 = vmatmul.bf16.gmra.mxu2 %v646_v37  ;;  %812 = vmatmul.bf16.gmra.mxu3 %v646_v37  ;;  %v641_v37 = vmax.f32 %v629_v32, 0.0 }
  0xe9   : > { %866 = vmatmul.bf16.gmra.mxu0 %v651_v30  ;;  %900 = vmatmul.bf16.gmra.mxu1 %v651_v30  ;;  %v4175_v30 = vld [vmem:[%s6150_s5 + $0x1d4] sm:$0xf0] }
  0xea   : > { %v652_v39 = vpack.c.bf16 %v642_v38, %v641_v37  ;;  %1420 = vmatpush.bf16.msra.mxu0 %v4861_v5  ;;  %v669_v37 = vld [vmem:[%s6149_s4] sm:$0x3] }
  0xeb   : > { %v4927_v43 = vperm.slane %v669_v37, 0  ;;  %v4929_v46 = vperm.slane %v669_v37, 1  ;;  %1584 = vmatpush.bf16.msrb.mxu1 %v4962_v16 }
  0xee   : > { %1549 = vmatpush.bf16.msrb.mxu0 %v4908_v31 }
  0xf2   : > { %1550 = vmatpush.bf16.msrb.mxu0 %v4948_v1 }
  0xf6   : > { %1551 = vmatpush.bf16.msrb.mxu0 %v4991_v4 }
  0xf8   : > { %783 = vmatmul.bf16.gmra.mxu2 %v647_v27  ;;  %817 = vmatmul.bf16.gmra.mxu3 %v647_v27  ;;  %v3738_v27 = vld [vmem:[%s6150_s5 + $0x1c8] sm:$0xf] }
  0xf9   : > { %871 = vmatmul.bf16.gmra.mxu0 %v652_v39  ;;  %905 = vmatmul.bf16.gmra.mxu1 %v652_v39  ;;  %v4910_v32 = vor.u32 %v4175_v30, %v3738_v27 }
  0xfb   : > { %1516 = vmatpush.bf16.msrb.mxu3 %v4910_v32 }
  0xff   : > { %1517 = vmatpush.bf16.msrb.mxu3 %v4960_v10 }
 0x13b   : > { %v764_v38 = vpop.f32.mrf.mxu2  ;;  %v798_v39 = vpop.f32.mrf.mxu3 }
 0x13c   : > { %v765_v17 = vadd.f32 %v764_v38, %v4927_v43  ;;  %v799_v20 = vadd.f32 %v798_v39, %v4929_v46  ;;  %v3578_v39 = vld [vmem:[%s6150_s5 + $0x88] sm:$0xf] }
 0x13d   : > { %v4984_v59 = vor.u32 %v4135_v49, %v3578_v39  ;;  %v3580_v39 = vld [vmem:[%s6150_s5 + $0x98] sm:$0xf0] }
 0x13e   : > { %v823_v30 = vmax.f32 %v765_v17, 0.0  ;;  %v824_v33 = vmax.f32 %v799_v20, 0.0  ;;  %v3706_v17 = vld [vmem:[%s6150_s5 + $0x188] sm:$0xf]  ;;  %v4167_v20 = vld [vmem:[%s6150_s5 + $0x194] sm:$0xf0] }
 0x13f   : > { %6228 = vst [vmem:[#allocation5_spill] sm:$0xff] %v4984_v59  ;;  %1484 = vmatpush.bf16.msrb.mxu2 %v4984_v59 }
 0x143   : > { %v766_v23 = vpop.f32.mrf.mxu2  ;;  %v800_v24 = vpop.f32.mrf.mxu3 }
 0x144   : > { %v767_v26 = vadd.f32 %v766_v23, %v4927_v43  ;;  %v801_v27 = vadd.f32 %v800_v24, %v4929_v46  ;;  %v5003_v23 = vor.u32 %v4167_v20, %v3706_v17  ;;  %v4169_v24 = vld [vmem:[%s6150_s5 + $0x1ac] sm:$0xf] }
 0x146   : > { %v825_v34 = vmax.f32 %v767_v26, 0.0  ;;  %v826_v37 = vmax.f32 %v801_v27, 0.0  ;;  %6229 = vst [vmem:[#allocation6_spill] sm:$0xff] %v5003_v23  ;;  %v3724_v26 = vld [vmem:[%s6150_s5 + $0x1b8] sm:$0xf0]  ;;  %1518 = vmatpush.bf16.msrb.mxu3 %v5003_v23 }
 0x147   : > { %v5011_v27 = vor.u32 %v4169_v24, %v3724_v26 }
 0x148   : > { %v4971_v3 = vpack.c.bf16 %v825_v34, %v823_v30  ;;  %v4973_v38 = vpack.c.bf16 %v826_v37, %v824_v33  ;;  %v3562_v30 = vld [vmem:[%s6150_s5 + $0x68] sm:$0xf]  ;;  %v4131_v33 = vld [vmem:[%s6150_s5 + $0x74] sm:$0xf0]  ;;  %v4133_v37 = vld [vmem:[%s6150_s5 + $0x8c] sm:$0xf] }
 0x149   : > { %1585 = vmatpush.bf16.msrb.mxu1 %v5011_v27  ;;  %v5021_v34 = vor.u32 %v4131_v33, %v3562_v30  ;;  %v5029_v49 = vor.u32 %v4133_v37, %v3580_v39 }
 0x14a   : > { %1353 = vmatmul.bf16.vlgmr.msra.gmra.mxu2 %v4971_v3  ;;  %1387 = vmatmul.bf16.vlgmr.msra.gmra.mxu3 %v4973_v38 }
 0x14b   : > { %1421 = vmatmul.bf16.vlgmr.msra.gmra.mxu0 %v4971_v3  ;;  %1455 = vmatmul.bf16.vlgmr.msra.gmra.mxu1 %v4973_v38  ;;  %v769_v6 = vpop.f32.mrf.mxu2  ;;  %v803_v9 = vpop.f32.mrf.mxu3  ;;  %6230 = vst [vmem:[#allocation7_spill] sm:$0xff] %v5021_v34 }
 0x14c   : > { %6231 = vst [vmem:[#allocation8_spill] sm:$0xff] %v5029_v49  ;;  %1485 = vmatpush.bf16.msrb.mxu2 %v5021_v34  ;;  %v770_v58 = vadd.f32 %v769_v6, %v4927_v43  ;;  %v804_v0 = vadd.f32 %v803_v9, %v4929_v46  ;;  %1552 = vmatpush.bf16.msrb.mxu0 %v5029_v49  ;;  %v3690_v6 = vld [vmem:[%s6150_s5 + $0x168] sm:$0xf]  ;;  %v4163_v9 = vld [vmem:[%s6150_s5 + $0x174] sm:$0xf0]  ;;  %v5103_v49 = vpop.f32.mrf.mxu0 }
 0x14d   : > { %6240 = vst [vmem:[#allocation17_spill] sm:$0xff] %v5103_v49 }
 0x14e   : > { %v827_v30 = vmax.f32 %v770_v58, 0.0  ;;  %v828_v33 = vmax.f32 %v804_v0, 0.0  ;;  %v5050_v58 = vor.u32 %v4163_v9, %v3690_v6  ;;  %v3564_v6 = vld [vmem:[%s6150_s5 + $0x78] sm:$0xf0]  ;;  %v3674_v9 = vld [vmem:[%s6150_s5 + $0x148] sm:$0xf] }
 0x150   : > { %6234 = vst [vmem:[#allocation11_spill] sm:$0xff] %v5050_v58  ;;  %1519 = vmatpush.bf16.msrb.mxu3 %v5050_v58 }
 0x153   : > { %v771_v17 = vpop.f32.mrf.mxu2  ;;  %v805_v20 = vpop.f32.mrf.mxu3 }
 0x154   : > { %v772_v24 = vadd.f32 %v771_v17, %v4927_v43  ;;  %v806_v26 = vadd.f32 %v805_v20, %v4929_v46  ;;  %v4165_v17 = vld [vmem:[%s6150_s5 + $0x18c] sm:$0xf] }
 0x156   : > { %v829_v23 = vmax.f32 %v772_v24, 0.0  ;;  %v830_v59 = vmax.f32 %v806_v26, 0.0  ;;  %v3546_v24 = vld [vmem:[%s6150_s5 + $0x48] sm:$0xf]  ;;  %v4127_v26 = vld [vmem:[%s6150_s5 + $0x54] sm:$0xf0] }
 0x158   : > { %v5037_v37 = vpack.c.bf16 %v829_v23, %v827_v30  ;;  %v5039_v39 = vpack.c.bf16 %v830_v59, %v828_v33  ;;  %v3708_v23 = vld [vmem:[%s6150_s5 + $0x198] sm:$0xf0]  ;;  %v5069_v30 = vor.u32 %v4127_v26, %v3546_v24  ;;  %v4129_v33 = vld [vmem:[%s6150_s5 + $0x6c] sm:$0xf] }
 0x159   : > { %v5057_v59 = vor.u32 %v4165_v17, %v3708_v23  ;;  %v5080_v17 = vor.u32 %v4129_v33, %v3564_v6  ;;  %v4159_v23 = vld [vmem:[%s6150_s5 + $0x154] sm:$0xf0]  ;;  %v4161_v24 = vld [vmem:[%s6150_s5 + $0x16c] sm:$0xf]  ;;  %v3692_v26 = vld [vmem:[%s6150_s5 + $0x178] sm:$0xf0] }
 0x15a   : > { %6232 = vst [vmem:[#allocation9_spill] sm:$0xff] %v5037_v37  ;;  %1358 = vmatmul.bf16.gmra.mxu2 %v5037_v37  ;;  %1392 = vmatmul.bf16.gmra.mxu3 %v5039_v39  ;;  %v5092_v58 = vor.u32 %v4159_v23, %v3674_v9  ;;  %v5094_v34 = vor.u32 %v4161_v24, %v3692_v26 }
 0x15b   : > { %6233 = vst [vmem:[#allocation10_spill] sm:$0xff] %v5039_v39  ;;  %1426 = vmatmul.bf16.gmra.mxu0 %v5037_v37  ;;  %1460 = vmatmul.bf16.gmra.mxu1 %v5039_v39  ;;  %v774_v0 = vpop.f32.mrf.mxu2  ;;  %v808_v20 = vpop.f32.mrf.mxu3 }
 0x15c   : > { %6235 = vst [vmem:[#allocation12_spill] sm:$0xff] %v5057_v59  ;;  %1586 = vmatpush.bf16.msrb.mxu1 %v5057_v59  ;;  %1486 = vmatpush.bf16.msrb.mxu2 %v5069_v30  ;;  %v775_v33 = vadd.f32 %v774_v0, %v4927_v43  ;;  %v809_v6 = vadd.f32 %v808_v20, %v4929_v46  ;;  %v5105_v0 = vpop.f32.mrf.mxu1 }
 0x15d   : > { %6236 = vst [vmem:[#allocation13_spill] sm:$0xff] %v5069_v30  ;;  %1553 = vmatpush.bf16.msrb.mxu0 %v5080_v17  ;;  %1520 = vmatpush.bf16.msrb.mxu3 %v5092_v58 }
 0x15e   : > { %6237 = vst [vmem:[#allocation14_spill] sm:$0xff] %v5080_v17  ;;  %v831_v9 = vmax.f32 %v775_v33, 0.0  ;;  %v832_v23 = vmax.f32 %v809_v6, 0.0  ;;  %v3658_v33 = vld [vmem:[%s6150_s5 + $0x128] sm:$0xf] }
 0x15f   : > { %6238 = vst [vmem:[#allocation15_spill] sm:$0xff] %v5092_v58  ;;  %v3530_v58 = vld [vmem:[%s6150_s5 + $0x28] sm:$0xf]  ;;  %v4155_v6 = vld [vmem:[%s6150_s5 + $0x134] sm:$0xf0] }
 0x160   : > { %6239 = vst [vmem:[#allocation16_spill] sm:$0xff] %v5094_v34  ;;  %1587 = vmatpush.bf16.msrb.mxu1 %v5094_v34 }
 0x161   : > { %6241 = vst [vmem:[#allocation18_spill] sm:$0xff] %v5105_v0 }
 0x163   : > { %v776_v39 = vpop.f32.mrf.mxu2  ;;  %v810_v37 = vpop.f32.mrf.mxu3 }
 0x164   : > { %v777_v59 = vadd.f32 %v776_v39, %v4927_v43  ;;  %v811_v30 = vadd.f32 %v810_v37, %v4929_v46  ;;  %v4123_v37 = vld [vmem:[%s6150_s5 + $0x34] sm:$0xf0]  ;;  %v4125_v39 = vld [vmem:[%s6150_s5 + $0x4c] sm:$0xf] }
 0x166   : > { %v833_v24 = vmax.f32 %v777_v59, 0.0  ;;  %v834_v26 = vmax.f32 %v811_v30, 0.0  ;;  %v5120_v59 = vor.u32 %v4123_v37, %v3530_v58  ;;  %v3548_v30 = vld [vmem:[%s6150_s5 + $0x58] sm:$0xf0]  ;;  %v5135_v58 = vor.u32 %v4155_v6, %v3658_v33  ;;  %v4121_v6 = vld [vmem:[%s6150_s5 + $0x2c] sm:$0xf] }
 0x168   : > { %v5107_v20 = vpack.c.bf16 %v833_v24, %v831_v9  ;;  %v5109_v17 = vpack.c.bf16 %v834_v26, %v832_v23  ;;  %6244 = vst [vmem:[#allocation21_spill] sm:$0xff] %v5120_v59  ;;  %v5133_v9 = vor.u32 %v4125_v39, %v3548_v30  ;;  %v4157_v23 = vld [vmem:[%s6150_s5 + $0x14c] sm:$0xf]  ;;  %v3676_v24 = vld [vmem:[%s6150_s5 + $0x158] sm:$0xf0]  ;;  %1487 = vmatpush.bf16.msrb.mxu2 %v5120_v59 }
 0x169   : > { %6246 = vst [vmem:[#allocation23_spill] sm:$0xff] %v5135_v58  ;;  %v5145_v0 = vor.u32 %v4157_v23, %v3676_v24  ;;  %v3514_v39 = vld [vmem:[%s6150_s5 + $0x8] sm:$0xf]  ;;  %v4119_v30 = vld [vmem:[%s6150_s5 + $0x14] sm:$0xf0]  ;;  %1521 = vmatpush.bf16.msrb.mxu3 %v5135_v58 }
 0x16a   : > { %6242 = vst [vmem:[#allocation19_spill] sm:$0xff] %v5107_v20  ;;  %1363 = vmatmul.bf16.gmra.mxu2 %v5107_v20  ;;  %1397 = vmatmul.bf16.gmra.mxu3 %v5109_v17  ;;  %v5155_v33 = vor.u32 %v4119_v30, %v3514_v39  ;;  %v3532_v23 = vld [vmem:[%s6150_s5 + $0x38] sm:$0xf0]  ;;  %v3642_v24 = vld [vmem:[%s6150_s5 + $0x108] sm:$0xf] }
 0x16b   : > { %6243 = vst [vmem:[#allocation20_spill] sm:$0xff] %v5109_v17  ;;  %1431 = vmatmul.bf16.gmra.mxu0 %v5107_v20  ;;  %1465 = vmatmul.bf16.gmra.mxu1 %v5109_v17  ;;  %v779_v26 = vpop.f32.mrf.mxu2  ;;  %v813_v37 = vpop.f32.mrf.mxu3  ;;  %v5168_v49 = vor.u32 %v4121_v6, %v3532_v23  ;;  %v4151_v39 = vld [vmem:[%s6150_s5 + $0x114] sm:$0xf0]  ;;  %v4153_v30 = vld [vmem:[%s6150_s5 + $0x12c] sm:$0xf] }
 0x16c   : > { %6245 = vst [vmem:[#allocation22_spill] sm:$0xff] %v5133_v9  ;;  %1554 = vmatpush.bf16.msrb.mxu0 %v5133_v9  ;;  %1588 = vmatpush.bf16.msrb.mxu1 %v5145_v0  ;;  %v3660_v17 = vld [vmem:[%s6150_s5 + $0x138] sm:$0xf0]  ;;  %v5179_v20 = vor.u32 %v4151_v39, %v3642_v24  ;;  %v4117_v6 = vld [vmem:[%s6150_s5 + $0xc] sm:$0xf]  ;;  %v5195_v24 = vpop.f32.mrf.mxu0  ;;  %v780_v9 = vadd.f32 %v779_v26, %v4927_v43 }
 0x16d   : > { %6247 = vst [vmem:[#allocation24_spill] sm:$0xff] %v5145_v0  ;;  %v5181_v59 = vor.u32 %v4153_v30, %v3660_v17  ;;  %v3516_v23 = vld [vmem:[%s6150_s5 + $0x18] sm:$0xf0]  ;;  %v4149_v58 = vld [vmem:[%s6150_s5 + $0x10c] sm:$0xf]  ;;  %v5197_v17 = vpop.f32.mrf.mxu1  ;;  %1488 = vmatpush.bf16.msrb.mxu2 %v5155_v33  ;;  %v814_v34 = vadd.f32 %v813_v37, %v4929_v46 }
 0x16e   : > { %6248 = vst [vmem:[#allocation25_spill] sm:$0xff] %v5155_v33  ;;  %v3644_v0 = vld [vmem:[%s6150_s5 + $0x118] sm:$0xf0]  ;;  %v5201_v39 = vor.u32 %v4117_v6, %v3516_v23  ;;  %1522 = vmatpush.bf16.msrb.mxu3 %v5179_v20 }
 0x16f   : > { %6249 = vst [vmem:[#allocation26_spill] sm:$0xff] %v5195_v24  ;;  %v5205_v30 = vor.u32 %v4149_v58, %v3644_v0  ;;  %v835_v0 = vmax.f32 %v780_v9, 0.0  ;;  %v836_v58 = vmax.f32 %v814_v34, 0.0 }
 0x170   : > { %6250 = vst [vmem:[#allocation27_spill] sm:$0xff] %v5197_v17  ;;  %1555 = vmatpush.bf16.msrb.mxu0 %v5168_v49  ;;  %1589 = vmatpush.bf16.msrb.mxu1 %v5181_v59 }
 0x171   : > { %1657 = vmatpush.bf16.msra.mxu2 %v4581_v44 }
 0x172   : > { %1691 = vmatpush.bf16.msra.mxu3 %v4592_v48 }
 0x173   : > { %v781_v17 = vpop.f32.mrf.mxu2  ;;  %v815_v24 = vpop.f32.mrf.mxu3 }
 0x174   : > { %v782_v33 = vadd.f32 %v781_v17, %v4927_v43  ;;  %v816_v6 = vadd.f32 %v815_v24, %v4929_v46  ;;  %1556 = vmatpush.bf16.msrb.mxu0 %v5201_v39  ;;  %1590 = vmatpush.bf16.msrb.mxu1 %v5205_v30  ;;  %v5224_v23 = vpop.f32.mrf.mxu0 }
 0x175   : > { %1658 = vmatpush.bf16.msra.mxu2 %v4602_v52  ;;  %v5226_v24 = vpop.f32.mrf.mxu1 }
 0x176   : > { %v837_v26 = vmax.f32 %v782_v33, 0.0  ;;  %v838_v37 = vmax.f32 %v816_v6, 0.0  ;;  %1692 = vmatpush.bf16.msra.mxu3 %v4613_v56 }
 0x178   : > { %1725 = vmatpush.bf16.msra.mxu0 %v4604_v53  ;;  %1759 = vmatpush.bf16.msra.mxu1 %v4627_v62  ;;  %v5219_v44 = vpack.c.bf16 %v837_v26, %v835_v0  ;;  %v5221_v48 = vpack.c.bf16 %v838_v37, %v836_v58 }
 0x179   : > { %1659 = vmatpush.bf16.msra.mxu2 %v4651_v8 }
 0x17a   : > { %1368 = vmatmul.bf16.gmra.mxu2 %v5219_v44  ;;  %1402 = vmatmul.bf16.gmra.mxu3 %v5221_v48 }
 0x17b   : > { %1436 = vmatmul.bf16.gmra.mxu0 %v5219_v44  ;;  %1470 = vmatmul.bf16.gmra.mxu1 %v5221_v48  ;;  %v784_v52 = vpop.f32.mrf.mxu2  ;;  %v818_v53 = vpop.f32.mrf.mxu3 }
 0x17c   : > { %1726 = vmatpush.bf16.msra.mxu0 %v4638_v2  ;;  %1693 = vmatpush.bf16.msra.mxu3 %v4660_v12  ;;  %v785_v56 = vadd.f32 %v784_v52, %v4927_v43  ;;  %v819_v62 = vadd.f32 %v818_v53, %v4929_v46  ;;  %v5242_v34 = vpop.f32.mrf.mxu0 }
 0x17d   : > { %1760 = vmatpush.bf16.msra.mxu1 %v4662_v13  ;;  %1660 = vmatpush.bf16.msra.mxu2 %v4694_v28  ;;  %v5244_v12 = vpop.f32.mrf.mxu1 }
 0x17e   : > { %v839_v28 = vmax.f32 %v785_v56, 0.0 }
 0x180   : > { %1727 = vmatpush.bf16.msra.mxu0 %v4675_v21  ;;  %1694 = vmatpush.bf16.msra.mxu3 %v4715_v35 }
 0x181   : > { %1761 = vmatpush.bf16.msra.mxu1 %v4696_v29  ;;  %1661 = vmatpush.bf16.msra.mxu2 %v4727_v41  ;;  %v840_v29 = vmax.f32 %v819_v62, 0.0 }
 0x183   : > { %v786_v2 = vpop.f32.mrf.mxu2  ;;  %v820_v8 = vpop.f32.mrf.mxu3 }
 0x184   : > { %1728 = vmatpush.bf16.msra.mxu0 %v4717_v36  ;;  %v787_v13 = vadd.f32 %v786_v2, %v4927_v43  ;;  %v821_v21 = vadd.f32 %v820_v8, %v4929_v46  ;;  %1695 = vmatpush.bf16.msra.mxu3 %v4733_v45  ;;  %v5268_v41 = vpop.f32.mrf.mxu0 }
 0x185   : > { %1762 = vmatpush.bf16.msra.mxu1 %v4729_v42  ;;  %1662 = vmatpush.bf16.msra.mxu2 %v4746_v51  ;;  %v5270_v42 = vpop.f32.mrf.mxu1 }
 0x186   : > { %v841_v35 = vmax.f32 %v787_v13, 0.0  ;;  %v842_v36 = vmax.f32 %v821_v21, 0.0 }
 0x188   : > { %1729 = vmatpush.bf16.msra.mxu0 %v4754_v57  ;;  %v5252_v9 = vpack.c.bf16 %v841_v35, %v839_v28  ;;  %v5254_v33 = vpack.c.bf16 %v842_v36, %v840_v29  ;;  %1696 = vmatpush.bf16.msra.mxu3 %v4766_v61 }
 0x189   : > { %1763 = vmatpush.bf16.msra.mxu1 %v4768_v63  ;;  %1663 = vmatpush.bf16.msra.mxu2 %v4794_v14  ;;  %v6251_v63 = vld [vmem:[#allocation5_spill] sm:$0xff]  ;;  %v6252_v14 = vld [vmem:[#allocation6_spill] sm:$0xff] }
 0x18a   : > { %1373 = vmatmul.bf16.gmra.mxu2 %v5252_v9  ;;  %1407 = vmatmul.bf16.gmra.mxu3 %v5254_v33 }
 0x18b   : > { %1441 = vmatmul.bf16.gmra.mxu0 %v5252_v9  ;;  %1475 = vmatmul.bf16.gmra.mxu1 %v5254_v33 }
 0x18c   : > { %1730 = vmatpush.bf16.msra.mxu0 %v4796_v15  ;;  %1697 = vmatpush.bf16.msra.mxu3 %v4808_v22  ;;  %v5277_v45 = vpop.f32.mrf.mxu0  ;;  %v6253_v15 = vld [vmem:[#allocation8_spill] sm:$0xff]  ;;  %v6255_v22 = vld [vmem:[#allocation9_spill] sm:$0xff] }
 0x18d   : > { %1764 = vmatpush.bf16.msra.mxu1 %v4804_v19  ;;  %1664 = vmatpush.bf16.msra.mxu2 %v4825_v47  ;;  %v5279_v51 = vpop.f32.mrf.mxu1  ;;  %v6254_v19 = vld [vmem:[#allocation12_spill] sm:$0xff]  ;;  %v6256_v47 = vld [vmem:[#allocation10_spill] sm:$0xff] }
 0x190   : > { %1731 = vmatpush.bf16.msra.mxu0 %v4836_v54  ;;  %1698 = vmatpush.bf16.msra.mxu3 %v4838_v55 }
 0x191   : > { %1765 = vmatpush.bf16.msra.mxu1 %v4847_v60  ;;  %v6257_v60 = vld [vmem:[#allocation7_spill] sm:$0xff] }
 0x194   : > { %1732 = vmatpush.bf16.msra.mxu0 %v4861_v5  ;;  %v5293_v57 = vpop.f32.mrf.mxu0  ;;  %v6258_v5 = vld [vmem:[#allocation11_spill] sm:$0xff] }
 0x195   : > { %1766 = vmatpush.bf16.msra.mxu1 %v4866_v7  ;;  %v5295_v61 = vpop.f32.mrf.mxu1  ;;  %v6259_v7 = vld [vmem:[#allocation14_spill] sm:$0xff] }
 0x19a   : > { %1489 = vmatmul.bf16.vlgmr.msrb.gmra.mxu2 %v4971_v3  ;;  %1523 = vmatmul.bf16.vlgmr.msrb.gmra.mxu3 %v4973_v38 }
 0x19b   : > { %1557 = vmatmul.bf16.vlgmr.msrb.gmra.mxu0 %v4971_v3  ;;  %1591 = vmatmul.bf16.vlgmr.msrb.gmra.mxu1 %v4973_v38  ;;  %v6268_v3 = vld [vmem:[#allocation19_spill] sm:$0xff]  ;;  %v6269_v38 = vld [vmem:[#allocation20_spill] sm:$0xff] }
 0x19c   : > { %1793 = vmatpush.bf16.msrb.mxu2 %v4876_v11  ;;  %1827 = vmatpush.bf16.msrb.mxu3 %v4885_v18  ;;  %v5309_v54 = vpop.f32.mrf.mxu0  ;;  %v6260_v11 = vld [vmem:[#allocation16_spill] sm:$0xff]  ;;  %v6261_v18 = vld [vmem:[#allocation13_spill] sm:$0xff] }
 0x19d   : > { %1861 = vmatpush.bf16.msrb.mxu0 %v4908_v31  ;;  %1895 = vmatpush.bf16.msrb.mxu1 %v4922_v40  ;;  %v5311_v55 = vpop.f32.mrf.mxu1  ;;  %v6263_v31 = vld [vmem:[#allocation22_spill] sm:$0xff]  ;;  %v6265_v40 = vld [vmem:[#allocation21_spill] sm:$0xff] }
 0x1a0   : > { %1794 = vmatpush.bf16.msrb.mxu2 %v4897_v25  ;;  %1828 = vmatpush.bf16.msrb.mxu3 %v4910_v32  ;;  %v6262_v25 = vld [vmem:[#allocation15_spill] sm:$0xff]  ;;  %v6264_v32 = vld [vmem:[#allocation24_spill] sm:$0xff] }
 0x1a1   : > { %1862 = vmatpush.bf16.msrb.mxu0 %v4948_v1  ;;  %1896 = vmatpush.bf16.msrb.mxu1 %v4962_v16  ;;  %v6267_v16 = vld [vmem:[#allocation25_spill] sm:$0xff] }
 0x1a4   : > { %1795 = vmatpush.bf16.msrb.mxu2 %v4937_v50  ;;  %1829 = vmatpush.bf16.msrb.mxu3 %v4960_v10  ;;  %v6266_v50 = vld [vmem:[#allocation23_spill] sm:$0xff]  ;;  %v5325_v1 = vpop.f32.mrf.mxu0 }
 0x1a5   : > { %1863 = vmatpush.bf16.msrb.mxu0 %v4991_v4  ;;  %1897 = vmatpush.bf16.msrb.mxu1 %v5011_v27  ;;  %v5327_v10 = vpop.f32.mrf.mxu1 }
 0x1a8   : > { %1796 = vmatpush.bf16.msrb.mxu2 %v6251_v63  ;;  %1830 = vmatpush.bf16.msrb.mxu3 %v6252_v14 }
 0x1a9   : > { %1864 = vmatpush.bf16.msrb.mxu0 %v6253_v15  ;;  %1898 = vmatpush.bf16.msrb.mxu1 %v6254_v19 }
 0x1aa   : > { %1494 = vmatmul.bf16.gmra.mxu2 %v6255_v22  ;;  %1528 = vmatmul.bf16.gmra.mxu3 %v6256_v47 }
 0x1ab   : > { %1562 = vmatmul.bf16.gmra.mxu0 %v6255_v22  ;;  %1596 = vmatmul.bf16.gmra.mxu1 %v6256_v47 }
 0x1ac   : > { %1797 = vmatpush.bf16.msrb.mxu2 %v6257_v60  ;;  %1831 = vmatpush.bf16.msrb.mxu3 %v6258_v5  ;;  %v5337_v4 = vpop.f32.mrf.mxu0  ;;  %v6270_v5 = vld [vmem:[#allocation17_spill] sm:$0xff] }
 0x1ad   : > { %1865 = vmatpush.bf16.msrb.mxu0 %v6259_v7  ;;  %1899 = vmatpush.bf16.msrb.mxu1 %v6260_v11  ;;  %v5339_v27 = vpop.f32.mrf.mxu1  ;;  %v853_v7 = vadd.f32 %v6270_v5, %v4927_v43  ;;  %v6271_v11 = vld [vmem:[#allocation18_spill] sm:$0xff] }
 0x1b0   : > { %1798 = vmatpush.bf16.msrb.mxu2 %v6261_v18  ;;  %1832 = vmatpush.bf16.msrb.mxu3 %v6262_v25  ;;  %v887_v18 = vadd.f32 %v6271_v11, %v4929_v46  ;;  %v6272_v25 = vld [vmem:[#allocation26_spill] sm:$0xff] }
 0x1b1   : > { %1866 = vmatpush.bf16.msrb.mxu0 %v6263_v31  ;;  %1900 = vmatpush.bf16.msrb.mxu1 %v6264_v32  ;;  %v855_v31 = vadd.f32 %v6272_v25, %v4927_v43  ;;  %v6273_v32 = vld [vmem:[#allocation27_spill] sm:$0xff] }
 0x1b4   : > { %1799 = vmatpush.bf16.msrb.mxu2 %v6265_v40  ;;  %1833 = vmatpush.bf16.msrb.mxu3 %v6266_v50 }
 0x1b5   : > { %1867 = vmatpush.bf16.msrb.mxu0 %v5168_v49  ;;  %1901 = vmatpush.bf16.msrb.mxu1 %v5181_v59  ;;  %v5344_v49 = vld [vmem:[%s6151_s6] sm:$0xf] }
 0x1b8   : > { %1800 = vmatpush.bf16.msrb.mxu2 %v6267_v16  ;;  %1834 = vmatpush.bf16.msrb.mxu3 %v5179_v20  ;;  %v5347_v20 = vperm.slane %v5344_v49, 1 }
 0x1b9   : > { %1868 = vmatpush.bf16.msrb.mxu0 %v5201_v39  ;;  %1902 = vmatpush.bf16.msrb.mxu1 %v5205_v30  ;;  %v5353_v30 = vperm.slane %v5344_v49, 0 }
 0x1ba   : > { %1499 = vmatmul.bf16.gmra.mxu2 %v6268_v3  ;;  %1533 = vmatmul.bf16.gmra.mxu3 %v6269_v38 }
 0x1bb   : > { %1567 = vmatmul.bf16.gmra.mxu0 %v6268_v3  ;;  %1601 = vmatmul.bf16.gmra.mxu1 %v6269_v38  ;;  %v911_v38 = vmax.f32 %v853_v7, 0.0 }
 0x1c8   : > { %v1422_v59 = vpop.f32.mrf.mxu0  ;;  %v1456_v17 = vpop.f32.mrf.mxu1 }
 0x1c9   : > { %v1423_v39 = vadd.f32 %v1422_v59, %v5347_v20  ;;  %v912_v59 = vmax.f32 %v887_v18, 0.0 }
 0x1ca   : > { %1504 = vmatmul.bf16.gmra.mxu2 %v5219_v44  ;;  %1538 = vmatmul.bf16.gmra.mxu3 %v5221_v48 }
 0x1cb   : > { %v1457_v6 = vadd.f32 %v1456_v17, %v1423_v39  ;;  %1572 = vmatmul.bf16.gmra.mxu0 %v5219_v44  ;;  %1606 = vmatmul.bf16.gmra.mxu1 %v5221_v48  ;;  %v913_v17 = vmax.f32 %v855_v31, 0.0 }
 0x1cd   : > { %v1354_v0 = vpop.f32.mrf.mxu2  ;;  %v1388_v58 = vpop.f32.mrf.mxu3  ;;  %v1618_v2 = vmax.f32 %v1457_v6, 0.0 }
 0x1ce   : > { %v1355_v26 = vadd.f32 %v1354_v0, %v5353_v30 }
 0x1d0   : > { %v1389_v37 = vadd.f32 %v1388_v58, %v1355_v26  ;;  %v1424_v52 = vpop.f32.mrf.mxu0  ;;  %v1458_v53 = vpop.f32.mrf.mxu1 }
 0x1d1   : > { %v1425_v56 = vadd.f32 %v1424_v52, %v5347_v20 }
 0x1d2   : > { %v1617_v63 = vmax.f32 %v1389_v37, 0.0 }
 0x1d3   : > { %v1459_v62 = vadd.f32 %v1458_v53, %v1425_v56  ;;  %v5382_v53 = vpack.c.bf16 %v913_v17, %v911_v38 }
 0x1d5   : > { %v1622_v8 = vmax.f32 %v1459_v62, 0.0  ;;  %v1356_v13 = vpop.f32.mrf.mxu2  ;;  %v1390_v21 = vpop.f32.mrf.mxu3 }
 0x1d6   : > { %v1357_v28 = vadd.f32 %v1356_v13, %v5353_v30 }
 0x1d7   : > { %v5360_v29 = vpack.c.bf16 %v1622_v8, %v1618_v2 }
 0x1d8   : > { %v1391_v44 = vadd.f32 %v1390_v21, %v1357_v28  ;;  %v1427_v48 = vpop.f32.mrf.mxu0  ;;  %v1461_v35 = vpop.f32.mrf.mxu1 }
 0x1d9   : > { %v1428_v36 = vadd.f32 %v1427_v48, %v5347_v20 }
 0x1da   : > { %v1621_v14 = vmax.f32 %v1391_v44, 0.0  ;;  %1509 = vmatmul.bf16.gmra.mxu2 %v5252_v9  ;;  %1543 = vmatmul.bf16.gmra.mxu3 %v5254_v33 }
 0x1db   : > { %v1462_v15 = vadd.f32 %v1461_v35, %v1428_v36  ;;  %1577 = vmatmul.bf16.gmra.mxu0 %v5252_v9  ;;  %1611 = vmatmul.bf16.gmra.mxu1 %v5254_v33  ;;  %v889_v9 = vadd.f32 %v6273_v32, %v4929_v46 }
 0x1dc   : > { %v5367_v19 = vpack.c.bf16 %v1621_v14, %v1617_v63  ;;  %v858_v14 = vadd.f32 %v5224_v23, %v4927_v43 }
 0x1dd   : > { %v1359_v22 = vpop.f32.mrf.mxu2  ;;  %v1393_v47 = vpop.f32.mrf.mxu3  ;;  %v914_v39 = vmax.f32 %v889_v9, 0.0  ;;  %v1626_v6 = vmax.f32 %v1462_v15, 0.0  ;;  %v892_v15 = vadd.f32 %v5226_v24, %v4929_v46 }
 0x1de   : > { %v1360_v60 = vadd.f32 %v1359_v22, %v5353_v30  ;;  %v860_v22 = vadd.f32 %v5242_v34, %v4927_v43  ;;  %v915_v25 = vmax.f32 %v858_v14, 0.0 }
 0x1df   : > { %v5384_v56 = vpack.c.bf16 %v914_v39, %v912_v59  ;;  %v916_v31 = vmax.f32 %v892_v15, 0.0 }
 0x1e0   : > { %v1394_v40 = vadd.f32 %v1393_v47, %v1360_v60  ;;  %v1429_v33 = vpop.f32.mrf.mxu0  ;;  %v1463_v50 = vpop.f32.mrf.mxu1  ;;  %v894_v47 = vadd.f32 %v5244_v12, %v4929_v46  ;;  %v917_v32 = vmax.f32 %v860_v22, 0.0 }
 0x1e1   : > { %v1430_v16 = vadd.f32 %v1429_v33, %v5347_v20 }
 0x1e2   : > { %v1625_v21 = vmax.f32 %v1394_v40, 0.0  ;;  %v918_v9 = vmax.f32 %v894_v47, 0.0 }
 0x1e3   : > { %v1464_v3 = vadd.f32 %v1463_v50, %v1430_v16  ;;  %v5406_v16 = vpack.c.bf16 %v917_v32, %v915_v25 }
 0x1e4   : > { %v5408_v12 = vpack.c.bf16 %v918_v9, %v916_v31 }
 0x1e5   : > { %v1630_v0 = vmax.f32 %v1464_v3, 0.0  ;;  %v1361_v58 = vpop.f32.mrf.mxu2  ;;  %v1395_v26 = vpop.f32.mrf.mxu3 }
 0x1e6   : > { %v1362_v37 = vadd.f32 %v1361_v58, %v5353_v30 }
 0x1e7   : > { %v5380_v52 = vpack.c.bf16 %v1630_v0, %v1626_v6 }
 0x1e8   : > { %v1396_v62 = vadd.f32 %v1395_v26, %v1362_v37  ;;  %v1432_v2 = vpop.f32.mrf.mxu0  ;;  %v1466_v8 = vpop.f32.mrf.mxu1 }
 0x1e9   : > { %v1433_v13 = vadd.f32 %v1432_v2, %v5347_v20  ;;  %v863_v2 = vadd.f32 %v5268_v41, %v4927_v43 }
 0x1ea   : > { %v1629_v28 = vmax.f32 %v1396_v62, 0.0  ;;  %1665 = vmatmul.bf16.vlgmr.msra.gmra.mxu2 %v5382_v53  ;;  %1699 = vmatmul.bf16.vlgmr.msra.gmra.mxu3 %v5384_v56 }
 0x1eb   : > { %v1467_v44 = vadd.f32 %v1466_v8, %v1433_v13  ;;  %1733 = vmatmul.bf16.vlgmr.msra.gmra.mxu0 %v5382_v53  ;;  %1767 = vmatmul.bf16.vlgmr.msra.gmra.mxu1 %v5384_v56  ;;  %v897_v8 = vadd.f32 %v5270_v42, %v4929_v46  ;;  %v865_v13 = vadd.f32 %v5277_v45, %v4927_v43  ;;  %v919_v14 = vmax.f32 %v863_v2, 0.0 }
 0x1ec   : > { %v5391_v48 = vpack.c.bf16 %v1629_v28, %v1625_v21  ;;  %v899_v21 = vadd.f32 %v5279_v51, %v4929_v46 }
 0x1ed   : > { %v1364_v35 = vpop.f32.mrf.mxu2  ;;  %v1398_v36 = vpop.f32.mrf.mxu3  ;;  %v1634_v23 = vmax.f32 %v1467_v44, 0.0  ;;  %v920_v15 = vmax.f32 %v897_v8, 0.0  ;;  %v921_v22 = vmax.f32 %v865_v13, 0.0 }
 0x1ee   : > { %v1365_v63 = vadd.f32 %v1364_v35, %v5353_v30  ;;  %v922_v47 = vmax.f32 %v899_v21, 0.0 }
 0x1f0   : > { %v1399_v60 = vadd.f32 %v1398_v36, %v1365_v63  ;;  %v1434_v5 = vpop.f32.mrf.mxu0  ;;  %v1468_v7 = vpop.f32.mrf.mxu1  ;;  %v5432_v51 = vpack.c.bf16 %v922_v47, %v920_v15 }
 0x1f1   : > { %v1435_v11 = vadd.f32 %v1434_v5, %v5347_v20 }
 0x1f2   : > { %v1633_v39 = vmax.f32 %v1399_v60, 0.0 }
 0x1f3   : > { %v1469_v18 = vadd.f32 %v1468_v7, %v1435_v11  ;;  %v5430_v11 = vpack.c.bf16 %v921_v22, %v919_v14 }
 0x1f5   : > { %v1638_v40 = vmax.f32 %v1469_v18, 0.0  ;;  %v1366_v33 = vpop.f32.mrf.mxu2  ;;  %v1400_v24 = vpop.f32.mrf.mxu3 }
 0x1f6   : > { %v1367_v50 = vadd.f32 %v1366_v33, %v5353_v30 }
 0x1f7   : > { %v5404_v34 = vpack.c.bf16 %v1638_v40, %v1634_v23 }
 0x1f8   : > { %v1401_v3 = vadd.f32 %v1400_v24, %v1367_v50  ;;  %v1437_v38 = vpop.f32.mrf.mxu0  ;;  %v1471_v59 = vpop.f32.mrf.mxu1 }
 0x1f9   : > { %6274 = vst [vmem:[#allocation5_spill] sm:$0xff] %v5404_v34  ;;  %v1438_v17 = vadd.f32 %v1437_v38, %v5347_v20  ;;  %v868_v38 = vadd.f32 %v5293_v57, %v4927_v43 }
 0x1fa   : > { %v1637_v6 = vmax.f32 %v1401_v3, 0.0  ;;  %1670 = vmatmul.bf16.gmra.mxu2 %v5406_v16  ;;  %1704 = vmatmul.bf16.gmra.mxu3 %v5408_v12 }
 0x1fb   : > { %v1472_v0 = vadd.f32 %v1471_v59, %v1438_v17  ;;  %1738 = vmatmul.bf16.gmra.mxu0 %v5406_v16  ;;  %1772 = vmatmul.bf16.gmra.mxu1 %v5408_v12  ;;  %v902_v59 = vadd.f32 %v5295_v61, %v4929_v46  ;;  %v870_v17 = vadd.f32 %v5309_v54, %v4927_v43  ;;  %v923_v2 = vmax.f32 %v868_v38, 0.0 }
 0x1fc   : > { %v5415_v58 = vpack.c.bf16 %v1637_v6, %v1633_v39  ;;  %v904_v39 = vadd.f32 %v5311_v55, %v4929_v46  ;;  %v875_v38 = vadd.f32 %v5337_v4, %v4927_v43 }
 0x1fd   : > { %v1369_v26 = vpop.f32.mrf.mxu2  ;;  %v1403_v37 = vpop.f32.mrf.mxu3  ;;  %v1642_v41 = vmax.f32 %v1472_v0, 0.0  ;;  %v924_v8 = vmax.f32 %v902_v59, 0.0  ;;  %v925_v13 = vmax.f32 %v870_v17, 0.0  ;;  %v909_v59 = vadd.f32 %v5339_v27, %v4929_v46 }
 0x1fe   : > { %6275 = vst [vmem:[#allocation6_spill] sm:$0xff] %v5415_v58  ;;  %v1370_v62 = vadd.f32 %v1369_v26, %v5353_v30  ;;  %v926_v21 = vmax.f32 %v904_v39, 0.0 }
 0x200   : > { %v1404_v28 = vadd.f32 %v1403_v37, %v1370_v62  ;;  %v1439_v44 = vpop.f32.mrf.mxu0  ;;  %v1473_v35 = vpop.f32.mrf.mxu1 }
 0x201   : > { %v1440_v36 = vadd.f32 %v1439_v44, %v5347_v20 }
 0x202   : > { %v1641_v9 = vmax.f32 %v1404_v28, 0.0 }
 0x203   : > { %v1474_v63 = vadd.f32 %v1473_v35, %v1440_v36  ;;  %v5452_v35 = vperm.slane %v5344_v49, 3  ;;  %v5457_v36 = vpack.c.bf16 %v925_v13, %v923_v2  ;;  %v3810_v13 = vld [vmem:[#allocation2 + $0x60] sm:$0xf] }
 0x205   : > { %v1646_v60 = vmax.f32 %v1474_v63, 0.0  ;;  %v1371_v5 = vpop.f32.mrf.mxu2  ;;  %v1405_v42 = vpop.f32.mrf.mxu3  ;;  %v5459_v63 = vpack.c.bf16 %v926_v21, %v924_v8 }
 0x206   : > { %v1372_v7 = vadd.f32 %v1371_v5, %v5353_v30  ;;  %v5465_v5 = vperm.slane %v5344_v49, 2  ;;  %v873_v49 = vadd.f32 %v5325_v1, %v4927_v43 }
 0x207   : > { %v5428_v45 = vpack.c.bf16 %v1646_v60, %v1642_v41 }
 0x208   : > { %v1406_v18 = vadd.f32 %v1405_v42, %v1372_v7  ;;  %v1442_v25 = vpop.f32.mrf.mxu0  ;;  %v1476_v31 = vpop.f32.mrf.mxu1 }
 0x209   : > { %v1443_v32 = vadd.f32 %v1442_v25, %v5347_v20 }
 0x20a   : > { %v1645_v23 = vmax.f32 %v1406_v18, 0.0  ;;  %1675 = vmatmul.bf16.gmra.mxu2 %v5430_v11  ;;  %1709 = vmatmul.bf16.gmra.mxu3 %v5432_v51 }
 0x20b   : > { %v1477_v40 = vadd.f32 %v1476_v31, %v1443_v32  ;;  %1743 = vmatmul.bf16.gmra.mxu0 %v5430_v11  ;;  %1777 = vmatmul.bf16.gmra.mxu1 %v5432_v51  ;;  %v3818_v31 = vld [vmem:[#allocation2 + $0x70] sm:$0xf]  ;;  %v4195_v32 = vld [vmem:[#allocation2 + $0x74] sm:$0xf0] }
 0x20c   : > { %v5439_v33 = vpack.c.bf16 %v1645_v23, %v1641_v9  ;;  %v5472_v23 = vor.u32 %v4195_v32, %v3818_v31 }
 0x20d   : > { %v1374_v24 = vpop.f32.mrf.mxu2  ;;  %v1408_v50 = vpop.f32.mrf.mxu3  ;;  %v1650_v57 = vmax.f32 %v1477_v40, 0.0  ;;  %v3882_v40 = vld [vmem:[#allocation2 + $0xf0] sm:$0xf] }
 0x20e   : > { %v1375_v3 = vadd.f32 %v1374_v24, %v5353_v30  ;;  %v4211_v24 = vld [vmem:[#allocation2 + $0xf4] sm:$0xf0]  ;;  %2399 = vmatpush.bf16.msra.mxu2 %v5472_v23 }
 0x210   : > { %v1409_v6 = vadd.f32 %v1408_v50, %v1375_v3  ;;  %v1444_v0 = vpop.f32.mrf.mxu0  ;;  %v1478_v26 = vpop.f32.mrf.mxu1  ;;  %v5476_v50 = vor.u32 %v4211_v24, %v3882_v40  ;;  %v907_v3 = vadd.f32 %v5327_v10, %v4929_v46  ;;  %v930_v10 = vmax.f32 %v909_v59, 0.0  ;;  %v4193_v46 = vld [vmem:[#allocation2 + $0x64] sm:$0xf0]  ;;  %v4243_v40 = vld [vmem:[#allocation2 + $0x1f4] sm:$0xf0] }
 0x211   : > { %v1445_v37 = vadd.f32 %v1444_v0, %v5347_v20  ;;  %v5488_v21 = vor.u32 %v4193_v46, %v3810_v13 }
 0x212   : > { %v1649_v41 = vmax.f32 %v1409_v6, 0.0  ;;  %2433 = vmatpush.bf16.msra.mxu3 %v5476_v50 }
 0x213   : > { %v1479_v62 = vadd.f32 %v1478_v26, %v1445_v37  ;;  %v927_v26 = vmax.f32 %v873_v49, 0.0  ;;  %v928_v37 = vmax.f32 %v907_v3, 0.0  ;;  %2400 = vmatpush.bf16.msra.mxu2 %v5488_v21 }
 0x215   : > { %v1654_v28 = vmax.f32 %v1479_v62, 0.0  ;;  %v1376_v44 = vpop.f32.mrf.mxu2  ;;  %v1410_v61 = vpop.f32.mrf.mxu3  ;;  %v929_v62 = vmax.f32 %v875_v38, 0.0 }
 0x216   : > { %v1377_v54 = vadd.f32 %v1376_v44, %v5353_v30 }
 0x217   : > { %v5455_v55 = vpack.c.bf16 %v1654_v28, %v1650_v57  ;;  %v3946_v57 = vld [vmem:[#allocation2 + $0x170] sm:$0xf]  ;;  %v4227_v28 = vld [vmem:[#allocation2 + $0x174] sm:$0xf0] }
 0x218   : > { %v1411_v14 = vadd.f32 %v1410_v61, %v1377_v54  ;;  %v1558_v15 = vpop.f32.mrf.mxu0  ;;  %v1592_v22 = vpop.f32.mrf.mxu1  ;;  %v5492_v61 = vor.u32 %v4227_v28, %v3946_v57  ;;  %v5494_v54 = vpack.c.bf16 %v929_v62, %v927_v26  ;;  %v4191_v26 = vld [vmem:[#allocation2 + $0x54] sm:$0xf0] }
 0x219   : > { %v1559_v47 = vadd.f32 %v1558_v15, %v5452_v35  ;;  %v4207_v57 = vld [vmem:[#allocation2 + $0xd4] sm:$0xf0] }
 0x21a   : > { %v1653_v60 = vmax.f32 %v1411_v14, 0.0  ;;  %1680 = vmatmul.bf16.gmra.mxu2 %v5457_v36  ;;  %1714 = vmatmul.bf16.gmra.mxu3 %v5459_v63  ;;  %v5496_v14 = vpack.c.bf16 %v930_v10, %v928_v37  ;;  %v3938_v10 = vld [vmem:[#allocation2 + $0x160] sm:$0xf] }
 0x21b   : > { %v1593_v42 = vadd.f32 %v1592_v22, %v1559_v47  ;;  %1748 = vmatmul.bf16.gmra.mxu0 %v5457_v36  ;;  %1782 = vmatmul.bf16.gmra.mxu1 %v5459_v63 }
 0x21c   : > { %v5469_v7 = vpack.c.bf16 %v1653_v60, %v1649_v41  ;;  %2467 = vmatpush.bf16.msra.mxu0 %v5492_v61 }
 0x21d   : > { %v1490_v18 = vpop.f32.mrf.mxu2  ;;  %v1524_v25 = vpop.f32.mrf.mxu3  ;;  %v1620_v2 = vmax.f32 %v1593_v42, 0.0 }
 0x21e   : > { %v1491_v9 = vadd.f32 %v1490_v18, %v5465_v5  ;;  %v3874_v18 = vld [vmem:[#allocation2 + $0xe0] sm:$0xf] }
 0x220   : > { %v1525_v17 = vadd.f32 %v1524_v25, %v1491_v9  ;;  %v1560_v39 = vpop.f32.mrf.mxu0  ;;  %v1594_v6 = vpop.f32.mrf.mxu1  ;;  %v4209_v25 = vld [vmem:[#allocation2 + $0xe4] sm:$0xf0]  ;;  %v4010_v9 = vld [vmem:[#allocation2 + $0x1f0] sm:$0xf] }
 0x221   : > { %v1561_v0 = vadd.f32 %v1560_v39, %v5452_v35  ;;  %v5505_v32 = vor.u32 %v4209_v25, %v3874_v18  ;;  %v5509_v49 = vor.u32 %v4243_v40, %v4010_v9 }
 0x222   : > { %v1619_v60 = vmax.f32 %v1525_v17, 0.0 }
 0x223   : > { %v1595_v1 = vadd.f32 %v1594_v6, %v1561_v0  ;;  %2434 = vmatpush.bf16.msra.mxu3 %v5505_v32  ;;  %2501 = vmatpush.bf16.msra.mxu1 %v5509_v49 }
 0x225   : > { %v1624_v8 = vmax.f32 %v1595_v1, 0.0  ;;  %v1492_v43 = vpop.f32.mrf.mxu2  ;;  %v1526_v4 = vpop.f32.mrf.mxu3  ;;  %v3802_v1 = vld [vmem:[#allocation2 + $0x50] sm:$0xf] }
 0x226   : > { %v1493_v27 = vadd.f32 %v1492_v43, %v5465_v5  ;;  %v5515_v62 = vor.u32 %v4191_v26, %v3802_v1 }
 0x227   : > { %v5490_v44 = vpack.c.bf16 %v1624_v8, %v1620_v2  ;;  %v4225_v2 = vld [vmem:[#allocation2 + $0x164] sm:$0xf0] }
 0x228   : > { %v1527_v15 = vadd.f32 %v1526_v4, %v1493_v27  ;;  %v1563_v22 = vpop.f32.mrf.mxu0  ;;  %v1597_v47 = vpop.f32.mrf.mxu1  ;;  %v5517_v8 = vor.u32 %v4225_v2, %v3938_v10  ;;  %2401 = vmatpush.bf16.msra.mxu2 %v5515_v62  ;;  %v3866_v27 = vld [vmem:[#allocation2 + $0xd0] sm:$0xf]  ;;  %v3858_v10 = vld [vmem:[#allocation2 + $0xc0] sm:$0xf] }
 0x229   : > { %v1564_v41 = vadd.f32 %v1563_v22, %v5452_v35  ;;  %v4002_v22 = vld [vmem:[#allocation2 + $0x1e0] sm:$0xf] }
 0x22a   : > { %v1623_v42 = vmax.f32 %v1527_v15, 0.0  ;;  %1685 = vmatmul.bf16.gmra.mxu2 %v5494_v54  ;;  %1719 = vmatmul.bf16.gmra.mxu3 %v5496_v14  ;;  %v5522_v15 = vor.u32 %v4207_v57, %v3866_v27 }
 0x22b   : > { %v1598_v31 = vadd.f32 %v1597_v47, %v1564_v41  ;;  %1753 = vmatmul.bf16.gmra.mxu0 %v5494_v54  ;;  %1787 = vmatmul.bf16.gmra.mxu1 %v5496_v14  ;;  %v4241_v47 = vld [vmem:[#allocation2 + $0x1e4] sm:$0xf0] }
 0x22c   : > { %v5507_v24 = vpack.c.bf16 %v1623_v42, %v1619_v60  ;;  %2468 = vmatpush.bf16.msra.mxu0 %v5517_v8  ;;  %v5524_v41 = vor.u32 %v4241_v47, %v4002_v22  ;;  %2435 = vmatpush.bf16.msra.mxu3 %v5522_v15 }
 0x22d   : > { %v1495_v3 = vpop.f32.mrf.mxu2  ;;  %v1529_v38 = vpop.f32.mrf.mxu3  ;;  %v1628_v43 = vmax.f32 %v1598_v31, 0.0 }
 0x22e   : > { %v1496_v59 = vadd.f32 %v1495_v3, %v5465_v5  ;;  %2502 = vmatpush.bf16.msra.mxu1 %v5524_v41 }
 0x230   : > { %v1530_v17 = vadd.f32 %v1529_v38, %v1496_v59  ;;  %v1565_v39 = vpop.f32.mrf.mxu0  ;;  %v1599_v6 = vpop.f32.mrf.mxu1 }
 0x231   : > { %v1566_v0 = vadd.f32 %v1565_v39, %v5452_v35 }
 0x232   : > { %v1627_v9 = vmax.f32 %v1530_v17, 0.0  ;;  %v3930_v17 = vld [vmem:[#allocation2 + $0x150] sm:$0xf] }
 0x233   : > { %v1600_v37 = vadd.f32 %v1599_v6, %v1566_v0  ;;  %v3794_v6 = vld [vmem:[#allocation2 + $0x40] sm:$0xf]  ;;  %v4189_v0 = vld [vmem:[#allocation2 + $0x44] sm:$0xf0] }
 0x234   : > { %v5538_v26 = vor.u32 %v4189_v0, %v3794_v6  ;;  %v4221_v6 = vld [vmem:[#allocation2 + $0x144] sm:$0xf0]  ;;  %v3850_v0 = vld [vmem:[#allocation2 + $0xb0] sm:$0xf] }
 0x235   : > { %v1632_v4 = vmax.f32 %v1600_v37, 0.0  ;;  %v1497_v13 = vpop.f32.mrf.mxu2  ;;  %v1531_v46 = vpop.f32.mrf.mxu3  ;;  %v4223_v37 = vld [vmem:[#allocation2 + $0x154] sm:$0xf0] }
 0x236   : > { %v1498_v28 = vadd.f32 %v1497_v13, %v5465_v5  ;;  %v5540_v2 = vor.u32 %v4223_v37, %v3930_v17  ;;  %2402 = vmatpush.bf16.msra.mxu2 %v5538_v26  ;;  %v4203_v17 = vld [vmem:[#allocation2 + $0xb4] sm:$0xf0]  ;;  %v3986_v37 = vld [vmem:[#allocation2 + $0x1c0] sm:$0xf] }
 0x237   : > { %v5526_v60 = vpack.c.bf16 %v1632_v4, %v1628_v43  ;;  %v4205_v43 = vld [vmem:[#allocation2 + $0xc4] sm:$0xf0]  ;;  %v3994_v4 = vld [vmem:[#allocation2 + $0x1d0] sm:$0xf] }
 0x238   : > { %v1532_v42 = vadd.f32 %v1531_v46, %v1498_v28  ;;  %v1568_v18 = vpop.f32.mrf.mxu0  ;;  %v1602_v25 = vpop.f32.mrf.mxu1  ;;  %v5543_v27 = vor.u32 %v4205_v43, %v3858_v10  ;;  %2469 = vmatpush.bf16.msra.mxu0 %v5540_v2  ;;  %v4237_v10 = vld [vmem:[#allocation2 + $0x1c4] sm:$0xf0] }
 0x239   : > { %v1569_v31 = vadd.f32 %v1568_v18, %v5452_v35 }
 0x23a   : > { %v1631_v40 = vmax.f32 %v1532_v42, 0.0  ;;  %1801 = vmatmul.bf16.vlgmr.msrb.gmra.mxu2 %v5382_v53  ;;  %1835 = vmatmul.bf16.vlgmr.msrb.gmra.mxu3 %v5384_v56 }
 0x23b   : > { %v1603_v3 = vadd.f32 %v1602_v25, %v1569_v31  ;;  %1869 = vmatmul.bf16.vlgmr.msrb.gmra.mxu0 %v5382_v53  ;;  %1903 = vmatmul.bf16.vlgmr.msrb.gmra.mxu1 %v5384_v56  ;;  %v4239_v53 = vld [vmem:[#allocation2 + $0x1d4] sm:$0xf0]  ;;  %v3786_v31 = vld [vmem:[#allocation2 + $0x30] sm:$0xf] }
 0x23c   : > { %v5535_v38 = vpack.c.bf16 %v1631_v40, %v1627_v9  ;;  %v5545_v57 = vor.u32 %v4239_v53, %v3994_v4  ;;  %2436 = vmatpush.bf16.msra.mxu3 %v5543_v27  ;;  %v4187_v9 = vld [vmem:[#allocation2 + $0x34] sm:$0xf0] }
 0x23d   : > { %v1500_v59 = vpop.f32.mrf.mxu2  ;;  %v1534_v39 = vpop.f32.mrf.mxu3  ;;  %v1636_v47 = vmax.f32 %v1603_v3, 0.0 }
 0x23e   : > { %v1501_v1 = vadd.f32 %v1500_v59, %v5465_v5  ;;  %2503 = vmatpush.bf16.msra.mxu1 %v5545_v57  ;;  %v5552_v59 = vor.u32 %v4187_v9, %v3786_v31  ;;  %v3778_v9 = vld [vmem:[#allocation2 + $0x20] sm:$0xf] }
 0x240   : > { %v1535_v13 = vadd.f32 %v1534_v39, %v1501_v1  ;;  %v1570_v56 = vpop.f32.mrf.mxu0  ;;  %v1604_v46 = vpop.f32.mrf.mxu1  ;;  %v3922_v39 = vld [vmem:[#allocation2 + $0x140] sm:$0xf]  ;;  %2403 = vmatpush.bf16.msra.mxu2 %v5552_v59 }
 0x241   : > { %v1571_v28 = vadd.f32 %v1570_v56, %v5452_v35  ;;  %v5554_v1 = vor.u32 %v4221_v6, %v3922_v39  ;;  %v5559_v56 = vor.u32 %v4203_v17, %v3850_v0  ;;  %v3914_v6 = vld [vmem:[#allocation2 + $0x130] sm:$0xf]  ;;  %v4219_v0 = vld [vmem:[#allocation2 + $0x134] sm:$0xf0] }
 0x242   : > { %v5576_v17 = vor.u32 %v4219_v0, %v3914_v6 }
 0x243   : > { %v1605_v22 = vadd.f32 %v1604_v46, %v1571_v28  ;;  %6277 = vst [vmem:[#allocation12_spill] sm:$0xff] %v5559_v56  ;;  %v5561_v46 = vor.u32 %v4237_v10, %v3986_v37  ;;  %2470 = vmatpush.bf16.msra.mxu0 %v5554_v1  ;;  %2437 = vmatpush.bf16.msra.mxu3 %v5559_v56 }
 0x244   : > { %6280 = vst [vmem:[#allocation7_spill] sm:$0xff] %v5576_v17 }
 0x245   : > { %v1640_v42 = vmax.f32 %v1605_v22, 0.0  ;;  %v1502_v18 = vpop.f32.mrf.mxu2  ;;  %v1536_v25 = vpop.f32.mrf.mxu3  ;;  %v1635_v22 = vmax.f32 %v1535_v13, 0.0  ;;  %2504 = vmatpush.bf16.msra.mxu1 %v5561_v46  ;;  %v4185_v13 = vld [vmem:[#allocation2 + $0x24] sm:$0xf0] }
 0x246   : > { %v1503_v40 = vadd.f32 %v1502_v18, %v5465_v5  ;;  %v5574_v39 = vor.u32 %v4185_v13, %v3778_v9 }
 0x247   : > { %v5556_v43 = vpack.c.bf16 %v1640_v42, %v1636_v47  ;;  %2471 = vmatpush.bf16.msra.mxu0 %v5576_v17 }
 0x248   : > { %v1537_v3 = vadd.f32 %v1536_v25, %v1503_v40  ;;  %v1573_v4 = vpop.f32.mrf.mxu0  ;;  %v1607_v53 = vpop.f32.mrf.mxu1  ;;  %6279 = vst [vmem:[#allocation10_spill] sm:$0xff] %v5574_v39  ;;  %2404 = vmatpush.bf16.msra.mxu2 %v5574_v39  ;;  %v3890_v39 = vld [vmem:[#allocation2 + $0x100] sm:$0xf] }
 0x249   : > { %6276 = vst [vmem:[#allocation8_spill] sm:$0xff] %v5556_v43  ;;  %v1574_v28 = vadd.f32 %v1573_v4, %v5452_v35  ;;  %v4201_v4 = vld [vmem:[#allocation2 + $0xa4] sm:$0xf0] }
 0x24a   : > { %v1639_v18 = vmax.f32 %v1537_v3, 0.0  ;;  %1806 = vmatmul.bf16.gmra.mxu2 %v5406_v16  ;;  %1840 = vmatmul.bf16.gmra.mxu3 %v5408_v12  ;;  %v3842_v3 = vld [vmem:[#allocation2 + $0xa0] sm:$0xf] }
 0x24b   : > { %v1608_v47 = vadd.f32 %v1607_v53, %v1574_v28  ;;  %1874 = vmatmul.bf16.gmra.mxu0 %v5406_v16  ;;  %1908 = vmatmul.bf16.gmra.mxu1 %v5408_v12  ;;  %v5581_v28 = vor.u32 %v4201_v4, %v3842_v3 }
 0x24c   : > { %v5571_v42 = vpack.c.bf16 %v1639_v18, %v1635_v22  ;;  %v3978_v22 = vld [vmem:[#allocation2 + $0x1b0] sm:$0xf]  ;;  %v4235_v18 = vld [vmem:[#allocation2 + $0x1b4] sm:$0xf0] }
 0x24d   : > { %v1505_v25 = vpop.f32.mrf.mxu2  ;;  %v1539_v31 = vpop.f32.mrf.mxu3  ;;  %6281 = vst [vmem:[#allocation11_spill] sm:$0xff] %v5581_v28  ;;  %v1644_v9 = vmax.f32 %v1608_v47, 0.0  ;;  %2438 = vmatpush.bf16.msra.mxu3 %v5581_v28 }
 0x24e   : > { %6278 = vst [vmem:[#allocation9_spill] sm:$0xff] %v5571_v42  ;;  %v1506_v40 = vadd.f32 %v1505_v25, %v5465_v5  ;;  %v5583_v25 = vor.u32 %v4235_v18, %v3978_v22  ;;  %v4183_v18 = vld [vmem:[#allocation2 + $0x14] sm:$0xf0] }
 0x250   : > { %v1540_v16 = vadd.f32 %v1539_v31, %v1506_v40  ;;  %v1575_v12 = vpop.f32.mrf.mxu0  ;;  %v1609_v37 = vpop.f32.mrf.mxu1  ;;  %6282 = vst [vmem:[#allocation14_spill] sm:$0xff] %v5583_v25  ;;  %2505 = vmatpush.bf16.msra.mxu1 %v5583_v25 }
 0x251   : > { %v1576_v10 = vadd.f32 %v1575_v12, %v5452_v35 }
 0x252   : > { %v1643_v4 = vmax.f32 %v1540_v16, 0.0  ;;  %v4217_v16 = vld [vmem:[#allocation2 + $0x124] sm:$0xf0] }
 0x253   : > { %v1610_v53 = vadd.f32 %v1609_v37, %v1576_v10 }
 0x255   : > { %v1648_v13 = vmax.f32 %v1610_v53, 0.0  ;;  %v1507_v31 = vpop.f32.mrf.mxu2  ;;  %v1541_v40 = vpop.f32.mrf.mxu3  ;;  %v3770_v53 = vld [vmem:[#allocation2 + $0x10] sm:$0xf] }
 0x256   : > { %v1508_v6 = vadd.f32 %v1507_v31, %v5465_v5 }
 0x257   : > { %v5588_v0 = vpack.c.bf16 %v1648_v13, %v1644_v9  ;;  %v3906_v9 = vld [vmem:[#allocation2 + $0x120] sm:$0xf] }
 0x258   : > { %v1542_v12 = vadd.f32 %v1541_v40, %v1508_v6  ;;  %v1578_v37 = vpop.f32.mrf.mxu0  ;;  %v1612_v10 = vpop.f32.mrf.mxu1  ;;  %v5597_v6 = vor.u32 %v4183_v18, %v3770_v53  ;;  %v5600_v28 = vor.u32 %v4217_v16, %v3906_v9  ;;  %v3898_v18 = vld [vmem:[#allocation2 + $0x110] sm:$0xf]  ;;  %v4215_v9 = vld [vmem:[#allocation2 + $0x114] sm:$0xf0] }
 0x259   : > { %v1579_v3 = vadd.f32 %v1578_v37, %v5452_v35  ;;  %v5611_v16 = vor.u32 %v4215_v9, %v3898_v18  ;;  %v3826_v18 = vld [vmem:[#allocation2 + $0x80] sm:$0xf]  ;;  %v4197_v9 = vld [vmem:[#allocation2 + $0x84] sm:$0xf0] }
 0x25a   : > { %v1647_v22 = vmax.f32 %v1542_v12, 0.0  ;;  %1811 = vmatmul.bf16.gmra.mxu2 %v5430_v11  ;;  %1845 = vmatmul.bf16.gmra.mxu3 %v5432_v51  ;;  %6283 = vst [vmem:[#allocation16_spill] sm:$0xff] %v5597_v6  ;;  %v3834_v12 = vld [vmem:[#allocation2 + $0x90] sm:$0xf] }
 0x25b   : > { %v1613_v47 = vadd.f32 %v1612_v10, %v1579_v3  ;;  %1879 = vmatmul.bf16.gmra.mxu0 %v5430_v11  ;;  %1913 = vmatmul.bf16.gmra.mxu1 %v5432_v51  ;;  %6284 = vst [vmem:[#allocation13_spill] sm:$0xff] %v5600_v28  ;;  %v4199_v10 = vld [vmem:[#allocation2 + $0x94] sm:$0xf0]  ;;  %v3970_v3 = vld [vmem:[#allocation2 + $0x1a0] sm:$0xf] }
 0x25c   : > { %v5595_v13 = vpack.c.bf16 %v1647_v22, %v1643_v4  ;;  %v4233_v11 = vld [vmem:[#allocation2 + $0x1a4] sm:$0xf0]  ;;  %2405 = vmatpush.bf16.msra.mxu2 %v5597_v6  ;;  %v5603_v51 = vor.u32 %v4199_v10, %v3834_v12  ;;  %2472 = vmatpush.bf16.msra.mxu0 %v5600_v28  ;;  %6287 = vst [vmem:[#allocation24_spill] sm:$0xff] %v5611_v16  ;;  %v4231_v12 = vld [vmem:[#allocation2 + $0x194] sm:$0xf0] }
 0x25d   : > { %v1510_v31 = vpop.f32.mrf.mxu2  ;;  %v1544_v40 = vpop.f32.mrf.mxu3  ;;  %v5605_v25 = vor.u32 %v4233_v11, %v3970_v3  ;;  %v4181_v6 = vld [vmem:[#allocation2 + $0x4] sm:$0xf0] }
 0x25e   : > { %v1511_v37 = vadd.f32 %v1510_v31, %v5465_v5  ;;  %6285 = vst [vmem:[#allocation15_spill] sm:$0xff] %v5603_v51  ;;  %2439 = vmatpush.bf16.msra.mxu3 %v5603_v51  ;;  %v3962_v31 = vld [vmem:[#allocation2 + $0x190] sm:$0xf] }
 0x25f   : > { %6286 = vst [vmem:[#allocation22_spill] sm:$0xff] %v5605_v25  ;;  %2506 = vmatpush.bf16.msra.mxu1 %v5605_v25  ;;  %v5613_v3 = vor.u32 %v4231_v12, %v3962_v31  ;;  %v3954_v31 = vld [vmem:[#allocation2 + $0x180] sm:$0xf]  ;;  %v4229_v12 = vld [vmem:[#allocation2 + $0x184] sm:$0xf0] }
 0x260   : > { %v1545_v4 = vadd.f32 %v1544_v40, %v1511_v37  ;;  %v1580_v22 = vpop.f32.mrf.mxu0  ;;  %v1614_v17 = vpop.f32.mrf.mxu1  ;;  %2473 = vmatpush.bf16.msra.mxu0 %v5611_v16  ;;  %v1652_v40 = vmax.f32 %v1613_v47, 0.0 }
 0x261   : > { %v1581_v53 = vadd.f32 %v1580_v22, %v5452_v35  ;;  %6288 = vst [vmem:[#allocation21_spill] sm:$0xff] %v5613_v3  ;;  %v3762_v22 = vld [vmem:[#allocation2] sm:$0xf] }
 0x262   : > { %v5618_v25 = vor.u32 %v4181_v6, %v3762_v22  ;;  %v1651_v22 = vmax.f32 %v1545_v4, 0.0  ;;  %v3820_v4 = vld [vmem:[#allocation2 + $0x78] sm:$0xf0] }
 0x263   : > { %v1615_v10 = vadd.f32 %v1614_v17, %v1581_v53  ;;  %2507 = vmatpush.bf16.msra.mxu1 %v5613_v3  ;;  %v5620_v17 = vor.u32 %v4197_v9, %v3826_v18  ;;  %v4213_v53 = vld [vmem:[#allocation2 + $0x104] sm:$0xf0] }
 0x264   : > { %2406 = vmatpush.bf16.msra.mxu2 %v5618_v25  ;;  %v5625_v3 = vor.u32 %v4213_v53, %v3890_v39  ;;  %v4210_v53 = vld [vmem:[#allocation2 + $0xf4] sm:$0xf] }
 0x265   : > { %v1656_v37 = vmax.f32 %v1615_v10, 0.0  ;;  %v1512_v11 = vpop.f32.mrf.mxu2  ;;  %v1546_v28 = vpop.f32.mrf.mxu3  ;;  %6289 = vst [vmem:[#allocation23_spill] sm:$0xff] %v5620_v17  ;;  %2440 = vmatpush.bf16.msra.mxu3 %v5620_v17 }
 0x266   : > { %v1513_v51 = vadd.f32 %v1512_v11, %v5465_v5  ;;  %6290 = vst [vmem:[#allocation25_spill] sm:$0xff] %v5625_v3  ;;  %v5627_v11 = vor.u32 %v4229_v12, %v3954_v31  ;;  %2474 = vmatpush.bf16.msra.mxu0 %v5625_v3 }
 0x267   : > { %v5622_v47 = vpack.c.bf16 %v1656_v37, %v1652_v40 }
 0x268   : > { %v1547_v10 = vadd.f32 %v1546_v28, %v1513_v51  ;;  %v1734_v16 = vpop.f32.mrf.mxu0  ;;  %v1768_v56 = vpop.f32.mrf.mxu1  ;;  %6291 = vst [vmem:[#allocation19_spill] sm:$0xff] %v5627_v11  ;;  %2508 = vmatpush.bf16.msra.mxu1 %v5627_v11 }
 0x269   : > { %v1735_v6 = vadd.f32 %v1734_v16, %v5347_v20  ;;  %v4194_v16 = vld [vmem:[#allocation2 + $0x74] sm:$0xf] }
 0x26a   : > { %v1655_v18 = vmax.f32 %v1547_v10, 0.0  ;;  %1816 = vmatmul.bf16.gmra.mxu2 %v5457_v36  ;;  %1850 = vmatmul.bf16.gmra.mxu3 %v5459_v63  ;;  %v5640_v9 = vor.u32 %v4194_v16, %v3820_v4  ;;  %v4192_v16 = vld [vmem:[#allocation2 + $0x64] sm:$0xf]  ;;  %v3812_v4 = vld [vmem:[#allocation2 + $0x68] sm:$0xf0] }
 0x26b   : > { %v1769_v40 = vadd.f32 %v1768_v56, %v1735_v6  ;;  %1884 = vmatmul.bf16.gmra.mxu0 %v5457_v36  ;;  %1918 = vmatmul.bf16.gmra.mxu1 %v5459_v63  ;;  %v3884_v56 = vld [vmem:[#allocation2 + $0xf8] sm:$0xf0] }
 0x26c   : > { %v5637_v39 = vpack.c.bf16 %v1655_v18, %v1651_v22  ;;  %6292 = vst [vmem:[#allocation20_spill] sm:$0xff] %v5640_v9  ;;  %v5642_v31 = vor.u32 %v4210_v53, %v3884_v56  ;;  %2535 = vmatpush.bf16.msrb.mxu2 %v5640_v9  ;;  %v5648_v53 = vor.u32 %v4192_v16, %v3812_v4 }
 0x26d   : > { %v1666_v28 = vpop.f32.mrf.mxu2  ;;  %v1700_v51 = vpop.f32.mrf.mxu3  ;;  %v1930_v22 = vmax.f32 %v1769_v40, 0.0 }
 0x26e   : > { %v1667_v37 = vadd.f32 %v1666_v28, %v5353_v30  ;;  %6293 = vst [vmem:[#allocation17_spill] sm:$0xff] %v5642_v31  ;;  %2569 = vmatpush.bf16.msrb.mxu3 %v5642_v31 }
 0x26f   : > { %6294 = vst [vmem:[#allocation18_spill] sm:$0xff] %v5648_v53 }
 0x270   : > { %v1701_v36 = vadd.f32 %v1700_v51, %v1667_v37  ;;  %v1736_v63 = vpop.f32.mrf.mxu0  ;;  %v1770_v12 = vpop.f32.mrf.mxu1  ;;  %v4226_v51 = vld [vmem:[#allocation2 + $0x174] sm:$0xf]  ;;  %v3948_v37 = vld [vmem:[#allocation2 + $0x178] sm:$0xf0]  ;;  %2536 = vmatpush.bf16.msrb.mxu2 %v5648_v53 }
 0x271   : > { %v1737_v10 = vadd.f32 %v1736_v63, %v5347_v20  ;;  %v5652_v9 = vor.u32 %v4226_v51, %v3948_v37  ;;  %v3788_v53 = vld [vmem:[#allocation2 + $0x38] sm:$0xf0] }
 0x273   : > { %v1771_v6 = vadd.f32 %v1770_v12, %v1737_v10  ;;  %2603 = vmatpush.bf16.msrb.mxu0 %v5652_v9  ;;  %v1929_v12 = vmax.f32 %v1701_v36, 0.0 }
 0x275   : > { %v1934_v18 = vmax.f32 %v1771_v6, 0.0  ;;  %v1668_v11 = vpop.f32.mrf.mxu2  ;;  %v1702_v28 = vpop.f32.mrf.mxu3  ;;  %v3876_v6 = vld [vmem:[#allocation2 + $0xe8] sm:$0xf0] }
 0x276   : > { %v1669_v3 = vadd.f32 %v1668_v11, %v5353_v30  ;;  %v4208_v11 = vld [vmem:[#allocation2 + $0xe4] sm:$0xf] }
 0x277   : > { %v5650_v56 = vpack.c.bf16 %v1934_v18, %v1930_v22  ;;  %v4242_v18 = vld [vmem:[#allocation2 + $0x1f4] sm:$0xf] }
 0x278   : > { %v1703_v63 = vadd.f32 %v1702_v28, %v1669_v3  ;;  %v1739_v17 = vpop.f32.mrf.mxu0  ;;  %v1773_v31 = vpop.f32.mrf.mxu1  ;;  %v5661_v3 = vor.u32 %v4208_v11, %v3876_v6  ;;  %v4012_v28 = vld [vmem:[#allocation2 + $0x1f8] sm:$0xf0]  ;;  %v3940_v6 = vld [vmem:[#allocation2 + $0x168] sm:$0xf0] }
 0x279   : > { %6295 = vst [vmem:[#allocation26_spill] sm:$0xff] %v5650_v56  ;;  %v1740_v40 = vadd.f32 %v1739_v17, %v5347_v20  ;;  %v5665_v16 = vor.u32 %v4242_v18, %v4012_v28 }
 0x27a   : > { %v1933_v10 = vmax.f32 %v1703_v63, 0.0  ;;  %1821 = vmatmul.bf16.gmra.mxu2 %v5494_v54  ;;  %1855 = vmatmul.bf16.gmra.mxu3 %v5496_v14  ;;  %6296 = vst [vmem:[#allocation27_spill] sm:$0xff] %v5661_v3  ;;  %v4190_v63 = vld [vmem:[#allocation2 + $0x54] sm:$0xf] }
 0x27b   : > { %v1774_v22 = vadd.f32 %v1773_v31, %v1740_v40  ;;  %1889 = vmatmul.bf16.gmra.mxu0 %v5494_v54  ;;  %1923 = vmatmul.bf16.gmra.mxu1 %v5496_v14  ;;  %6298 = vst [vmem:[#allocation29_spill] sm:$0xff] %v5665_v16  ;;  %v3804_v40 = vld [vmem:[#allocation2 + $0x58] sm:$0xf0] }
 0x27c   : > { %v5663_v17 = vpack.c.bf16 %v1933_v10, %v1929_v12  ;;  %2570 = vmatpush.bf16.msrb.mxu3 %v5661_v3  ;;  %2637 = vmatpush.bf16.msrb.mxu1 %v5665_v16  ;;  %v5671_v12 = vor.u32 %v4190_v63, %v3804_v40  ;;  %v4224_v10 = vld [vmem:[#allocation2 + $0x164] sm:$0xf]  ;;  %v3988_v16 = vld [vmem:[#allocation2 + $0x1c8] sm:$0xf0] }
 0x27d   : > { %v1671_v36 = vpop.f32.mrf.mxu2  ;;  %v1705_v4 = vpop.f32.mrf.mxu3  ;;  %v5673_v18 = vor.u32 %v4224_v10, %v3940_v6  ;;  %v1938_v28 = vmax.f32 %v1774_v22, 0.0 }
 0x27e   : > { %6297 = vst [vmem:[#allocation28_spill] sm:$0xff] %v5663_v17  ;;  %v1672_v51 = vadd.f32 %v1671_v36, %v5353_v30  ;;  %2537 = vmatpush.bf16.msrb.mxu2 %v5671_v12 }
 0x27f   : > { %6299 = vst [vmem:[#allocation30_spill] sm:$0xff] %v5671_v12  ;;  %2604 = vmatpush.bf16.msrb.mxu0 %v5673_v18 }
 0x280   : > { %v1706_v31 = vadd.f32 %v1705_v4, %v1672_v51  ;;  %v1741_v54 = vpop.f32.mrf.mxu0  ;;  %v1775_v37 = vpop.f32.mrf.mxu1  ;;  %6300 = vst [vmem:[#allocation31_spill] sm:$0xff] %v5673_v18  ;;  %v4206_v4 = vld [vmem:[#allocation2 + $0xd4] sm:$0xf]  ;;  %v3868_v51 = vld [vmem:[#allocation2 + $0xd8] sm:$0xf0] }
 0x281   : > { %v1742_v14 = vadd.f32 %v1741_v54, %v5347_v20  ;;  %v5678_v54 = vor.u32 %v4206_v4, %v3868_v51  ;;  %v3796_v51 = vld [vmem:[#allocation2 + $0x48] sm:$0xf0] }
 0x283   : > { %v1776_v11 = vadd.f32 %v1775_v37, %v1742_v14  ;;  %6301 = vst [vmem:[#allocation32_spill] sm:$0xff] %v5678_v54  ;;  %v4240_v37 = vld [vmem:[#allocation2 + $0x1e4] sm:$0xf]  ;;  %v4004_v14 = vld [vmem:[#allocation2 + $0x1e8] sm:$0xf0]  ;;  %2571 = vmatpush.bf16.msrb.mxu3 %v5678_v54 }
 0x284   : > { %v5680_v63 = vor.u32 %v4240_v37, %v4004_v14  ;;  %v3996_v54 = vld [vmem:[#allocation2 + $0x1d8] sm:$0xf0] }
 0x285   : > { %v1942_v56 = vmax.f32 %v1776_v11, 0.0  ;;  %v1673_v17 = vpop.f32.mrf.mxu2  ;;  %v1707_v36 = vpop.f32.mrf.mxu3 }
 0x286   : > { %v1674_v3 = vadd.f32 %v1673_v17, %v5353_v30  ;;  %6302 = vst [vmem:[#allocation33_spill] sm:$0xff] %v5680_v63  ;;  %2638 = vmatpush.bf16.msrb.mxu1 %v5680_v63  ;;  %v1937_v17 = vmax.f32 %v1706_v31, 0.0  ;;  %v4222_v31 = vld [vmem:[#allocation2 + $0x154] sm:$0xf] }
 0x287   : > { %v5682_v40 = vpack.c.bf16 %v1942_v56, %v1938_v28 }
 0x288   : > { %v1708_v22 = vadd.f32 %v1707_v36, %v1674_v3  ;;  %v1744_v11 = vpop.f32.mrf.mxu0  ;;  %v1778_v10 = vpop.f32.mrf.mxu1  ;;  %v4188_v36 = vld [vmem:[#allocation2 + $0x44] sm:$0xf] }
 0x289   : > { %6303 = vst [vmem:[#allocation34_spill] sm:$0xff] %v5682_v40  ;;  %v1745_v6 = vadd.f32 %v1744_v11, %v5347_v20  ;;  %v5694_v14 = vor.u32 %v4188_v36, %v3796_v51  ;;  %v4204_v11 = vld [vmem:[#allocation2 + $0xc4] sm:$0xf] }
 0x28a   : > { %v1941_v12 = vmax.f32 %v1708_v22, 0.0  ;;  %2407 = vmatmul.bf16.vlgmr.msra.gmra.mxu2 %v5367_v19  ;;  %2441 = vmatmul.bf16.vlgmr.msra.gmra.mxu3 %v5360_v29  ;;  %v3932_v22 = vld [vmem:[#allocation2 + $0x158] sm:$0xf0] }
 0x28b   : > { %v1779_v4 = vadd.f32 %v1778_v10, %v1745_v6  ;;  %2475 = vmatmul.bf16.vlgmr.msra.gmra.mxu0 %v5507_v24  ;;  %2509 = vmatmul.bf16.vlgmr.msra.gmra.mxu1 %v5490_v44  ;;  %6305 = vst [vmem:[#allocation36_spill] sm:$0xff] %v5694_v14  ;;  %v5696_v40 = vor.u32 %v4222_v31, %v3932_v22  ;;  %v3860_v10 = vld [vmem:[#allocation2 + $0xc8] sm:$0xf0]  ;;  %v4238_v6 = vld [vmem:[#allocation2 + $0x1d4] sm:$0xf] }
 0x28c   : > { %v5691_v56 = vpack.c.bf16 %v1941_v12, %v1937_v17  ;;  %2538 = vmatpush.bf16.msrb.mxu2 %v5694_v14  ;;  %v5699_v17 = vor.u32 %v4204_v11, %v3860_v10  ;;  %v4186_v22 = vld [vmem:[#allocation2 + $0x34] sm:$0xf] }
 0x28d   : > { %v1676_v3 = vpop.f32.mrf.mxu2  ;;  %v1710_v28 = vpop.f32.mrf.mxu3  ;;  %6306 = vst [vmem:[#allocation37_spill] sm:$0xff] %v5696_v40  ;;  %2605 = vmatpush.bf16.msrb.mxu0 %v5696_v40  ;;  %v1946_v51 = vmax.f32 %v1779_v4, 0.0  ;;  %v5708_v10 = vor.u32 %v4186_v22, %v3788_v53  ;;  %v3852_v40 = vld [vmem:[#allocation2 + $0xb8] sm:$0xf0] }
 0x28e   : > { %6304 = vst [vmem:[#allocation35_spill] sm:$0xff] %v5691_v56  ;;  %v1677_v37 = vadd.f32 %v1676_v3, %v5353_v30  ;;  %v5701_v56 = vor.u32 %v4238_v6, %v3996_v54  ;;  %2572 = vmatpush.bf16.msrb.mxu3 %v5699_v17  ;;  %v4220_v54 = vld [vmem:[#allocation2 + $0x144] sm:$0xf]  ;;  %v3924_v6 = vld [vmem:[#allocation2 + $0x148] sm:$0xf0] }
 0x28f   : > { %6307 = vst [vmem:[#allocation38_spill] sm:$0xff] %v5699_v17  ;;  %v5710_v14 = vor.u32 %v4220_v54, %v3924_v6  ;;  %v4236_v17 = vld [vmem:[#allocation2 + $0x1c4] sm:$0xf]  ;;  %v4218_v6 = vld [vmem:[#allocation2 + $0x134] sm:$0xf] }
 0x290   : > { %v1711_v63 = vadd.f32 %v1710_v28, %v1677_v37  ;;  %v1746_v18 = vpop.f32.mrf.mxu0  ;;  %v1780_v12 = vpop.f32.mrf.mxu1  ;;  %6308 = vst [vmem:[#allocation39_spill] sm:$0xff] %v5701_v56  ;;  %2639 = vmatpush.bf16.msrb.mxu1 %v5701_v56  ;;  %2539 = vmatpush.bf16.msrb.mxu2 %v5708_v10 }
 0x291   : > { %v1747_v3 = vadd.f32 %v1746_v18, %v5347_v20  ;;  %v4202_v18 = vld [vmem:[#allocation2 + $0xb4] sm:$0xf]  ;;  %2606 = vmatpush.bf16.msrb.mxu0 %v5710_v14 }
 0x292   : > { %v1945_v22 = vmax.f32 %v1711_v63, 0.0  ;;  %v3780_v63 = vld [vmem:[#allocation2 + $0x28] sm:$0xf0] }
 0x293   : > { %v1781_v36 = vadd.f32 %v1780_v12, %v1747_v3 }
 0x295   : > { %v1950_v31 = vmax.f32 %v1781_v36, 0.0  ;;  %v1678_v28 = vpop.f32.mrf.mxu2  ;;  %v1712_v37 = vpop.f32.mrf.mxu3  ;;  %v5715_v36 = vor.u32 %v4202_v18, %v3852_v40  ;;  %v3916_v18 = vld [vmem:[#allocation2 + $0x138] sm:$0xf0] }
 0x296   : > { %v1679_v11 = vadd.f32 %v1678_v28, %v5353_v30  ;;  %v5717_v28 = vor.u32 %v4236_v17, %v3988_v16 }
 0x297   : > { %v5712_v56 = vpack.c.bf16 %v1950_v31, %v1946_v51  ;;  %6310 = vst [vmem:[#allocation41_spill] sm:$0xff] %v5715_v36  ;;  %2573 = vmatpush.bf16.msrb.mxu3 %v5715_v36  ;;  %v4184_v31 = vld [vmem:[#allocation2 + $0x24] sm:$0xf] }
 0x298   : > { %v1713_v4 = vadd.f32 %v1712_v37, %v1679_v11  ;;  %v1749_v12 = vpop.f32.mrf.mxu0  ;;  %v1783_v3 = vpop.f32.mrf.mxu1  ;;  %2640 = vmatpush.bf16.msrb.mxu1 %v5717_v28  ;;  %v5730_v11 = vor.u32 %v4184_v31, %v3780_v63  ;;  %v3980_v31 = vld [vmem:[#allocation2 + $0x1b8] sm:$0xf0] }
 0x299   : > { %6309 = vst [vmem:[#allocation40_spill] sm:$0xff] %v5712_v56  ;;  %v1750_v53 = vadd.f32 %v1749_v12, %v5347_v20  ;;  %v3844_v56 = vld [vmem:[#allocation2 + $0xa8] sm:$0xf0] }
 0x29a   : > { %v1949_v54 = vmax.f32 %v1713_v4, 0.0  ;;  %2412 = vmatmul.bf16.gmra.mxu2 %v5391_v48  ;;  %2446 = vmatmul.bf16.gmra.mxu3 %v5380_v52  ;;  %6312 = vst [vmem:[#allocation43_spill] sm:$0xff] %v5730_v11  ;;  %v5732_v4 = vor.u32 %v4218_v6, %v3916_v18 }
 0x29b   : > { %v1784_v51 = vadd.f32 %v1783_v3, %v1750_v53  ;;  %2480 = vmatmul.bf16.gmra.mxu0 %v5535_v38  ;;  %2514 = vmatmul.bf16.gmra.mxu1 %v5526_v60 }
 0x29c   : > { %v5727_v16 = vpack.c.bf16 %v1949_v54, %v1945_v22  ;;  %6313 = vst [vmem:[#allocation44_spill] sm:$0xff] %v5732_v4  ;;  %2540 = vmatpush.bf16.msrb.mxu2 %v5730_v11  ;;  %2607 = vmatpush.bf16.msrb.mxu0 %v5732_v4  ;;  %v4200_v54 = vld [vmem:[#allocation2 + $0xa4] sm:$0xf] }
 0x29d   : > { %v1681_v40 = vpop.f32.mrf.mxu2  ;;  %v1715_v17 = vpop.f32.mrf.mxu3  ;;  %v5737_v36 = vor.u32 %v4200_v54, %v3844_v56  ;;  %v1954_v6 = vmax.f32 %v1784_v51, 0.0 }
 0x29e   : > { %6311 = vst [vmem:[#allocation42_spill] sm:$0xff] %v5727_v16  ;;  %v1682_v37 = vadd.f32 %v1681_v40, %v5353_v30  ;;  %v4234_v40 = vld [vmem:[#allocation2 + $0x1b4] sm:$0xf] }
 0x29f   : > { %v5739_v63 = vor.u32 %v4234_v40, %v3980_v31  ;;  %2574 = vmatpush.bf16.msrb.mxu3 %v5737_v36  ;;  %v3772_v31 = vld [vmem:[#allocation2 + $0x18] sm:$0xf0] }
 0x2a0   : > { %v1716_v12 = vadd.f32 %v1715_v17, %v1682_v37  ;;  %v1751_v3 = vpop.f32.mrf.mxu0  ;;  %v1785_v53 = vpop.f32.mrf.mxu1 }
 0x2a1   : > { %v1752_v22 = vadd.f32 %v1751_v3, %v5347_v20  ;;  %2641 = vmatpush.bf16.msrb.mxu1 %v5739_v63 }
 0x2a2   : > { %v1953_v54 = vmax.f32 %v1716_v12, 0.0  ;;  %v3908_v12 = vld [vmem:[#allocation2 + $0x128] sm:$0xf0] }
 0x2a3   : > { %v1786_v16 = vadd.f32 %v1785_v53, %v1752_v22 }
 0x2a5   : > { %v1958_v18 = vmax.f32 %v1786_v16, 0.0  ;;  %v1683_v17 = vpop.f32.mrf.mxu2  ;;  %v1717_v37 = vpop.f32.mrf.mxu3  ;;  %v4182_v16 = vld [vmem:[#allocation2 + $0x14] sm:$0xf] }
 0x2a6   : > { %v1684_v11 = vadd.f32 %v1683_v17, %v5353_v30 }
 0x2a7   : > { %v5744_v3 = vpack.c.bf16 %v1958_v18, %v1954_v6  ;;  %v4216_v6 = vld [vmem:[#allocation2 + $0x124] sm:$0xf] }
 0x2a8   : > { %v1718_v4 = vadd.f32 %v1717_v37, %v1684_v11  ;;  %v1754_v53 = vpop.f32.mrf.mxu0  ;;  %v1788_v56 = vpop.f32.mrf.mxu1  ;;  %v5753_v37 = vor.u32 %v4182_v16, %v3772_v31  ;;  %v4214_v31 = vld [vmem:[#allocation2 + $0x114] sm:$0xf] }
 0x2a9   : > { %6314 = vst [vmem:[#allocation45_spill] sm:$0xff] %v5744_v3  ;;  %v1755_v22 = vadd.f32 %v1754_v53, %v5347_v20  ;;  %v5756_v3 = vor.u32 %v4216_v6, %v3908_v12  ;;  %v3900_v6 = vld [vmem:[#allocation2 + $0x118] sm:$0xf0] }
 0x2aa   : > { %v1957_v40 = vmax.f32 %v1718_v4, 0.0  ;;  %2417 = vmatmul.bf16.gmra.mxu2 %v5415_v58  ;;  %2451 = vmatmul.bf16.gmra.mxu3 %v5404_v34  ;;  %6316 = vst [vmem:[#allocation47_spill] sm:$0xff] %v5753_v37  ;;  %v4198_v4 = vld [vmem:[#allocation2 + $0x94] sm:$0xf]  ;;  %v5767_v12 = vor.u32 %v4214_v31, %v3900_v6  ;;  %v4196_v31 = vld [vmem:[#allocation2 + $0x84] sm:$0xf] }
 0x2ab   : > { %v1789_v51 = vadd.f32 %v1788_v56, %v1755_v22  ;;  %2485 = vmatmul.bf16.gmra.mxu0 %v5571_v42  ;;  %2519 = vmatmul.bf16.gmra.mxu1 %v5556_v43  ;;  %6317 = vst [vmem:[#allocation48_spill] sm:$0xff] %v5756_v3  ;;  %v3836_v56 = vld [vmem:[#allocation2 + $0x98] sm:$0xf0]  ;;  %v4232_v22 = vld [vmem:[#allocation2 + $0x1a4] sm:$0xf] }
 0x2ac   : > { %v5751_v18 = vpack.c.bf16 %v1957_v40, %v1953_v54  ;;  %v3972_v42 = vld [vmem:[#allocation2 + $0x1a8] sm:$0xf0]  ;;  %2541 = vmatpush.bf16.msrb.mxu2 %v5753_v37  ;;  %v5759_v43 = vor.u32 %v4198_v4, %v3836_v56  ;;  %2608 = vmatpush.bf16.msrb.mxu0 %v5756_v3  ;;  %6320 = vst [vmem:[#allocation51_spill] sm:$0xff] %v5767_v12  ;;  %v3964_v4 = vld [vmem:[#allocation2 + $0x198] sm:$0xf0] }
 0x2ad   : > { %v1686_v11 = vpop.f32.mrf.mxu2  ;;  %v1720_v17 = vpop.f32.mrf.mxu3  ;;  %v5761_v34 = vor.u32 %v4232_v22, %v3972_v42  ;;  %v3828_v6 = vld [vmem:[#allocation2 + $0x88] sm:$0xf0] }
 0x2ae   : > { %6315 = vst [vmem:[#allocation46_spill] sm:$0xff] %v5751_v18  ;;  %v1687_v53 = vadd.f32 %v1686_v11, %v5353_v30  ;;  %2575 = vmatpush.bf16.msrb.mxu3 %v5759_v43  ;;  %v4230_v11 = vld [vmem:[#allocation2 + $0x194] sm:$0xf] }
 0x2af   : > { %6318 = vst [vmem:[#allocation49_spill] sm:$0xff] %v5759_v43  ;;  %2642 = vmatpush.bf16.msrb.mxu1 %v5761_v34  ;;  %v5769_v42 = vor.u32 %v4230_v11, %v3964_v4  ;;  %v4228_v11 = vld [vmem:[#allocation2 + $0x184] sm:$0xf]  ;;  %v3956_v4 = vld [vmem:[#allocation2 + $0x188] sm:$0xf0] }
 0x2b0   : > { %6319 = vst [vmem:[#allocation50_spill] sm:$0xff] %v5761_v34  ;;  %v1721_v54 = vadd.f32 %v1720_v17, %v1687_v53  ;;  %v1756_v40 = vpop.f32.mrf.mxu0  ;;  %v1790_v18 = vpop.f32.mrf.mxu1  ;;  %2609 = vmatpush.bf16.msrb.mxu0 %v5767_v12  ;;  %v1962_v17 = vmax.f32 %v1789_v51, 0.0  ;;  %v4212_v34 = vld [vmem:[#allocation2 + $0x104] sm:$0xf] }
 0x2b1   : > { %v1757_v16 = vadd.f32 %v1756_v40, %v5347_v20  ;;  %6321 = vst [vmem:[#allocation52_spill] sm:$0xff] %v5769_v42  ;;  %v4180_v20 = vld [vmem:[#allocation2 + $0x4] sm:$0xf]  ;;  %v3764_v40 = vld [vmem:[#allocation2 + $0x8] sm:$0xf0] }
 0x2b2   : > { %v5774_v37 = vor.u32 %v4180_v20, %v3764_v40  ;;  %v1961_v20 = vmax.f32 %v1721_v54, 0.0 }
 0x2b3   : > { %v1791_v56 = vadd.f32 %v1790_v18, %v1757_v16  ;;  %2643 = vmatpush.bf16.msrb.mxu1 %v5769_v42  ;;  %v5776_v18 = vor.u32 %v4196_v31, %v3828_v6  ;;  %v3892_v16 = vld [vmem:[#allocation2 + $0x108] sm:$0xf0] }
 0x2b4   : > { %2542 = vmatpush.bf16.msrb.mxu2 %v5774_v37  ;;  %v5781_v42 = vor.u32 %v4212_v34, %v3892_v16 }
 0x2b5   : > { %v1966_v53 = vmax.f32 %v1791_v56, 0.0  ;;  %v1688_v22 = vpop.f32.mrf.mxu2  ;;  %v1722_v58 = vpop.f32.mrf.mxu3  ;;  %2576 = vmatpush.bf16.msrb.mxu3 %v5776_v18 }
 0x2b6   : > { %v1689_v43 = vadd.f32 %v1688_v22, %v5353_v30  ;;  %v5783_v30 = vor.u32 %v4228_v11, %v3956_v4  ;;  %2610 = vmatpush.bf16.msrb.mxu0 %v5781_v42  ;;  %v6323_v4 = vld [vmem:[#allocation10_spill] sm:$0xff] }
 0x2b7   : > { %v5778_v51 = vpack.c.bf16 %v1966_v53, %v1962_v17 }
 0x2b8   : > { %v1723_v56 = vadd.f32 %v1722_v58, %v1689_v43  ;;  %v1870_v12 = vpop.f32.mrf.mxu0  ;;  %v1904_v3 = vpop.f32.mrf.mxu1  ;;  %2691 = vmatpush.bf16.msra.mxu2 %v5472_v23  ;;  %2644 = vmatpush.bf16.msrb.mxu1 %v5783_v30 }
 0x2b9   : > { %v1871_v22 = vadd.f32 %v1870_v12, %v5452_v35  ;;  %2725 = vmatpush.bf16.msra.mxu3 %v5476_v50 }
 0x2ba   : > { %v1965_v40 = vmax.f32 %v1723_v56, 0.0  ;;  %2422 = vmatmul.bf16.gmra.mxu2 %v5439_v33  ;;  %2456 = vmatmul.bf16.gmra.mxu3 %v5428_v45 }
 0x2bb   : > { %v1905_v58 = vadd.f32 %v1904_v3, %v1871_v22  ;;  %2490 = vmatmul.bf16.gmra.mxu0 %v5595_v13  ;;  %2524 = vmatmul.bf16.gmra.mxu1 %v5588_v0 }
 0x2bc   : > { %v5794_v34 = vpack.c.bf16 %v1965_v40, %v1961_v20  ;;  %2692 = vmatpush.bf16.msra.mxu2 %v5488_v21  ;;  %2759 = vmatpush.bf16.msra.mxu0 %v5492_v61 }
 0x2bd   : > { %v1802_v43 = vpop.f32.mrf.mxu2  ;;  %v1836_v12 = vpop.f32.mrf.mxu3  ;;  %2793 = vmatpush.bf16.msra.mxu1 %v5509_v49  ;;  %2726 = vmatpush.bf16.msra.mxu3 %v5505_v32  ;;  %v1932_v21 = vmax.f32 %v1905_v58, 0.0  ;;  %v6324_v58 = vld [vmem:[#allocation7_spill] sm:$0xff] }
 0x2be   : > { %v1803_v23 = vadd.f32 %v1802_v43, %v5465_v5  ;;  %v6325_v43 = vld [vmem:[#allocation14_spill] sm:$0xff] }
 0x2c0   : > { %v1837_v3 = vadd.f32 %v1836_v12, %v1803_v23  ;;  %v1872_v54 = vpop.f32.mrf.mxu0  ;;  %v1906_v17 = vpop.f32.mrf.mxu1  ;;  %2693 = vmatpush.bf16.msra.mxu2 %v5515_v62  ;;  %2760 = vmatpush.bf16.msra.mxu0 %v5517_v8 }
 0x2c1   : > { %v1873_v53 = vadd.f32 %v1872_v54, %v5452_v35  ;;  %2794 = vmatpush.bf16.msra.mxu1 %v5524_v41  ;;  %2727 = vmatpush.bf16.msra.mxu3 %v5522_v15  ;;  %v6329_v54 = vld [vmem:[#allocation22_spill] sm:$0xff] }
 0x2c2   : > { %v1931_v15 = vmax.f32 %v1837_v3, 0.0  ;;  %v6328_v3 = vld [vmem:[#allocation13_spill] sm:$0xff] }
 0x2c3   : > { %v1907_v50 = vadd.f32 %v1906_v17, %v1873_v53 }
 0x2c4   : > { %2694 = vmatpush.bf16.msra.mxu2 %v5538_v26  ;;  %2761 = vmatpush.bf16.msra.mxu0 %v5540_v2 }
 0x2c5   : > { %v1936_v31 = vmax.f32 %v1907_v50, 0.0  ;;  %v1804_v6 = vpop.f32.mrf.mxu2  ;;  %v1838_v61 = vpop.f32.mrf.mxu3  ;;  %2795 = vmatpush.bf16.msra.mxu1 %v5545_v57  ;;  %2728 = vmatpush.bf16.msra.mxu3 %v5543_v27 }
 0x2c6   : > { %v1805_v49 = vadd.f32 %v1804_v6, %v5465_v5 }
 0x2c7   : > { %v5811_v32 = vpack.c.bf16 %v1936_v31, %v1932_v21  ;;  %v6330_v31 = vld [vmem:[#allocation15_spill] sm:$0xff] }
 0x2c8   : > { %v1839_v62 = vadd.f32 %v1838_v61, %v1805_v49  ;;  %v1875_v8 = vpop.f32.mrf.mxu0  ;;  %v1909_v41 = vpop.f32.mrf.mxu1  ;;  %2695 = vmatpush.bf16.msra.mxu2 %v5552_v59  ;;  %2762 = vmatpush.bf16.msra.mxu0 %v5554_v1  ;;  %v6322_v59 = vld [vmem:[#allocation12_spill] sm:$0xff]  ;;  %v6326_v1 = vld [vmem:[#allocation11_spill] sm:$0xff] }
 0x2c9   : > { %v1876_v16 = vadd.f32 %v1875_v8, %v5452_v35  ;;  %2796 = vmatpush.bf16.msra.mxu1 %v5561_v46  ;;  %2729 = vmatpush.bf16.msra.mxu3 %v6322_v59  ;;  %v6327_v46 = vld [vmem:[#allocation16_spill] sm:$0xff]  ;;  %v6335_v59 = vld [vmem:[#allocation19_spill] sm:$0xff] }
 0x2ca   : > { %v1935_v11 = vmax.f32 %v1839_v62, 0.0  ;;  %2427 = vmatmul.bf16.gmra.mxu2 %v5469_v7  ;;  %2461 = vmatmul.bf16.gmra.mxu3 %v5455_v55 }
 0x2cb   : > { %v1910_v26 = vadd.f32 %v1909_v41, %v1876_v16  ;;  %2495 = vmatmul.bf16.gmra.mxu0 %v5637_v39  ;;  %2529 = vmatmul.bf16.gmra.mxu1 %v5622_v47  ;;  %v6331_v41 = vld [vmem:[#allocation24_spill] sm:$0xff]  ;;  %v6332_v16 = vld [vmem:[#allocation21_spill] sm:$0xff] }
 0x2cc   : > { %v5820_v2 = vpack.c.bf16 %v1935_v11, %v1931_v15  ;;  %2696 = vmatpush.bf16.msra.mxu2 %v6323_v4  ;;  %2763 = vmatpush.bf16.msra.mxu0 %v6324_v58  ;;  %v6333_v11 = vld [vmem:[#allocation23_spill] sm:$0xff] }
 0x2cd   : > { %v1807_v27 = vpop.f32.mrf.mxu2  ;;  %v1841_v57 = vpop.f32.mrf.mxu3  ;;  %2797 = vmatpush.bf16.msra.mxu1 %v6325_v43  ;;  %2730 = vmatpush.bf16.msra.mxu3 %v6326_v1  ;;  %v1940_v17 = vmax.f32 %v1910_v26, 0.0  ;;  %v6340_v1 = vld [vmem:[#allocation27_spill] sm:$0xff] }
 0x2ce   : > { %v1808_v56 = vadd.f32 %v1807_v27, %v5465_v5 }
 0x2d0   : > { %v1842_v22 = vadd.f32 %v1841_v57, %v1808_v56  ;;  %v1877_v20 = vpop.f32.mrf.mxu0  ;;  %v1911_v40 = vpop.f32.mrf.mxu1  ;;  %2697 = vmatpush.bf16.msra.mxu2 %v6327_v46  ;;  %2764 = vmatpush.bf16.msra.mxu0 %v6328_v3  ;;  %v6334_v57 = vld [vmem:[#allocation25_spill] sm:$0xff]  ;;  %v6341_v46 = vld [vmem:[#allocation31_spill] sm:$0xff] }
 0x2d1   : > { %v1878_v12 = vadd.f32 %v1877_v20, %v5452_v35  ;;  %2798 = vmatpush.bf16.msra.mxu1 %v6329_v54  ;;  %2731 = vmatpush.bf16.msra.mxu3 %v6330_v31 }
 0x2d2   : > { %v1939_v26 = vmax.f32 %v1842_v22, 0.0  ;;  %v6337_v22 = vld [vmem:[#allocation17_spill] sm:$0xff] }
 0x2d3   : > { %v1912_v23 = vadd.f32 %v1911_v40, %v1878_v12  ;;  %v6336_v40 = vld [vmem:[#allocation20_spill] sm:$0xff]  ;;  %v6339_v12 = vld [vmem:[#allocation18_spill] sm:$0xff] }
 0x2d4   : > { %2698 = vmatpush.bf16.msra.mxu2 %v5618_v25  ;;  %2765 = vmatpush.bf16.msra.mxu0 %v6331_v41 }
 0x2d5   : > { %v1944_v53 = vmax.f32 %v1912_v23, 0.0  ;;  %v1809_v50 = vpop.f32.mrf.mxu2  ;;  %v1843_v21 = vpop.f32.mrf.mxu3  ;;  %2799 = vmatpush.bf16.msra.mxu1 %v6332_v16  ;;  %2732 = vmatpush.bf16.msra.mxu3 %v6333_v11  ;;  %v6342_v23 = vld [vmem:[#allocation33_spill] sm:$0xff]  ;;  %v6347_v11 = vld [vmem:[#allocation36_spill] sm:$0xff] }
 0x2d6   : > { %v1810_v6 = vadd.f32 %v1809_v50, %v5465_v5  ;;  %v6343_v50 = vld [vmem:[#allocation30_spill] sm:$0xff] }
 0x2d7   : > { %v5837_v61 = vpack.c.bf16 %v1944_v53, %v1940_v17 }
 0x2d8   : > { %v1844_v49 = vadd.f32 %v1843_v21, %v1810_v6  ;;  %v1880_v62 = vpop.f32.mrf.mxu0  ;;  %v1914_v8 = vpop.f32.mrf.mxu1  ;;  %2766 = vmatpush.bf16.msra.mxu0 %v6334_v57  ;;  %v6344_v21 = vld [vmem:[#allocation32_spill] sm:$0xff]  ;;  %v6345_v6 = vld [vmem:[#allocation37_spill] sm:$0xff] }
 0x2d9   : > { %v1881_v15 = vadd.f32 %v1880_v62, %v5452_v35  ;;  %2800 = vmatpush.bf16.msra.mxu1 %v6335_v59 }
 0x2da   : > { %v1943_v27 = vmax.f32 %v1844_v49, 0.0  ;;  %2543 = vmatmul.bf16.vlgmr.msrb.gmra.mxu2 %v5367_v19  ;;  %2577 = vmatmul.bf16.vlgmr.msrb.gmra.mxu3 %v5360_v29  ;;  %v6338_v29 = vld [vmem:[#allocation29_spill] sm:$0xff]  ;;  %v6346_v49 = vld [vmem:[#allocation39_spill] sm:$0xff] }
 0x2db   : > { %v1915_v25 = vadd.f32 %v1914_v8, %v1881_v15  ;;  %2611 = vmatmul.bf16.vlgmr.msrb.gmra.mxu0 %v5507_v24  ;;  %2645 = vmatmul.bf16.vlgmr.msrb.gmra.mxu1 %v5490_v44 }
 0x2dc   : > { %v5849_v4 = vpack.c.bf16 %v1943_v27, %v1939_v26  ;;  %2827 = vmatpush.bf16.msrb.mxu2 %v6336_v40  ;;  %2861 = vmatpush.bf16.msrb.mxu3 %v6337_v22  ;;  %v6348_v26 = vld [vmem:[#allocation38_spill] sm:$0xff]  ;;  %v6349_v40 = vld [vmem:[#allocation41_spill] sm:$0xff] }
 0x2dd   : > { %v1812_v56 = vpop.f32.mrf.mxu2  ;;  %v1846_v20 = vpop.f32.mrf.mxu3  ;;  %2895 = vmatpush.bf16.msrb.mxu0 %v5652_v9  ;;  %2929 = vmatpush.bf16.msrb.mxu1 %v6338_v29  ;;  %v1948_v54 = vmax.f32 %v1915_v25, 0.0  ;;  %v6352_v29 = vld [vmem:[#allocation48_spill] sm:$0xff] }
 0x2de   : > { %v1813_v19 = vadd.f32 %v1812_v56, %v5465_v5 }
 0x2e0   : > { %v1847_v24 = vadd.f32 %v1846_v20, %v1813_v19  ;;  %v1882_v44 = vpop.f32.mrf.mxu0  ;;  %v1916_v58 = vpop.f32.mrf.mxu1  ;;  %2828 = vmatpush.bf16.msrb.mxu2 %v6339_v12  ;;  %2862 = vmatpush.bf16.msrb.mxu3 %v6340_v1  ;;  %v6354_v12 = vld [vmem:[#allocation47_spill] sm:$0xff]  ;;  %v6355_v1 = vld [vmem:[#allocation49_spill] sm:$0xff] }
 0x2e1   : > { %v1883_v43 = vadd.f32 %v1882_v44, %v5452_v35  ;;  %2896 = vmatpush.bf16.msrb.mxu0 %v6341_v46  ;;  %2930 = vmatpush.bf16.msrb.mxu1 %v6342_v23 }
 0x2e2   : > { %v1947_v27 = vmax.f32 %v1847_v24, 0.0 }
 0x2e3   : > { %v1917_v3 = vadd.f32 %v1916_v58, %v1883_v43 }
 0x2e4   : > { %2829 = vmatpush.bf16.msrb.mxu2 %v6343_v50  ;;  %2863 = vmatpush.bf16.msrb.mxu3 %v6344_v21  ;;  %v6358_v21 = vld [vmem:[#allocation6_spill] sm:$0xff] }
 0x2e5   : > { %v1952_v17 = vmax.f32 %v1917_v3, 0.0  ;;  %v1814_v53 = vpop.f32.mrf.mxu2  ;;  %v1848_v9 = vpop.f32.mrf.mxu3  ;;  %2897 = vmatpush.bf16.msrb.mxu0 %v6345_v6  ;;  %2931 = vmatpush.bf16.msrb.mxu1 %v6346_v49  ;;  %v6360_v49 = vld [vmem:[#allocation9_spill] sm:$0xff] }
 0x2e6   : > { %v1815_v31 = vadd.f32 %v1814_v53, %v5465_v5 }
 0x2e7   : > { %v5866_v62 = vpack.c.bf16 %v1952_v17, %v1948_v54  ;;  %v6356_v54 = vld [vmem:[#allocation51_spill] sm:$0xff]  ;;  %v6357_v17 = vld [vmem:[#allocation52_spill] sm:$0xff] }
 0x2e8   : > { %v1849_v8 = vadd.f32 %v1848_v9, %v1815_v31  ;;  %v1885_v41 = vpop.f32.mrf.mxu0  ;;  %v1919_v16 = vpop.f32.mrf.mxu1  ;;  %2830 = vmatpush.bf16.msrb.mxu2 %v6347_v11  ;;  %2864 = vmatpush.bf16.msrb.mxu3 %v6348_v26  ;;  %v6359_v31 = vld [vmem:[#allocation5_spill] sm:$0xff] }
 0x2e9   : > { %v1886_v15 = vadd.f32 %v1885_v41, %v5452_v35  ;;  %2898 = vmatpush.bf16.msrb.mxu0 %v5710_v14  ;;  %2932 = vmatpush.bf16.msrb.mxu1 %v5717_v28  ;;  %v6351_v14 = vld [vmem:[#allocation43_spill] sm:$0xff] }
 0x2ea   : > { %v1951_v25 = vmax.f32 %v1849_v8, 0.0  ;;  %2548 = vmatmul.bf16.gmra.mxu2 %v5391_v48  ;;  %2582 = vmatmul.bf16.gmra.mxu3 %v5380_v52  ;;  %v6361_v8 = vld [vmem:[#allocation8_spill] sm:$0xff] }
 0x2eb   : > { %v1920_v57 = vadd.f32 %v1919_v16, %v1886_v15  ;;  %2616 = vmatmul.bf16.gmra.mxu0 %v5535_v38  ;;  %2650 = vmatmul.bf16.gmra.mxu1 %v5526_v60  ;;  %v6350_v38 = vld [vmem:[#allocation44_spill] sm:$0xff] }
 0x2ec   : > { %v5875_v59 = vpack.c.bf16 %v1951_v25, %v1947_v27  ;;  %2831 = vmatpush.bf16.msrb.mxu2 %v5708_v10  ;;  %2865 = vmatpush.bf16.msrb.mxu3 %v6349_v40  ;;  %v6353_v10 = vld [vmem:[#allocation50_spill] sm:$0xff] }
 0x2ed   : > { %v1817_v56 = vpop.f32.mrf.mxu2  ;;  %v1851_v20 = vpop.f32.mrf.mxu3  ;;  %2899 = vmatpush.bf16.msrb.mxu0 %v6350_v38  ;;  %2933 = vmatpush.bf16.msrb.mxu1 %v5739_v63  ;;  %v1956_v24 = vmax.f32 %v1920_v57, 0.0 }
 0x2ee   : > { %v1818_v48 = vadd.f32 %v1817_v56, %v5465_v5 }
 0x2f0   : > { %v1852_v52 = vadd.f32 %v1851_v20, %v1818_v48  ;;  %v1887_v22 = vpop.f32.mrf.mxu0  ;;  %v1921_v19 = vpop.f32.mrf.mxu1  ;;  %2832 = vmatpush.bf16.msrb.mxu2 %v6351_v14  ;;  %2866 = vmatpush.bf16.msrb.mxu3 %v5737_v36 }
 0x2f1   : > { %v1888_v60 = vadd.f32 %v1887_v22, %v5452_v35  ;;  %2900 = vmatpush.bf16.msrb.mxu0 %v6352_v29  ;;  %2934 = vmatpush.bf16.msrb.mxu1 %v6353_v10 }
 0x2f2   : > { %v1955_v9 = vmax.f32 %v1852_v52, 0.0 }
 0x2f3   : > { %v1922_v28 = vadd.f32 %v1921_v19, %v1888_v60 }
 0x2f4   : > { %2833 = vmatpush.bf16.msrb.mxu2 %v6354_v12  ;;  %2867 = vmatpush.bf16.msrb.mxu3 %v6355_v1 }
 0x2f5   : > { %v1960_v44 = vmax.f32 %v1922_v28, 0.0  ;;  %v1819_v58 = vpop.f32.mrf.mxu2  ;;  %v1853_v43 = vpop.f32.mrf.mxu3  ;;  %2901 = vmatpush.bf16.msrb.mxu0 %v6356_v54  ;;  %2935 = vmatpush.bf16.msrb.mxu1 %v6357_v17 }
 0x2f6   : > { %v1820_v63 = vadd.f32 %v1819_v58, %v5465_v5 }
 0x2f7   : > { %v5892_v46 = vpack.c.bf16 %v1960_v44, %v1956_v24 }
 0x2f8   : > { %v1854_v23 = vadd.f32 %v1853_v43, %v1820_v63  ;;  %v1890_v3 = vpop.f32.mrf.mxu0  ;;  %v1924_v36 = vpop.f32.mrf.mxu1  ;;  %2834 = vmatpush.bf16.msrb.mxu2 %v5774_v37  ;;  %2868 = vmatpush.bf16.msrb.mxu3 %v5776_v18 }
 0x2f9   : > { %v1891_v53 = vadd.f32 %v1890_v3, %v5452_v35  ;;  %2902 = vmatpush.bf16.msrb.mxu0 %v5781_v42  ;;  %2936 = vmatpush.bf16.msrb.mxu1 %v5783_v30  ;;  %v5913_v42 = vld [vmem:[%s6153_s8] sm:$0x3] }
 0x2fa   : > { %v1959_v50 = vmax.f32 %v1854_v23, 0.0  ;;  %2553 = vmatmul.bf16.gmra.mxu2 %v6358_v21  ;;  %2587 = vmatmul.bf16.gmra.mxu3 %v6359_v31 }
 0x2fb   : > { %v1925_v6 = vadd.f32 %v1924_v36, %v1891_v53  ;;  %2621 = vmatmul.bf16.gmra.mxu0 %v6360_v49  ;;  %2655 = vmatmul.bf16.gmra.mxu1 %v6361_v8 }
 0x2fc   : > { %v5903_v41 = vpack.c.bf16 %v1959_v50, %v1955_v9 }
 0x2fd   : > { %v1822_v37 = vpop.f32.mrf.mxu2  ;;  %v1856_v16 = vpop.f32.mrf.mxu3  ;;  %v1964_v57 = vmax.f32 %v1925_v6, 0.0 }
 0x2fe   : > { %v1823_v18 = vadd.f32 %v1822_v37, %v5465_v5 }
 0x300   : > { %v1857_v15 = vadd.f32 %v1856_v16, %v1823_v18  ;;  %v1892_v11 = vpop.f32.mrf.mxu0  ;;  %v1926_v26 = vpop.f32.mrf.mxu1  ;;  %v6362_v18 = vld [vmem:[#allocation28_spill] sm:$0xff] }
 0x301   : > { %v1893_v27 = vadd.f32 %v1892_v11, %v5452_v35  ;;  %v5920_v35 = vperm.slane %v5913_v42, 0 }
 0x302   : > { %v1963_v38 = vmax.f32 %v1857_v15, 0.0  ;;  %v6363_v15 = vld [vmem:[#allocation26_spill] sm:$0xff] }
 0x303   : > { %v1927_v25 = vadd.f32 %v1926_v26, %v1893_v27 }
 0x305   : > { %v1968_v56 = vmax.f32 %v1927_v25, 0.0  ;;  %v1824_v20 = vpop.f32.mrf.mxu2  ;;  %v1858_v40 = vpop.f32.mrf.mxu3 }
 0x306   : > { %v1825_v48 = vadd.f32 %v1824_v20, %v5465_v5 }
 0x307   : > { %v5915_v30 = vpack.c.bf16 %v1968_v56, %v1964_v57 }
 0x308   : > { %v1859_v52 = vadd.f32 %v1858_v40, %v1825_v48  ;;  %v2476_v22 = vpop.f32.mrf.mxu0  ;;  %v2510_v19 = vpop.f32.mrf.mxu1 }
 0x30a   : > { %v1967_v60 = vmax.f32 %v1859_v52, 0.0  ;;  %2558 = vmatmul.bf16.gmra.mxu2 %v5439_v33  ;;  %2592 = vmatmul.bf16.gmra.mxu3 %v5428_v45 }
 0x30b   : > { %2626 = vmatmul.bf16.gmra.mxu0 %v5595_v13  ;;  %2660 = vmatmul.bf16.gmra.mxu1 %v5588_v0 }
 0x30c   : > { %v5924_v5 = vpack.c.bf16 %v1967_v60, %v1963_v38 }
 0x30d   : > { %v2408_v14 = vpop.f32.mrf.mxu2  ;;  %v2442_v28 = vpop.f32.mrf.mxu3 }
 0x30e   : > { %v2409_v29 = vadd.f32 %v2408_v14, %v5920_v35 }
 0x310   : > { %v2443_v10 = vadd.f32 %v2442_v28, %v2409_v29  ;;  %v2478_v24 = vpop.f32.mrf.mxu0  ;;  %v2512_v44 = vpop.f32.mrf.mxu1 }
 0x312   : > { %v2477_v58 = vadd.f32 %v2476_v22, %v2443_v10 }
 0x314   : > { %v2511_v33 = vadd.f32 %v2510_v19, %v2477_v58  ;;  %v6365_v58 = vld [vmem:[#allocation34_spill] sm:$0xff] }
 0x315   : > { %v2410_v43 = vpop.f32.mrf.mxu2  ;;  %v2444_v45 = vpop.f32.mrf.mxu3 }
 0x316   : > { %v2411_v12 = vadd.f32 %v2410_v43, %v5920_v35  ;;  %v2671_v54 = vmax.f32 %v2511_v33, 0.0 }
 0x318   : > { %v2445_v1 = vadd.f32 %v2444_v45, %v2411_v12  ;;  %v2481_v63 = vpop.f32.mrf.mxu0  ;;  %v2515_v13 = vpop.f32.mrf.mxu1 }
 0x31a   : > { %v2479_v23 = vadd.f32 %v2478_v24, %v2445_v1  ;;  %2563 = vmatmul.bf16.gmra.mxu2 %v5469_v7  ;;  %2597 = vmatmul.bf16.gmra.mxu3 %v5455_v55 }
 0x31b   : > { %2631 = vmatmul.bf16.gmra.mxu0 %v5637_v39  ;;  %2665 = vmatmul.bf16.gmra.mxu1 %v5622_v47 }
 0x31c   : > { %v2513_v0 = vadd.f32 %v2512_v44, %v2479_v23  ;;  %v6364_v44 = vld [vmem:[#allocation35_spill] sm:$0xff] }
 0x31d   : > { %v2413_v3 = vpop.f32.mrf.mxu2  ;;  %v2447_v36 = vpop.f32.mrf.mxu3 }
 0x31e   : > { %v2673_v17 = vmax.f32 %v2513_v0, 0.0  ;;  %v2414_v53 = vadd.f32 %v2413_v3, %v5920_v35 }
 0x320   : > { %v5933_v9 = vpack.c.bf16 %v2673_v17, %v2671_v54  ;;  %v2448_v50 = vadd.f32 %v2447_v36, %v2414_v53  ;;  %v2483_v21 = vpop.f32.mrf.mxu0  ;;  %v2517_v31 = vpop.f32.mrf.mxu1 }
 0x322   : > { %v2482_v6 = vadd.f32 %v2481_v63, %v2448_v50 }
 0x324   : > { %v2516_v7 = vadd.f32 %v2515_v13, %v2482_v6 }
 0x325   : > { %v2415_v49 = vpop.f32.mrf.mxu2  ;;  %v2449_v55 = vpop.f32.mrf.mxu3 }
 0x326   : > { %v2416_v39 = vadd.f32 %v2415_v49, %v5920_v35  ;;  %v2675_v25 = vmax.f32 %v2516_v7, 0.0  ;;  %v6366_v49 = vld [vmem:[#allocation42_spill] sm:$0xff] }
 0x328   : > { %v2450_v8 = vadd.f32 %v2449_v55, %v2416_v39  ;;  %v2486_v47 = vpop.f32.mrf.mxu0  ;;  %v2520_v37 = vpop.f32.mrf.mxu1  ;;  %v6367_v55 = vld [vmem:[#allocation40_spill] sm:$0xff] }
 0x32a   : > { %v2484_v16 = vadd.f32 %v2483_v21, %v2450_v8  ;;  %2699 = vmatmul.bf16.vlgmr.msra.gmra.mxu2 %v6362_v18  ;;  %2733 = vmatmul.bf16.vlgmr.msra.gmra.mxu3 %v6363_v15 }
 0x32b   : > { %2767 = vmatmul.bf16.vlgmr.msra.gmra.mxu0 %v5820_v2  ;;  %2801 = vmatmul.bf16.vlgmr.msra.gmra.mxu1 %v5811_v32 }
 0x32c   : > { %v2518_v11 = vadd.f32 %v2517_v31, %v2484_v16 }
 0x32d   : > { %v2418_v26 = vpop.f32.mrf.mxu2  ;;  %v2452_v27 = vpop.f32.mrf.mxu3 }
 0x32e   : > { %v2419_v57 = vadd.f32 %v2418_v26, %v5920_v35  ;;  %v2677_v56 = vmax.f32 %v2518_v11, 0.0 }
 0x330   : > { %v2453_v20 = vadd.f32 %v2452_v27, %v2419_v57  ;;  %v2488_v40 = vpop.f32.mrf.mxu0  ;;  %v2522_v48 = vpop.f32.mrf.mxu1  ;;  %v5941_v52 = vpack.c.bf16 %v2677_v56, %v2675_v25 }
 0x332   : > { %v2487_v22 = vadd.f32 %v2486_v47, %v2453_v20 }
 0x334   : > { %v2521_v19 = vadd.f32 %v2520_v37, %v2487_v22 }
 0x335   : > { %v2420_v38 = vpop.f32.mrf.mxu2  ;;  %v2454_v60 = vpop.f32.mrf.mxu3 }
 0x336   : > { %v2421_v14 = vadd.f32 %v2420_v38, %v5920_v35  ;;  %v2679_v12 = vmax.f32 %v2521_v19, 0.0 }
 0x338   : > { %v2455_v28 = vadd.f32 %v2454_v60, %v2421_v14  ;;  %v2491_v29 = vpop.f32.mrf.mxu0  ;;  %v2525_v10 = vpop.f32.mrf.mxu1 }
 0x33a   : > { %v2489_v24 = vadd.f32 %v2488_v40, %v2455_v28  ;;  %2704 = vmatmul.bf16.gmra.mxu2 %v6364_v44  ;;  %2738 = vmatmul.bf16.gmra.mxu3 %v6365_v58  ;;  %v6368_v28 = vld [vmem:[#allocation46_spill] sm:$0xff] }
 0x33b   : > { %2772 = vmatmul.bf16.gmra.mxu0 %v5849_v4  ;;  %2806 = vmatmul.bf16.gmra.mxu1 %v5837_v61 }
 0x33c   : > { %v2523_v33 = vadd.f32 %v2522_v48, %v2489_v24 }
 0x33d   : > { %v2423_v43 = vpop.f32.mrf.mxu2  ;;  %v2457_v45 = vpop.f32.mrf.mxu3 }
 0x33e   : > { %v2424_v1 = vadd.f32 %v2423_v43, %v5920_v35  ;;  %v2681_v63 = vmax.f32 %v2523_v33, 0.0 }
 0x340   : > { %v2458_v13 = vadd.f32 %v2457_v45, %v2424_v1  ;;  %v2493_v23 = vpop.f32.mrf.mxu0  ;;  %v2527_v0 = vpop.f32.mrf.mxu1  ;;  %v5949_v3 = vpack.c.bf16 %v2681_v63, %v2679_v12 }
 0x342   : > { %v2492_v36 = vadd.f32 %v2491_v29, %v2458_v13  ;;  %v6369_v29 = vld [vmem:[#allocation45_spill] sm:$0xff] }
 0x344   : > { %v2526_v54 = vadd.f32 %v2525_v10, %v2492_v36  ;;  %v5963_v10 = vperm.slane %v5913_v42, 1 }
 0x345   : > { %v2425_v17 = vpop.f32.mrf.mxu2  ;;  %v2459_v53 = vpop.f32.mrf.mxu3 }
 0x346   : > { %v2426_v50 = vadd.f32 %v2425_v17, %v5920_v35  ;;  %v2683_v37 = vmax.f32 %v2526_v54, 0.0 }
 0x348   : > { %v2460_v21 = vadd.f32 %v2459_v53, %v2426_v50  ;;  %v2496_v31 = vpop.f32.mrf.mxu0  ;;  %v2530_v6 = vpop.f32.mrf.mxu1 }
 0x34a   : > { %v2494_v7 = vadd.f32 %v2493_v23, %v2460_v21  ;;  %2709 = vmatmul.bf16.gmra.mxu2 %v6366_v49  ;;  %2743 = vmatmul.bf16.gmra.mxu3 %v6367_v55 }
 0x34b   : > { %2777 = vmatmul.bf16.gmra.mxu0 %v5875_v59  ;;  %2811 = vmatmul.bf16.gmra.mxu1 %v5866_v62 }
 0x34c   : > { %v2528_v39 = vadd.f32 %v2527_v0, %v2494_v7 }
 0x34d   : > { %v2428_v8 = vpop.f32.mrf.mxu2  ;;  %v2462_v47 = vpop.f32.mrf.mxu3 }
 0x34e   : > { %v2429_v16 = vadd.f32 %v2428_v8, %v5920_v35  ;;  %v2685_v11 = vmax.f32 %v2528_v39, 0.0 }
 0x350   : > { %v2463_v26 = vadd.f32 %v2462_v47, %v2429_v16  ;;  %v2498_v27 = vpop.f32.mrf.mxu0  ;;  %v2532_v25 = vpop.f32.mrf.mxu1  ;;  %v5957_v57 = vpack.c.bf16 %v2685_v11, %v2683_v37 }
 0x352   : > { %v2497_v56 = vadd.f32 %v2496_v31, %v2463_v26 }
 0x354   : > { %v2531_v20 = vadd.f32 %v2530_v6, %v2497_v56 }
 0x355   : > { %v2430_v40 = vpop.f32.mrf.mxu2  ;;  %v2464_v48 = vpop.f32.mrf.mxu3 }
 0x356   : > { %v2431_v22 = vadd.f32 %v2430_v40, %v5920_v35  ;;  %v2687_v45 = vmax.f32 %v2531_v20, 0.0 }
 0x358   : > { %v2465_v19 = vadd.f32 %v2464_v48, %v2431_v22  ;;  %v2612_v38 = vpop.f32.mrf.mxu0  ;;  %v2646_v60 = vpop.f32.mrf.mxu1 }
 0x35a   : > { %v2499_v14 = vadd.f32 %v2498_v27, %v2465_v19  ;;  %2714 = vmatmul.bf16.gmra.mxu2 %v6368_v28  ;;  %2748 = vmatmul.bf16.gmra.mxu3 %v6369_v29 }
 0x35b   : > { %2782 = vmatmul.bf16.gmra.mxu0 %v5903_v41  ;;  %2816 = vmatmul.bf16.gmra.mxu1 %v5892_v46 }
 0x35c   : > { %v2533_v24 = vadd.f32 %v2532_v25, %v2499_v14 }
 0x35d   : > { %v2544_v33 = vpop.f32.mrf.mxu2  ;;  %v2578_v43 = vpop.f32.mrf.mxu3 }
 0x35e   : > { %v2545_v12 = vadd.f32 %v2544_v33, %v5963_v10  ;;  %v2689_v1 = vmax.f32 %v2533_v24, 0.0 }
 0x360   : > { %v2579_v63 = vadd.f32 %v2578_v43, %v2545_v12  ;;  %v2614_v13 = vpop.f32.mrf.mxu0  ;;  %v2648_v23 = vpop.f32.mrf.mxu1  ;;  %v5968_v0 = vpack.c.bf16 %v2689_v1, %v2687_v45 }
 0x362   : > { %v2613_v36 = vadd.f32 %v2612_v38, %v2579_v63 }
 0x364   : > { %v2647_v54 = vadd.f32 %v2646_v60, %v2613_v36 }
 0x365   : > { %v2546_v42 = vpop.f32.mrf.mxu2  ;;  %v2580_v17 = vpop.f32.mrf.mxu3 }
 0x366   : > { %v2547_v53 = vadd.f32 %v2546_v42, %v5963_v10  ;;  %v2672_v47 = vmax.f32 %v2647_v54, 0.0 }
 0x368   : > { %v2581_v50 = vadd.f32 %v2580_v17, %v2547_v53  ;;  %v2617_v21 = vpop.f32.mrf.mxu0  ;;  %v2651_v31 = vpop.f32.mrf.mxu1 }
 0x36a   : > { %v2615_v6 = vadd.f32 %v2614_v13, %v2581_v50  ;;  %2719 = vmatmul.bf16.gmra.mxu2 %v5794_v34  ;;  %2753 = vmatmul.bf16.gmra.mxu3 %v5778_v51 }
 0x36b   : > { %2787 = vmatmul.bf16.gmra.mxu0 %v5924_v5  ;;  %2821 = vmatmul.bf16.gmra.mxu1 %v5915_v30 }
 0x36c   : > { %v2649_v7 = vadd.f32 %v2648_v23, %v2615_v6 }
 0x36d   : > { %v2549_v39 = vpop.f32.mrf.mxu2  ;;  %v2583_v8 = vpop.f32.mrf.mxu3 }
 0x36e   : > { %v2674_v37 = vmax.f32 %v2649_v7, 0.0  ;;  %v2550_v16 = vadd.f32 %v2549_v39, %v5963_v10 }
 0x370   : > { %v5976_v11 = vpack.c.bf16 %v2674_v37, %v2672_v47  ;;  %v2584_v26 = vadd.f32 %v2583_v8, %v2550_v16  ;;  %v2619_v27 = vpop.f32.mrf.mxu0  ;;  %v2653_v25 = vpop.f32.mrf.mxu1  ;;  %v4250_v8 = vld [vmem:[%s6154_s9 + $0x30] sm:$0xff] }
 0x372   : > { %v2618_v56 = vadd.f32 %v2617_v21, %v2584_v26  ;;  %v4251_v21 = vld [vmem:[%s6154_s9 + $0x38] sm:$0xff] }
 0x373   : > { %3135 = vmatpush.bf16.msra.mxu2 %v4251_v21  ;;  %3203 = vmatpush.bf16.msra.mxu0 %v4251_v21 }
 0x374   : > { %v2652_v20 = vadd.f32 %v2651_v31, %v2618_v56  ;;  %v4259_v31 = vld [vmem:[%s6154_s9 + $0x78] sm:$0xff]  ;;  %v4257_v56 = vld [vmem:[%s6154_s9 + $0x68] sm:$0xff] }
 0x375   : > { %v2551_v40 = vpop.f32.mrf.mxu2  ;;  %v2585_v48 = vpop.f32.mrf.mxu3  ;;  %3169 = vmatpush.bf16.msra.mxu3 %v4259_v31  ;;  %3237 = vmatpush.bf16.msra.mxu1 %v4259_v31  ;;  %v4244_v31 = vld [vmem:[%s6154_s9] sm:$0xff] }
 0x376   : > { %v2552_v22 = vadd.f32 %v2551_v40, %v5963_v10  ;;  %v2676_v45 = vmax.f32 %v2652_v20, 0.0 }
 0x377   : > { %3136 = vmatpush.bf16.msra.mxu2 %v4250_v8  ;;  %3204 = vmatpush.bf16.msra.mxu0 %v4250_v8 }
 0x378   : > { %v2586_v19 = vadd.f32 %v2585_v48, %v2552_v22  ;;  %v2622_v38 = vpop.f32.mrf.mxu0  ;;  %v2656_v60 = vpop.f32.mrf.mxu1 }
 0x37a   : > { %v2620_v14 = vadd.f32 %v2619_v27, %v2586_v19  ;;  %2835 = vmatmul.bf16.vlgmr.msrb.gmra.mxu2 %v6362_v18  ;;  %2869 = vmatmul.bf16.vlgmr.msrb.gmra.mxu3 %v6363_v15  ;;  %v4248_v19 = vld [vmem:[%s6154_s9 + $0x20] sm:$0xff] }
 0x37b   : > { %2903 = vmatmul.bf16.vlgmr.msrb.gmra.mxu0 %v5820_v2  ;;  %2937 = vmatmul.bf16.vlgmr.msrb.gmra.mxu1 %v5811_v32 }
 0x37c   : > { %v2654_v24 = vadd.f32 %v2653_v25, %v2620_v14  ;;  %v4249_v25 = vld [vmem:[%s6154_s9 + $0x28] sm:$0xff] }
 0x37d   : > { %v2554_v33 = vpop.f32.mrf.mxu2  ;;  %v2588_v43 = vpop.f32.mrf.mxu3  ;;  %3137 = vmatpush.bf16.msra.mxu2 %v4249_v25  ;;  %3205 = vmatpush.bf16.msra.mxu0 %v4249_v25 }
 0x37e   : > { %v2555_v12 = vadd.f32 %v2554_v33, %v5963_v10  ;;  %v2678_v1 = vmax.f32 %v2654_v24, 0.0 }
 0x380   : > { %v2589_v63 = vadd.f32 %v2588_v43, %v2555_v12  ;;  %v2624_v13 = vpop.f32.mrf.mxu0  ;;  %v2658_v23 = vpop.f32.mrf.mxu1  ;;  %v5984_v36 = vpack.c.bf16 %v2678_v1, %v2676_v45  ;;  %v4247_v43 = vld [vmem:[%s6154_s9 + $0x18] sm:$0xff] }
 0x381   : > { %3138 = vmatpush.bf16.msra.mxu2 %v4248_v19  ;;  %3206 = vmatpush.bf16.msra.mxu0 %v4248_v19  ;;  %v4255_v45 = vld [vmem:[%s6154_s9 + $0x58] sm:$0xff] }
 0x382   : > { %v2623_v54 = vadd.f32 %v2622_v38, %v2589_v63  ;;  %v4256_v38 = vld [vmem:[%s6154_s9 + $0x60] sm:$0xff] }
 0x384   : > { %v2657_v18 = vadd.f32 %v2656_v60, %v2623_v54 }
 0x385   : > { %v2556_v42 = vpop.f32.mrf.mxu2  ;;  %v2590_v15 = vpop.f32.mrf.mxu3  ;;  %3139 = vmatpush.bf16.msra.mxu2 %v4247_v43  ;;  %3207 = vmatpush.bf16.msra.mxu0 %v4247_v43 }
 0x386   : > { %v2557_v2 = vadd.f32 %v2556_v42, %v5963_v10 }
 0x388   : > { %v2591_v17 = vadd.f32 %v2590_v15, %v2557_v2  ;;  %v2627_v32 = vpop.f32.mrf.mxu0  ;;  %v2661_v53 = vpop.f32.mrf.mxu1  ;;  %v4245_v2 = vld [vmem:[%s6154_s9 + $0x8] sm:$0xff] }
 0x38a   : > { %v2625_v50 = vadd.f32 %v2624_v13, %v2591_v17  ;;  %2840 = vmatmul.bf16.gmra.mxu2 %v6364_v44  ;;  %2874 = vmatmul.bf16.gmra.mxu3 %v6365_v58  ;;  %v2680_v44 = vmax.f32 %v2657_v18, 0.0  ;;  %v4246_v13 = vld [vmem:[%s6154_s9 + $0x10] sm:$0xff]  ;;  %v4253_v17 = vld [vmem:[%s6154_s9 + $0x48] sm:$0xff] }
 0x38b   : > { %2908 = vmatmul.bf16.gmra.mxu0 %v5849_v4  ;;  %2942 = vmatmul.bf16.gmra.mxu1 %v5837_v61  ;;  %v4258_v4 = vld [vmem:[%s6154_s9 + $0x70] sm:$0xff] }
 0x38c   : > { %v2659_v6 = vadd.f32 %v2658_v23, %v2625_v50  ;;  %3170 = vmatpush.bf16.msra.mxu3 %v4258_v4  ;;  %3238 = vmatpush.bf16.msra.mxu1 %v4258_v4 }
 0x38d   : > { %v2559_v7 = vpop.f32.mrf.mxu2  ;;  %v2593_v39 = vpop.f32.mrf.mxu3  ;;  %3140 = vmatpush.bf16.msra.mxu2 %v4246_v13  ;;  %3208 = vmatpush.bf16.msra.mxu0 %v4246_v13 }
 0x38e   : > { %v2560_v58 = vadd.f32 %v2559_v7, %v5963_v10  ;;  %v2682_v47 = vmax.f32 %v2659_v6, 0.0  ;;  %v4252_v6 = vld [vmem:[%s6154_s9 + $0x40] sm:$0xff] }
 0x390   : > { %v2594_v61 = vadd.f32 %v2593_v39, %v2560_v58  ;;  %v2629_v37 = vpop.f32.mrf.mxu0  ;;  %v2663_v16 = vpop.f32.mrf.mxu1  ;;  %v6004_v26 = vpack.c.bf16 %v2682_v47, %v2680_v44  ;;  %3171 = vmatpush.bf16.msra.mxu3 %v4257_v56  ;;  %3239 = vmatpush.bf16.msra.mxu1 %v4257_v56 }
 0x391   : > { %3141 = vmatpush.bf16.msra.mxu2 %v4245_v2  ;;  %3209 = vmatpush.bf16.msra.mxu0 %v4245_v2 }
 0x392   : > { %v2628_v27 = vadd.f32 %v2627_v32, %v2594_v61 }
 0x394   : > { %v2662_v20 = vadd.f32 %v2661_v53, %v2628_v27  ;;  %3172 = vmatpush.bf16.msra.mxu3 %v4256_v38  ;;  %3240 = vmatpush.bf16.msra.mxu1 %v4256_v38 }
 0x395   : > { %v2561_v40 = vpop.f32.mrf.mxu2  ;;  %v2595_v48 = vpop.f32.mrf.mxu3  ;;  %3142 = vmatpush.bf16.msra.mxu2 %v4244_v31  ;;  %3210 = vmatpush.bf16.msra.mxu0 %v4244_v31 }
 0x396   : > { %v2562_v22 = vadd.f32 %v2561_v40, %v5963_v10 }
 0x398   : > { %v2596_v60 = vadd.f32 %v2595_v48, %v2562_v22  ;;  %v2632_v14 = vpop.f32.mrf.mxu0  ;;  %v2666_v24 = vpop.f32.mrf.mxu1  ;;  %3173 = vmatpush.bf16.msra.mxu3 %v4255_v45  ;;  %3241 = vmatpush.bf16.msra.mxu1 %v4255_v45 }
 0x39a   : > { %v2630_v33 = vadd.f32 %v2629_v37, %v2596_v60  ;;  %2845 = vmatmul.bf16.gmra.mxu2 %v6366_v49  ;;  %2879 = vmatmul.bf16.gmra.mxu3 %v6367_v55  ;;  %v2684_v49 = vmax.f32 %v2662_v20, 0.0 }
 0x39b   : > { %2913 = vmatmul.bf16.gmra.mxu0 %v5875_v59  ;;  %2947 = vmatmul.bf16.gmra.mxu1 %v5866_v62  ;;  %v4254_v59 = vld [vmem:[%s6154_s9 + $0x50] sm:$0xff] }
 0x39c   : > { %v2664_v12 = vadd.f32 %v2663_v16, %v2630_v33  ;;  %3174 = vmatpush.bf16.msra.mxu3 %v4254_v59  ;;  %3242 = vmatpush.bf16.msra.mxu1 %v4254_v59 }
 0x39d   : > { %v2564_v1 = vpop.f32.mrf.mxu2  ;;  %v2598_v63 = vpop.f32.mrf.mxu3 }
 0x39e   : > { %v2565_v55 = vadd.f32 %v2564_v1, %v5963_v10  ;;  %v2686_v23 = vmax.f32 %v2664_v12, 0.0 }
 0x3a0   : > { %v2599_v62 = vadd.f32 %v2598_v63, %v2565_v55  ;;  %v2634_v54 = vpop.f32.mrf.mxu0  ;;  %v2668_v18 = vpop.f32.mrf.mxu1  ;;  %v6036_v42 = vpack.c.bf16 %v2686_v23, %v2684_v49  ;;  %3175 = vmatpush.bf16.msra.mxu3 %v4253_v17  ;;  %3243 = vmatpush.bf16.msra.mxu1 %v4253_v17 }
 0x3a2   : > { %v2633_v15 = vadd.f32 %v2632_v14, %v2599_v62 }
 0x3a4   : > { %v2667_v32 = vadd.f32 %v2666_v24, %v2633_v15  ;;  %3176 = vmatpush.bf16.msra.mxu3 %v4252_v6  ;;  %3244 = vmatpush.bf16.msra.mxu1 %v4252_v6 }
 0x3a5   : > { %v2566_v53 = vpop.f32.mrf.mxu2  ;;  %v2600_v50 = vpop.f32.mrf.mxu3 }
 0x3a6   : > { %v2567_v21 = vadd.f32 %v2566_v53, %v5963_v10  ;;  %v2688_v61 = vmax.f32 %v2667_v32, 0.0 }
 0x3a8   : > { %v2601_v7 = vadd.f32 %v2600_v50, %v2567_v21  ;;  %v2768_v39 = vpop.f32.mrf.mxu0  ;;  %v2802_v44 = vpop.f32.mrf.mxu1 }
 0x3aa   : > { %v2635_v58 = vadd.f32 %v2634_v54, %v2601_v7  ;;  %2850 = vmatmul.bf16.gmra.mxu2 %v6368_v28  ;;  %2884 = vmatmul.bf16.gmra.mxu3 %v6369_v29 }
 0x3ab   : > { %2918 = vmatmul.bf16.gmra.mxu0 %v5903_v41  ;;  %2952 = vmatmul.bf16.gmra.mxu1 %v5892_v46 }
 0x3ac   : > { %v2669_v8 = vadd.f32 %v2668_v18, %v2635_v58 }
 0x3ad   : > { %v2700_v4 = vpop.f32.mrf.mxu2  ;;  %v2734_v47 = vpop.f32.mrf.mxu3 }
 0x3ae   : > { %v2690_v37 = vmax.f32 %v2669_v8, 0.0  ;;  %v2701_v28 = vadd.f32 %v2700_v4, %v5920_v35 }
 0x3b0   : > { %v2770_v16 = vpop.f32.mrf.mxu0  ;;  %v2804_v27 = vpop.f32.mrf.mxu1  ;;  %v6055_v25 = vpack.c.bf16 %v2690_v37, %v2688_v61  ;;  %v2735_v46 = vadd.f32 %v2734_v47, %v2701_v28 }
 0x3b2   : > { %v2769_v60 = vadd.f32 %v2768_v39, %v2735_v46 }
 0x3b4   : > { %v2803_v43 = vadd.f32 %v2802_v44, %v2769_v60 }
 0x3b5   : > { %v2702_v56 = vpop.f32.mrf.mxu2  ;;  %v2736_v20 = vpop.f32.mrf.mxu3 }
 0x3b6   : > { %v2703_v40 = vadd.f32 %v2702_v56, %v5920_v35  ;;  %v2963_v63 = vmax.f32 %v2803_v43, 0.0 }
 0x3b8   : > { %v2773_v29 = vpop.f32.mrf.mxu0  ;;  %v2807_v48 = vpop.f32.mrf.mxu1  ;;  %v2737_v41 = vadd.f32 %v2736_v20, %v2703_v40 }
 0x3ba   : > { %2855 = vmatmul.bf16.gmra.mxu2 %v5794_v34  ;;  %2889 = vmatmul.bf16.gmra.mxu3 %v5778_v51  ;;  %v2771_v22 = vadd.f32 %v2770_v16, %v2737_v41 }
 0x3bb   : > { %2923 = vmatmul.bf16.gmra.mxu0 %v5924_v5  ;;  %2957 = vmatmul.bf16.gmra.mxu1 %v5915_v30 }
 0x3bc   : > { %v2805_v33 = vadd.f32 %v2804_v27, %v2771_v22 }
 0x3bd   : > { %v2705_v19 = vpop.f32.mrf.mxu2  ;;  %v2739_v38 = vpop.f32.mrf.mxu3 }
 0x3be   : > { %v2965_v45 = vmax.f32 %v2805_v33, 0.0  ;;  %v2706_v51 = vadd.f32 %v2705_v19, %v5920_v35 }
 0x3c0   : > { %v2775_v14 = vpop.f32.mrf.mxu0  ;;  %v2809_v24 = vpop.f32.mrf.mxu1  ;;  %v2993_v55 = vpack.c.bf16 %v2965_v45, %v2963_v63  ;;  %v2740_v13 = vadd.f32 %v2739_v38, %v2706_v51 }
 0x3c2   : > { %v2774_v54 = vadd.f32 %v2773_v29, %v2740_v13 }
 0x3c4   : > { %v2808_v17 = vadd.f32 %v2807_v48, %v2774_v54 }
 0x3c5   : > { %v2707_v12 = vpop.f32.mrf.mxu2  ;;  %v2741_v1 = vpop.f32.mrf.mxu3 }
 0x3c6   : > { %v2708_v34 = vadd.f32 %v2707_v12, %v5920_v35  ;;  %v2967_v31 = vmax.f32 %v2808_v17, 0.0 }
 0x3c8   : > { %v2778_v49 = vpop.f32.mrf.mxu0  ;;  %v2812_v5 = vpop.f32.mrf.mxu1  ;;  %v2742_v30 = vadd.f32 %v2741_v1, %v2708_v34 }
 0x3ca   : > { %3143 = vmatmul.bf16.vlgmr.msra.gmra.mxu2 %v5933_v9  ;;  %3177 = vmatmul.bf16.vlgmr.msra.gmra.mxu3 %v5976_v11  ;;  %v2776_v59 = vadd.f32 %v2775_v14, %v2742_v30 }
 0x3cb   : > { %3211 = vmatmul.bf16.vlgmr.msra.gmra.mxu0 %v2993_v55 }
 0x3cc   : > { %v2810_v2 = vadd.f32 %v2809_v24, %v2776_v59 }
 0x3cd   : > { %v2710_v23 = vpop.f32.mrf.mxu2  ;;  %v2744_v62 = vpop.f32.mrf.mxu3 }
 0x3ce   : > { %v2969_v50 = vmax.f32 %v2810_v2, 0.0  ;;  %v2711_v9 = vadd.f32 %v2710_v23, %v5920_v35 }
 0x3d0   : > { %v2780_v18 = vpop.f32.mrf.mxu0  ;;  %v2814_v15 = vpop.f32.mrf.mxu1  ;;  %v2995_v39 = vpack.c.bf16 %v2969_v50, %v2967_v31  ;;  %v2745_v44 = vadd.f32 %v2744_v62, %v2711_v9 }
 0x3d2   : > { %v2779_v47 = vadd.f32 %v2778_v49, %v2745_v44 }
 0x3d4   : > { %v2813_v27 = vadd.f32 %v2812_v5, %v2779_v47 }
 0x3d5   : > { %v2712_v32 = vpop.f32.mrf.mxu2  ;;  %v2746_v53 = vpop.f32.mrf.mxu3 }
 0x3d6   : > { %v2713_v21 = vadd.f32 %v2712_v32, %v5920_v35  ;;  %v2971_v29 = vmax.f32 %v2813_v27, 0.0 }
 0x3d8   : > { %v2783_v6 = vpop.f32.mrf.mxu0  ;;  %v2817_v11 = vpop.f32.mrf.mxu1  ;;  %v2747_v7 = vadd.f32 %v2746_v53, %v2713_v21 }
 0x3da   : > { %3148 = vmatmul.bf16.gmra.mxu2 %v5941_v52  ;;  %3182 = vmatmul.bf16.gmra.mxu3 %v5984_v36  ;;  %v2781_v58 = vadd.f32 %v2780_v18, %v2747_v7 }
 0x3db   : > { %3216 = vmatmul.bf16.gmra.mxu0 %v2995_v39 }
 0x3dc   : > { %v2815_v16 = vadd.f32 %v2814_v15, %v2781_v58 }
 0x3dd   : > { %v2715_v8 = vpop.f32.mrf.mxu2  ;;  %v2749_v4 = vpop.f32.mrf.mxu3 }
 0x3de   : > { %v2973_v40 = vmax.f32 %v2815_v16, 0.0  ;;  %v2716_v52 = vadd.f32 %v2715_v8, %v5920_v35 }
 0x3e0   : > { %v2785_v61 = vpop.f32.mrf.mxu0  ;;  %v2819_v37 = vpop.f32.mrf.mxu1  ;;  %v2997_v46 = vpack.c.bf16 %v2973_v40, %v2971_v29  ;;  %v2750_v22 = vadd.f32 %v2749_v4, %v2716_v52 }
 0x3e2   : > { %v2784_v14 = vadd.f32 %v2783_v6, %v2750_v22 }
 0x3e4   : > { %v2818_v45 = vadd.f32 %v2817_v11, %v2784_v14 }
 0x3e5   : > { %v2717_v56 = vpop.f32.mrf.mxu2  ;;  %v2751_v20 = vpop.f32.mrf.mxu3 }
 0x3e6   : > { %v2718_v28 = vadd.f32 %v2717_v56, %v5920_v35  ;;  %v2975_v51 = vmax.f32 %v2818_v45, 0.0 }
 0x3e8   : > { %v2788_v48 = vpop.f32.mrf.mxu0  ;;  %v2822_v36 = vpop.f32.mrf.mxu1  ;;  %v2752_v41 = vadd.f32 %v2751_v20, %v2718_v28 }
 0x3ea   : > { %3153 = vmatmul.bf16.gmra.mxu2 %v5949_v3  ;;  %3187 = vmatmul.bf16.gmra.mxu3 %v6004_v26  ;;  %v2786_v19 = vadd.f32 %v2785_v61, %v2752_v41 }
 0x3eb   : > { %3221 = vmatmul.bf16.gmra.mxu0 %v2997_v46 }
 0x3ec   : > { %v2820_v43 = vadd.f32 %v2819_v37, %v2786_v19 }
 0x3ed   : > { %v2720_v38 = vpop.f32.mrf.mxu2  ;;  %v2754_v60 = vpop.f32.mrf.mxu3 }
 0x3ee   : > { %v2977_v12 = vmax.f32 %v2820_v43, 0.0  ;;  %v2721_v3 = vadd.f32 %v2720_v38, %v5920_v35 }
 0x3f0   : > { %v2790_v24 = vpop.f32.mrf.mxu0  ;;  %v2824_v33 = vpop.f32.mrf.mxu1  ;;  %v2999_v55 = vpack.c.bf16 %v2977_v12, %v2975_v51  ;;  %v2755_v30 = vadd.f32 %v2754_v60, %v2721_v3 }
 0x3f2   : > { %v2789_v54 = vadd.f32 %v2788_v48, %v2755_v30 }
 0x3f4   : > { %v2823_v17 = vadd.f32 %v2822_v36, %v2789_v54 }
 0x3f5   : > { %v2722_v1 = vpop.f32.mrf.mxu2  ;;  %v2756_v34 = vpop.f32.mrf.mxu3 }
 0x3f6   : > { %v2723_v63 = vadd.f32 %v2722_v1, %v5920_v35 }
 0x3f8   : > { %v2904_v49 = vpop.f32.mrf.mxu0  ;;  %v2938_v26 = vpop.f32.mrf.mxu1  ;;  %v2757_v5 = vadd.f32 %v2756_v34, %v2723_v63 }
 0x3fa   : > { %3158 = vmatmul.bf16.gmra.mxu2 %v5957_v57  ;;  %3192 = vmatmul.bf16.gmra.mxu3 %v6036_v42  ;;  %v2791_v13 = vadd.f32 %v2790_v24, %v2757_v5  ;;  %v2979_v42 = vmax.f32 %v2823_v17, 0.0 }
 0x3fb   : > { %3226 = vmatmul.bf16.gmra.mxu0 %v2999_v55 }
 0x3fc   : > { %v2825_v2 = vadd.f32 %v2824_v33, %v2791_v13 }
 0x3fd   : > { %v2836_v59 = vpop.f32.mrf.mxu2  ;;  %v2870_v23 = vpop.f32.mrf.mxu3 }
 0x3fe   : > { %v2837_v62 = vadd.f32 %v2836_v59, %v5963_v10  ;;  %v2981_v32 = vmax.f32 %v2825_v2, 0.0 }
 0x400   : > { %v2906_v18 = vpop.f32.mrf.mxu0  ;;  %v2940_v15 = vpop.f32.mrf.mxu1  ;;  %v2871_v35 = vadd.f32 %v2870_v23, %v2837_v62  ;;  %v3001_v11 = vpack.c.bf16 %v2981_v32, %v2979_v42 }
 0x402   : > { %v2905_v21 = vadd.f32 %v2904_v49, %v2871_v35 }
 0x404   : > { %v2939_v7 = vadd.f32 %v2938_v26, %v2905_v21 }
 0x405   : > { %v2838_v53 = vpop.f32.mrf.mxu2  ;;  %v2872_v50 = vpop.f32.mrf.mxu3 }
 0x406   : > { %v2839_v57 = vadd.f32 %v2838_v53, %v5963_v10  ;;  %v2964_v4 = vmax.f32 %v2939_v7, 0.0 }
 0x408   : > { %v2873_v31 = vadd.f32 %v2872_v50, %v2839_v57  ;;  %v2909_v9 = vpop.f32.mrf.mxu0  ;;  %v2943_v6 = vpop.f32.mrf.mxu1 }
 0x40a   : > { %v2907_v39 = vadd.f32 %v2906_v18, %v2873_v31  ;;  %3163 = vmatmul.bf16.gmra.mxu2 %v5968_v0  ;;  %3197 = vmatmul.bf16.gmra.mxu3 %v6055_v25 }
 0x40b   : > { %3231 = vmatmul.bf16.gmra.mxu0 %v3001_v11 }
 0x40c   : > { %v2941_v44 = vadd.f32 %v2940_v15, %v2907_v39 }
 0x40d   : > { %v2841_v58 = vpop.f32.mrf.mxu2  ;;  %v2875_v8 = vpop.f32.mrf.mxu3 }
 0x40e   : > { %v2966_v47 = vmax.f32 %v2941_v44, 0.0  ;;  %v2842_v61 = vadd.f32 %v2841_v58, %v5963_v10 }
 0x410   : > { %v2994_v37 = vpack.c.bf16 %v2966_v47, %v2964_v4  ;;  %v2911_v16 = vpop.f32.mrf.mxu0  ;;  %v2945_v27 = vpop.f32.mrf.mxu1  ;;  %v2876_v56 = vadd.f32 %v2875_v8, %v2842_v61 }
 0x412   : > { %3245 = vmatmul.bf16.vlgmr.msra.gmra.mxu1 %v2994_v37  ;;  %v2910_v28 = vadd.f32 %v2909_v9, %v2876_v56 }
 0x414   : > { %v2944_v48 = vadd.f32 %v2943_v6, %v2910_v28  ;;  %v6094_v28 = vld [vmem:[%s6155_s10] ss:$0 sm:$0xff] }
 0x415   : > { %v2843_v20 = vpop.f32.mrf.mxu2  ;;  %v2877_v40 = vpop.f32.mrf.mxu3 }
 0x416   : > { %v2844_v0 = vadd.f32 %v2843_v20, %v5963_v10  ;;  %v2968_v19 = vmax.f32 %v2944_v48, 0.0 }
 0x418   : > { %v2878_v29 = vadd.f32 %v2877_v40, %v2844_v0  ;;  %v2914_v25 = vpop.f32.mrf.mxu0  ;;  %v2948_v52 = vpop.f32.mrf.mxu1 }
 0x41a   : > { %v2912_v36 = vadd.f32 %v2911_v16, %v2878_v29 }
 0x41c   : > { %v2946_v41 = vadd.f32 %v2945_v27, %v2912_v36 }
 0x41d   : > { %v2846_v46 = vpop.f32.mrf.mxu2  ;;  %v2880_v22 = vpop.f32.mrf.mxu3 }
 0x41e   : > { %v2970_v38 = vmax.f32 %v2946_v41, 0.0  ;;  %v2847_v60 = vadd.f32 %v2846_v46, %v5963_v10 }
 0x420   : > { %v2916_v14 = vpop.f32.mrf.mxu0  ;;  %v2996_v24 = vpack.c.bf16 %v2970_v38, %v2968_v19  ;;  %v2881_v33 = vadd.f32 %v2880_v22, %v2847_v60  ;;  %v2950_v43 = vpop.f32.mrf.mxu1 }
 0x422   : > { %3250 = vmatmul.bf16.gmra.mxu1 %v2996_v24  ;;  %v2915_v1 = vadd.f32 %v2914_v25, %v2881_v33 }
 0x424   : > { %v2949_v51 = vadd.f32 %v2948_v52, %v2915_v1 }
 0x425   : > { %v2848_v45 = vpop.f32.mrf.mxu2  ;;  %v2882_v12 = vpop.f32.mrf.mxu3 }
 0x426   : > { %v2849_v34 = vadd.f32 %v2848_v45, %v5963_v10  ;;  %v2972_v13 = vmax.f32 %v2949_v51, 0.0 }
 0x428   : > { %v2883_v63 = vadd.f32 %v2882_v12, %v2849_v34  ;;  %v2919_v49 = vpop.f32.mrf.mxu0  ;;  %v2953_v5 = vpop.f32.mrf.mxu1 }
 0x42a   : > { %v2917_v3 = vadd.f32 %v2916_v14, %v2883_v63 }
 0x42c   : > { %v2951_v26 = vadd.f32 %v2950_v43, %v2917_v3 }
 0x42d   : > { %v2851_v55 = vpop.f32.mrf.mxu2  ;;  %v2885_v30 = vpop.f32.mrf.mxu3 }
 0x42e   : > { %v2974_v59 = vmax.f32 %v2951_v26, 0.0  ;;  %v2852_v23 = vadd.f32 %v2851_v55, %v5963_v10 }
 0x430   : > { %v2998_v62 = vpack.c.bf16 %v2974_v59, %v2972_v13  ;;  %v2886_v54 = vadd.f32 %v2885_v30, %v2852_v23  ;;  %v2921_v18 = vpop.f32.mrf.mxu0  ;;  %v2955_v32 = vpop.f32.mrf.mxu1 }
 0x432   : > { %3255 = vmatmul.bf16.gmra.mxu1 %v2998_v62  ;;  %v2920_v35 = vadd.f32 %v2919_v49, %v2886_v54 }
 0x434   : > { %v2954_v50 = vadd.f32 %v2953_v5, %v2920_v35 }
 0x435   : > { %v2853_v15 = vpop.f32.mrf.mxu2  ;;  %v2887_v2 = vpop.f32.mrf.mxu3 }
 0x436   : > { %v2854_v17 = vadd.f32 %v2853_v15, %v5963_v10  ;;  %v2976_v9 = vmax.f32 %v2954_v50, 0.0 }
 0x438   : > { %v2888_v53 = vadd.f32 %v2887_v2, %v2854_v17  ;;  %v2924_v7 = vpop.f32.mrf.mxu0  ;;  %v2958_v44 = vpop.f32.mrf.mxu1 }
 0x43a   : > { %v2922_v21 = vadd.f32 %v2921_v18, %v2888_v53 }
 0x43c   : > { %v2956_v57 = vadd.f32 %v2955_v32, %v2922_v21 }
 0x43d   : > { %v2856_v42 = vpop.f32.mrf.mxu2  ;;  %v2890_v31 = vpop.f32.mrf.mxu3 }
 0x43e   : > { %v2978_v6 = vmax.f32 %v2956_v57, 0.0  ;;  %v2857_v11 = vadd.f32 %v2856_v42, %v5963_v10 }
 0x440   : > { %v3000_v39 = vpack.c.bf16 %v2978_v6, %v2976_v9  ;;  %v2891_v58 = vadd.f32 %v2890_v31, %v2857_v11  ;;  %v2926_v16 = vpop.f32.mrf.mxu0  ;;  %v2960_v20 = vpop.f32.mrf.mxu1 }
 0x442   : > { %3260 = vmatmul.bf16.gmra.mxu1 %v3000_v39  ;;  %v2925_v47 = vadd.f32 %v2924_v7, %v2891_v58 }
 0x444   : > { %v2959_v27 = vadd.f32 %v2958_v44, %v2925_v47 }
 0x445   : > { %v2858_v8 = vpop.f32.mrf.mxu2  ;;  %v2892_v4 = vpop.f32.mrf.mxu3 }
 0x446   : > { %v2859_v61 = vadd.f32 %v2858_v8, %v5963_v10  ;;  %v2980_v25 = vmax.f32 %v2959_v27, 0.0 }
 0x448   : > { %v2893_v37 = vadd.f32 %v2892_v4, %v2859_v61  ;;  %v3212_v5 = vpop.f32.mrf.mxu0 }
 0x449   : > { %v3213_v53 = vadd.f32 %v6094_v28, %v3212_v5 }
 0x44a   : > { %v2927_v56 = vadd.f32 %v2926_v16, %v2893_v37 }
 0x44c   : > { %v2961_v40 = vadd.f32 %v2960_v20, %v2927_v56 }
 0x44d   : > { %v3144_v0 = vpop.f32.mrf.mxu2  ;;  %v3178_v29 = vpop.f32.mrf.mxu3 }
 0x44e   : > { %v2982_v52 = vmax.f32 %v2961_v40, 0.0  ;;  %v3145_v48 = vadd.f32 %v6094_v28, %v3144_v0 }
 0x450   : > { %v3179_v10 = vadd.f32 %v3178_v29, %v3145_v48  ;;  %v3002_v36 = vpack.c.bf16 %v2982_v52, %v2980_v25  ;;  %v3214_v62 = vpop.f32.mrf.mxu0 }
 0x451   : > { %v3215_v9 = vadd.f32 %v6094_v28, %v3214_v62 }
 0x452   : > { %3271 = vst [vmem:[%s6101_s22] sm:$0xff] %v3179_v10  ;;  %3265 = vmatmul.bf16.gmra.mxu1 %v3002_v36 }
 0x455   : > { %v3146_v41 = vpop.f32.mrf.mxu2  ;;  %v3180_v46 = vpop.f32.mrf.mxu3 }
 0x456   : > { %v3147_v22 = vadd.f32 %v6094_v28, %v3146_v41 }
 0x458   : > { %v3181_v19 = vadd.f32 %v3180_v46, %v3147_v22  ;;  %v3217_v35 = vpop.f32.mrf.mxu0 }
 0x459   : > { %v3218_v8 = vadd.f32 %v6094_v28, %v3217_v35 }
 0x45a   : > { %3272 = vst [vmem:[%s6101_s22 + $0x8] sm:$0xff] %v3181_v19 }
 0x45d   : > { %v3149_v38 = vpop.f32.mrf.mxu2  ;;  %v3183_v60 = vpop.f32.mrf.mxu3 }
 0x45e   : > { %v3150_v14 = vadd.f32 %v6094_v28, %v3149_v38 }
 0x460   : > { %v3184_v24 = vadd.f32 %v3183_v60, %v3150_v14  ;;  %v3219_v6 = vpop.f32.mrf.mxu0 }
 0x461   : > { %v3220_v37 = vadd.f32 %v6094_v28, %v3219_v6 }
 0x462   : > { %3273 = vst [vmem:[%s6101_s22 + $0x10] sm:$0xff] %v3184_v24 }
 0x465   : > { %v3151_v33 = vpop.f32.mrf.mxu2  ;;  %v3185_v43 = vpop.f32.mrf.mxu3 }
 0x466   : > { %v3152_v45 = vadd.f32 %v6094_v28, %v3151_v33 }
 0x468   : > { %v3186_v12 = vadd.f32 %v3185_v43, %v3152_v45  ;;  %v3222_v61 = vpop.f32.mrf.mxu0 }
 0x469   : > { %v3223_v20 = vadd.f32 %v6094_v28, %v3222_v61 }
 0x46a   : > { %3274 = vst [vmem:[%s6101_s22 + $0x18] sm:$0xff] %v3186_v12 }
 0x46d   : > { %v3154_v1 = vpop.f32.mrf.mxu2  ;;  %v3188_v34 = vpop.f32.mrf.mxu3 }
 0x46e   : > { %v3155_v63 = vadd.f32 %v6094_v28, %v3154_v1 }
 0x470   : > { %v3189_v51 = vadd.f32 %v3188_v34, %v3155_v63  ;;  %v3224_v56 = vpop.f32.mrf.mxu0 }
 0x471   : > { %v3225_v25 = vadd.f32 %v6094_v28, %v3224_v56 }
 0x472   : > { %3275 = vst [vmem:[%s6101_s22 + $0x20] sm:$0xff] %v3189_v51 }
 0x475   : > { %v3156_v3 = vpop.f32.mrf.mxu2  ;;  %v3190_v49 = vpop.f32.mrf.mxu3 }
 0x476   : > { %v3157_v26 = vadd.f32 %v6094_v28, %v3156_v3 }
 0x478   : > { %v3191_v55 = vadd.f32 %v3190_v49, %v3157_v26  ;;  %v3227_v29 = vpop.f32.mrf.mxu0 }
 0x479   : > { %v3228_v10 = vadd.f32 %v6094_v28, %v3227_v29 }
 0x47a   : > { %3276 = vst [vmem:[%s6101_s22 + $0x28] sm:$0xff] %v3191_v55 }
 0x47d   : > { %v3159_v30 = vpop.f32.mrf.mxu2  ;;  %v3193_v13 = vpop.f32.mrf.mxu3 }
 0x47e   : > { %v3160_v59 = vadd.f32 %v6094_v28, %v3159_v30 }
 0x480   : > { %v3194_v23 = vadd.f32 %v3193_v13, %v3160_v59  ;;  %v3229_v36 = vpop.f32.mrf.mxu0 }
 0x481   : > { %v3230_v22 = vadd.f32 %v6094_v28, %v3229_v36 }
 0x482   : > { %3277 = vst [vmem:[%s6101_s22 + $0x30] sm:$0xff] %v3194_v23 }
 0x485   : > { %v3161_v54 = vpop.f32.mrf.mxu2  ;;  %v3195_v18 = vpop.f32.mrf.mxu3 }
 0x486   : > { %v3162_v15 = vadd.f32 %v6094_v28, %v3161_v54 }
 0x488   : > { %v3196_v2 = vadd.f32 %v3195_v18, %v3162_v15  ;;  %v3232_v60 = vpop.f32.mrf.mxu0 }
 0x489   : > { %v3233_v14 = vadd.f32 %v6094_v28, %v3232_v60 }
 0x48a   : > { %3278 = vst [vmem:[%s6101_s22 + $0x38] sm:$0xff] %v3196_v2 }
 0x48d   : > { %v3164_v17 = vpop.f32.mrf.mxu2  ;;  %v3198_v32 = vpop.f32.mrf.mxu3 }
 0x48e   : > { %v3165_v50 = vadd.f32 %v6094_v28, %v3164_v17 }
 0x48f   : > { %v3246_v21 = vpop.f32.mrf.mxu1 }
 0x490   : > { %v3199_v57 = vadd.f32 %v3198_v32, %v3165_v50  ;;  %v3247_v42 = vadd.f32 %v3246_v21, %v3213_v53  ;;  %v3234_v43 = vpop.f32.mrf.mxu0 }
 0x491   : > { %v3235_v45 = vadd.f32 %v6094_v28, %v3234_v43 }
 0x492   : > { %3279 = vst [vmem:[%s6101_s22 + $0x40] sm:$0xff] %v3199_v57 }
 0x493   : > { %3281 = vst [vmem:[%s6101_s22 + $0x50] sm:$0xff] %v3247_v42 }
 0x495   : > { %v3166_v31 = vpop.f32.mrf.mxu2  ;;  %v3200_v7 = vpop.f32.mrf.mxu3 }
 0x496   : > { %v3167_v11 = vadd.f32 %v6094_v28, %v3166_v31 }
 0x497   : > { %v3248_v39 = vpop.f32.mrf.mxu1 }
 0x498   : > { %v3201_v44 = vadd.f32 %v3200_v7, %v3167_v11  ;;  %v3249_v58 = vadd.f32 %v3248_v39, %v3215_v9 }
 0x49a   : > { %3280 = vst [vmem:[%s6101_s22 + $0x48] sm:$0xff] %v3201_v44 }
 0x49b   : > { %3282 = vst [vmem:[%s6101_s22 + $0x58] sm:$0xff] %v3249_v58 }
 0x49f   : > { %v3251_v4 = vpop.f32.mrf.mxu1 }
 0x4a0   : > { %v3252_v47 = vadd.f32 %v3251_v4, %v3218_v8 }
 0x4a2   : > { %3283 = vst [vmem:[%s6101_s22 + $0x60] sm:$0xff] %v3252_v47 }
 0x4a7   : > { %v3253_v16 = vpop.f32.mrf.mxu1 }
 0x4a8   : > { %v3254_v27 = vadd.f32 %v3253_v16, %v3220_v37 }
 0x4aa   : > { %3284 = vst [vmem:[%s6101_s22 + $0x68] sm:$0xff] %v3254_v27 }
 0x4af   : > { %v3256_v40 = vpop.f32.mrf.mxu1 }
 0x4b0   : > { %v3257_v0 = vadd.f32 %v3256_v40, %v3223_v20 }
 0x4b2   : > { %3285 = vst [vmem:[%s6101_s22 + $0x70] sm:$0xff] %v3257_v0 }
 0x4b7   : > { %v3258_v52 = vpop.f32.mrf.mxu1 }
 0x4b8   : > { %v3259_v48 = vadd.f32 %v3258_v52, %v3225_v25 }
 0x4ba   : > { %3286 = vst [vmem:[%s6101_s22 + $0x78] sm:$0xff] %v3259_v48 }
 0x4bf   : > { %v3261_v41 = vpop.f32.mrf.mxu1 }
 0x4c0   : > { %v3262_v46 = vadd.f32 %v3261_v41, %v3228_v10 }
 0x4c2   : > { %3287 = vst [vmem:[%s6101_s22 + $0x80] sm:$0xff] %v3262_v46 }
 0x4c7   : > { %v3263_v19 = vpop.f32.mrf.mxu1 }
 0x4c8   : > { %v3264_v38 = vadd.f32 %v3263_v19, %v3230_v22 }
 0x4ca   : > { %3288 = vst [vmem:[%s6101_s22 + $0x88] sm:$0xff] %v3264_v38 }
 0x4cf   : > { %v3266_v24 = vpop.f32.mrf.mxu1 }
 0x4d0   : > { %v3267_v33 = vadd.f32 %v3266_v24, %v3233_v14 }
 0x4d2   : > { %3289 = vst [vmem:[%s6101_s22 + $0x90] sm:$0xff] %v3267_v33 }
 0x4d7   : > { %v3268_v12 = vpop.f32.mrf.mxu1 }
 0x4d8   : > { %v3269_v1 = vadd.f32 %v3268_v12, %v3235_v45 }
 0x4da   : > { %3290 = vst [vmem:[%s6101_s22 + $0x98] sm:$0xff] %v3269_v1 }
 0x4db PF: > { %s22_s17 = sadd.s32 1, %s4339_s17  }
 0x4dc   : > { %p19_p7 = scmp.ge.s32.totalorder %s22_s17, 4  }
 0x4de   :  { %21 = sbr.rel (!%p19_p7) target bundleno = 1 (0x1), region = 99 }
 0x4e3   :  { %3313 = vsyncpa [#allocation3], 1 }
 0x4e4   :  { %3315 = vsyncpa [#allocation3 + $0x1], 1 }

</bundles_post_ra>
